<compile_context>
chip_gen: v7x
topology: tpu7x:2x2x1
jax: 0.10.0
libtpu: 0.0.40
codegen_flags: <defaults>
</compile_context>

<pallas_src>
import math

import jax
import jax.numpy as jnp
from jax import lax
from jax.experimental import pallas as pl
from jax.experimental.pallas import tpu as pltpu


_VMEM_SPEC = pl.BlockSpec(memory_space=pltpu.MemorySpace.VMEM)


# ----------------------------------------------------------------------------
# LSTM cell (PyTorch gate order i, f, g, o)
# ----------------------------------------------------------------------------
def _lstm_cell(gates, c, H):
    i = jax.nn.sigmoid(gates[:, 0 * H:1 * H])
    f = jax.nn.sigmoid(gates[:, 1 * H:2 * H])
    g = jnp.tanh(gates[:, 2 * H:3 * H])
    o = jax.nn.sigmoid(gates[:, 3 * H:4 * H])
    c_new = f * c + i * g
    return o * jnp.tanh(c_new), c_new


# ----------------------------------------------------------------------------
# One fused fwd+bwd LSTM layer, fully unrolled (S is small & static).
# ----------------------------------------------------------------------------
def _bilstm_layer(xg_flat, whh_bd, S, Bp, H):
    """xg_flat: [S*Bp, 8H] hoisted input->gate pre-activations (bias folded in),
                time-major rows (row = t*Bp + b); cols [0:4H] fwd, [4H:8H] bwd.
       whh_bd : [2H, 8H] block-diagonal hidden->gate weight ([h_f|h_b] @ whh_bd).
       Returns python list over t of [Bp, 2H] = concat(h_fwd_t, h_bwd_t)."""
    G = 4 * H
    z = jnp.zeros((Bp, H), jnp.float32)
    h_f, c_f, h_b, c_b = z, z, z, z
    fwd = [None] * S
    bwd = [None] * S
    for t in range(S):
        tb = S - 1 - t
        xg_t = xg_flat[t * Bp:(t + 1) * Bp, :]
        xg_tb = xg_flat[tb * Bp:(tb + 1) * Bp, :]
        # Single block-diagonal matmul per step on the serial chain.
        hc = jnp.concatenate([h_f, h_b], axis=1)                        # [Bp, 2H]
        hg = jnp.dot(hc, whh_bd, preferred_element_type=jnp.float32)    # [Bp, 8H]
        h_f, c_f = _lstm_cell(xg_t[:, :G] + hg[:, :G], c_f, H)
        h_b, c_b = _lstm_cell(xg_tb[:, G:] + hg[:, G:], c_b, H)
        fwd[t] = h_f
        bwd[tb] = h_b
    return [jnp.concatenate([fwd[t], bwd[t]], axis=1) for t in range(S)]


# ----------------------------------------------------------------------------
# Stacked bi-LSTM + dot-product self-attention (query == x at eval).
# ----------------------------------------------------------------------------
def _bilstm_attn_stage(x_flat, layers, S, Bp, H):
    """x_flat: [S*Bp, Din] time-major-flat layer-0 inputs (row = t*Bp + b).
       layers: list of (wih [Din,8H], bias [1,8H], whh_bd [2H,8H]) values.
       Returns ctx [Bp, 2H]: attention context per (padded) batch row."""
    for (wih, bias, whh_bd) in layers:
        xg = jnp.dot(x_flat, wih, preferred_element_type=jnp.float32) + bias
        rows = _bilstm_layer(xg, whh_bd, S, Bp, H)
        x_flat = jnp.concatenate(rows, axis=0)                          # [S*Bp, 2H]

    # ---- attention on the flat slab: one Gram matmul + block-diag batch mask
    R = S * Bp
    scale = 1.0 / math.sqrt(2.0 * H)
    gram = jnp.einsum('id,jd->ij', x_flat, x_flat,
                      preferred_element_type=jnp.float32) * scale       # [R, R]

    ri = lax.broadcasted_iota(jnp.int32, (R, R), 0)
    ci = lax.broadcasted_iota(jnp.int32, (R, R), 1)
    diff = ri - ci
    same_batch = (diff == 0)
    for d in range(1, S):                 # rows i, j belong to the same batch
        same_batch = same_batch | (diff == d * Bp) | (diff == -d * Bp)

    scores = jnp.where(same_batch, gram, -1e30)
    scores = scores - jnp.max(scores, axis=-1, keepdims=True)
    e = jnp.exp(scores)                                    # masked entries -> 0
    p = e / jnp.sum(e, axis=-1, keepdims=True)             # exact softmax

    # context[b] = sum_k (sum_q p[b,q,k]) * x[b,k]  (".sum(dim=1)" folded in)
    w_col = jnp.sum(p, axis=0, keepdims=True)                           # [1, R]
    bi = lax.broadcasted_iota(jnp.int32, (Bp, R), 0)
    ji = lax.broadcasted_iota(jnp.int32, (Bp, R), 1)
    d2 = ji - bi
    sel_mask = (d2 == 0)
    for k in range(1, S):                 # column j belongs to batch row b
        sel_mask = sel_mask | (d2 == k * Bp)
    sel = sel_mask.astype(jnp.float32) * w_col                          # [Bp, R]
    ctx = jnp.dot(sel, x_flat, preferred_element_type=jnp.float32)      # [Bp, 2H]
    return ctx


# ----------------------------------------------------------------------------
# Fused whole-model kernel
# ----------------------------------------------------------------------------
def _make_kernel(B, N, S, Bp, V, D, H, n_layers):
    NB = N * B

    def kernel(ids_ref, emb_ref, *refs):
        idx = 0

        def take(n):
            nonlocal idx
            out = refs[idx:idx + n]
            idx += n
            return out

        dfs_layers = []
        for _ in range(n_layers):
            wih, bias, whh = take(3)
            dfs_layers.append((wih[...], bias[...], whh[...]))
        dfs_fc_w, dfs_fc_b = take(2)
        top_layers = []
        for _ in range(n_layers):
            wih, bias, whh = take(3)
            top_layers.append((wih[...], bias[...], whh[...]))
        top_fc_w, top_fc_b = take(2)
        out_ref = refs[idx]

        # ---- in-kernel embedding lookup: one-hot matmul against VMEM table
        ids = ids_ref[...]                                              # [S*Bp, 1] int32
        iota_v = lax.broadcasted_iota(jnp.int32, (S * Bp, V), 1)
        onehot = (ids == iota_v).astype(jnp.float32)                    # [S*Bp, V]
        x0 = jnp.dot(onehot, emb_ref[...],
                     preferred_element_type=jnp.float32)                # [S*Bp, D]

        # ---- DFS stage: all B*NUM_DFS sequences folded into the padded batch
        dfs_ctx = _bilstm_attn_stage(x0, dfs_layers, S, Bp, H)          # [Bp, 2H]
        dfs_out = (jnp.dot(dfs_ctx, dfs_fc_w[...],
                           preferred_element_type=jnp.float32)
                   + dfs_fc_b[...])                                     # [Bp, H]

        # ---- top stage over the NUM_DFS outputs per batch element
        x_top = dfs_out[:NB, :]                  # rows ordered n*B + b == time-major flat
        top_ctx = _bilstm_attn_stage(x_top, top_layers, N, B, H)        # [B, 2H]
        logit = (jnp.dot(top_ctx, top_fc_w[...],
                         preferred_element_type=jnp.float32)
                 + top_fc_b[...])                                       # [B, H]
        out_ref[...] = logit.astype(out_ref.dtype)     # final dropout = identity (eval)

    return kernel


# ----------------------------------------------------------------------------
# JAX wrapper: only tiny int32 id re-layout happens outside the kernel.
# ----------------------------------------------------------------------------
def hierarchical_attention_forward(dfs_seq_list, params):
    """dfs_seq_list: [B, num_dfs, seq_len] int32 -> logit [B, hidden]."""
    B, N, S = dfs_seq_list.shape
    V, D = params['emb'].shape
    H = params['top_fc_b'].shape[-1]
    n_layers = len(params['dfs_lstm'])
    NB = N * B
    Bp = max(8, ((NB + 7) // 8) * 8)        # pad folded DFS batch to sublane multiple

    # fold (b, n) -> row n*B + b (== torch permute(1,0,2) + per-dfs loop + stack(dim=1))
    ids = jnp.transpose(dfs_seq_list, (1, 0, 2)).reshape(NB, S)
    ids = jnp.pad(ids, ((0, Bp - NB), (0, 0)))                  # pad rows with token 0
    ids_tm = jnp.reshape(jnp.transpose(ids), (S * Bp, 1)).astype(jnp.int32)

    operands = [ids_tm, params['emb']]
    for lp in params['dfs_lstm']:
        operands += [lp['wih'], lp['b'], lp['whh']]
    operands += [params['dfs_fc_w'], params['dfs_fc_b']]
    for lp in params['top_lstm']:
        operands += [lp['wih'], lp['b'], lp['whh']]
    operands += [params['top_fc_w'], params['top_fc_b']]

    kernel = _make_kernel(B, N, S, Bp, V, D, H, n_layers)
    return pl.pallas_call(
        kernel,
        out_shape=jax.ShapeDtypeStruct((B, H), jnp.float32),
        in_specs=[_VMEM_SPEC] * len(operands),
        out_specs=_VMEM_SPEC,
    )(*operands)


# ----------------------------------------------------------------------------
# Deterministic parameter construction
# ----------------------------------------------------------------------------
def init_bilstm_layer(key, in_dim, hidden):
    ks = jax.random.split(key, 6)
    s = 1.0 / math.sqrt(hidden)
    u = lambda k, shape: jax.random.uniform(k, shape, jnp.float32, -s, s)
    wih_f = u(ks[0], (in_dim, 4 * hidden))
    whh_f = u(ks[1], (hidden, 4 * hidden))
    b_f = u(ks[2], (1, 4 * hidden))                   # b_ih + b_hh folded together
    wih_b = u(ks[3], (in_dim, 4 * hidden))
    whh_b = u(ks[4], (hidden, 4 * hidden))
    b_b = u(ks[5], (1, 4 * hidden))
    # block-diagonal hidden->gate weight: [h_f | h_b] @ whh -> [fwd gates | bwd gates]
    whh = jnp.zeros((2 * hidden, 8 * hidden), jnp.float32)
    whh = whh.at[:hidden, :4 * hidden].set(whh_f)
    whh = whh.at[hidden:, 4 * hidden:].set(whh_b)
    return {
        'wih': jnp.concatenate([wih_f, wih_b], axis=1),   # [Din, 8H]  (fwd | bwd)
        'b': jnp.concatenate([b_f, b_b], axis=1),         # [1, 8H]
        'whh': whh,                                       # [2H, 8H] block-diagonal
    }


def init_params(key, vocab_size, embedding_dim, hidden_size, rnn_layers):
    keys = jax.random.split(key, 8)
    emb = jax.random.normal(keys[0], (vocab_size, embedding_dim), jnp.float32) * 0.1
    emb = emb.at[1].set(0.0)                          # pretrained_dict[1, :] = zeros

    dfs_lstm, top_lstm = [], []
    for l in range(rnn_layers):
        in_d = embedding_dim if l == 0 else 2 * hidden_size
        dfs_lstm.append(init_bilstm_layer(jax.random.fold_in(keys[1], l), in_d, hidden_size))
        in_t = hidden_size if l == 0 else 2 * hidden_size
        top_lstm.append(init_bilstm_layer(jax.random.fold_in(keys[2], l), in_t, hidden_size))

    s = 1.0 / math.sqrt(2 * hidden_size)
    u = lambda k, shape: jax.random.uniform(k, shape, jnp.float32, -s, s)
    return {
        'emb': emb,
        'dfs_lstm': dfs_lstm,
        'dfs_fc_w': u(keys[3], (2 * hidden_size, hidden_size)),
        'dfs_fc_b': u(keys[4], (1, hidden_size)),
        'top_lstm': top_lstm,
        'top_fc_w': u(keys[5], (2 * hidden_size, hidden_size)),
        'top_fc_b': u(keys[6], (1, hidden_size)),
        # GlobalAttention exists in __init__ but is never used in forward().
    }


# ----------------------------------------------------------------------------
if __name__ == "__main__":
    VOCAB = 30
    EMBEDDING_DIM = 16
    HIDDEN_SIZE = 32
    RNN_LAYERS = 1
    BATCH = 2
    NUM_DFS = 3
    SEQ_LEN = 8

    key = jax.random.PRNGKey(0)
    k_params, k_ids = jax.random.split(key)
    params = init_params(k_params, VOCAB, EMBEDDING_DIM, HIDDEN_SIZE, RNN_LAYERS)

    dfs_seq_list = jax.random.randint(
        k_ids, (BATCH, NUM_DFS, SEQ_LEN), minval=0, maxval=VOCAB, dtype=jnp.int32)

    forward = jax.jit(hierarchical_attention_forward)
    logit = jax.block_until_ready(forward(dfs_seq_list, params))

    assert logit.shape == (BATCH, HIDDEN_SIZE), logit.shape
    assert bool(jnp.all(jnp.isfinite(logit)))
    print("KERNEL_OK")
</pallas_src>

<mosaic_0001>
module attributes {stable_mosaic.version = 11 : i64} {
  func.func @kernel(%arg0: memref<64x1xi32, #tpu.memory_space<vmem>>, %arg1: memref<30x16xf32, #tpu.memory_space<vmem>>, %arg2: memref<16x256xf32, #tpu.memory_space<vmem>>, %arg3: memref<1x256xf32, #tpu.memory_space<vmem>>, %arg4: memref<64x256xf32, #tpu.memory_space<vmem>>, %arg5: memref<64x32xf32, #tpu.memory_space<vmem>>, %arg6: memref<1x32xf32, #tpu.memory_space<vmem>>, %arg7: memref<32x256xf32, #tpu.memory_space<vmem>>, %arg8: memref<1x256xf32, #tpu.memory_space<vmem>>, %arg9: memref<64x256xf32, #tpu.memory_space<vmem>>, %arg10: memref<64x32xf32, #tpu.memory_space<vmem>>, %arg11: memref<1x32xf32, #tpu.memory_space<vmem>>, %arg12: memref<2x32xf32, #tpu.memory_space<vmem>>) attributes {dimension_semantics = [], scalar_prefetch = 0 : i64, scratch_operands = 0 : i64, tpu.core_type = #tpu.core_type<tc>} {
    %c0 = arith.constant 0 : index
    %c0_0 = arith.constant 0 : index
    %0 = vector.load %arg2[%c0, %c0_0] : memref<16x256xf32, #tpu.memory_space<vmem>>, vector<16x256xf32>
    %c0_1 = arith.constant 0 : index
    %c0_2 = arith.constant 0 : index
    %1 = vector.load %arg3[%c0_1, %c0_2] : memref<1x256xf32, #tpu.memory_space<vmem>>, vector<1x256xf32>
    %c0_3 = arith.constant 0 : index
    %c0_4 = arith.constant 0 : index
    %2 = vector.load %arg4[%c0_3, %c0_4] : memref<64x256xf32, #tpu.memory_space<vmem>>, vector<64x256xf32>
    %c0_5 = arith.constant 0 : index
    %c0_6 = arith.constant 0 : index
    %3 = vector.load %arg7[%c0_5, %c0_6] : memref<32x256xf32, #tpu.memory_space<vmem>>, vector<32x256xf32>
    %c0_7 = arith.constant 0 : index
    %c0_8 = arith.constant 0 : index
    %4 = vector.load %arg8[%c0_7, %c0_8] : memref<1x256xf32, #tpu.memory_space<vmem>>, vector<1x256xf32>
    %c0_9 = arith.constant 0 : index
    %c0_10 = arith.constant 0 : index
    %5 = vector.load %arg9[%c0_9, %c0_10] : memref<64x256xf32, #tpu.memory_space<vmem>>, vector<64x256xf32>
    %c0_11 = arith.constant 0 : index
    %c0_12 = arith.constant 0 : index
    %6 = vector.load %arg0[%c0_11, %c0_12] : memref<64x1xi32, #tpu.memory_space<vmem>>, vector<64x1xi32>
    %7 = tpu.iota {dimensions = array<i32: 1>} : vector<64x30xi32>
    %8 = vector.broadcast %6 : vector<64x1xi32> to vector<64x30xi32>
    %9 = arith.cmpi eq, %8, %7 : vector<64x30xi32>
    %10 = arith.extui %9 : vector<64x30xi1> to vector<64x30xi32>
    %11 = arith.sitofp %10 : vector<64x30xi32> to vector<64x30xf32>
    %c0_13 = arith.constant 0 : index
    %c0_14 = arith.constant 0 : index
    %12 = vector.load %arg1[%c0_13, %c0_14] : memref<30x16xf32, #tpu.memory_space<vmem>>, vector<30x16xf32>
    %cst = arith.constant dense<0.000000e+00> : vector<64x16xf32>
    %13 = tpu.matmul %11, %12, %cst {dimension_numbers = #tpu.dot_dimension_numbers<[1], [0], [0], [1], [0, 0, 1, 1], [], []>} : vector<64x30xf32>, vector<30x16xf32>, vector<64x16xf32> -> vector<64x16xf32>
    %cst_15 = arith.constant dense<0.000000e+00> : vector<64x256xf32>
    %14 = tpu.matmul %13, %0, %cst_15 {dimension_numbers = #tpu.dot_dimension_numbers<[1], [0], [0], [1], [0, 0, 1, 1], [], []>} : vector<64x16xf32>, vector<16x256xf32>, vector<64x256xf32> -> vector<64x256xf32>
    %15 = vector.broadcast %1 : vector<1x256xf32> to vector<64x256xf32>
    %16 = arith.addf %14, %15 : vector<64x256xf32>
    %cst_16 = arith.constant 0.000000e+00 : f32
    %17 = vector.broadcast %cst_16 : f32 to vector<8x32xf32>
    %18 = vector.extract_strided_slice %16 {offsets = [0, 0], sizes = [8, 256], strides = [1, 1]} : vector<64x256xf32> to vector<8x256xf32>
    %19 = vector.extract_strided_slice %16 {offsets = [56, 0], sizes = [8, 256], strides = [1, 1]} : vector<64x256xf32> to vector<8x256xf32>
    %20 = tpu.concatenate %17, %17 in 1 : vector<8x32xf32>, vector<8x32xf32> -> vector<8x64xf32>
    %cst_17 = arith.constant dense<0.000000e+00> : vector<8x256xf32>
    %21 = tpu.matmul %20, %2, %cst_17 {dimension_numbers = #tpu.dot_dimension_numbers<[1], [0], [0], [1], [0, 0, 1, 1], [], []>} : vector<8x64xf32>, vector<64x256xf32>, vector<8x256xf32> -> vector<8x256xf32>
    %22 = vector.extract_strided_slice %18 {offsets = [0, 0], sizes = [8, 128], strides = [1, 1]} : vector<8x256xf32> to vector<8x128xf32>
    %23 = vector.extract_strided_slice %21 {offsets = [0, 0], sizes = [8, 128], strides = [1, 1]} : vector<8x256xf32> to vector<8x128xf32>
    %24 = arith.addf %22, %23 : vector<8x128xf32>
    %25 = vector.extract_strided_slice %24 {offsets = [0, 0], sizes = [8, 32], strides = [1, 1]} : vector<8x128xf32> to vector<8x32xf32>
    %26 = arith.negf %25 : vector<8x32xf32>
    %27 = math.exp %26 : vector<8x32xf32>
    %cst_18 = arith.constant 1.000000e+00 : f32
    %28 = vector.broadcast %cst_18 : f32 to vector<8x32xf32>
    %29 = arith.addf %28, %27 : vector<8x32xf32>
    %30 = arith.divf %28, %29 : vector<8x32xf32>
    %31 = vector.extract_strided_slice %24 {offsets = [0, 32], sizes = [8, 32], strides = [1, 1]} : vector<8x128xf32> to vector<8x32xf32>
    %32 = arith.negf %31 : vector<8x32xf32>
    %33 = math.exp %32 : vector<8x32xf32>
    %cst_19 = arith.constant 1.000000e+00 : f32
    %34 = vector.broadcast %cst_19 : f32 to vector<8x32xf32>
    %35 = arith.addf %34, %33 : vector<8x32xf32>
    %36 = arith.divf %34, %35 : vector<8x32xf32>
    %37 = vector.extract_strided_slice %24 {offsets = [0, 64], sizes = [8, 32], strides = [1, 1]} : vector<8x128xf32> to vector<8x32xf32>
    %38 = math.tanh %37 : vector<8x32xf32>
    %39 = vector.extract_strided_slice %24 {offsets = [0, 96], sizes = [8, 32], strides = [1, 1]} : vector<8x128xf32> to vector<8x32xf32>
    %40 = arith.negf %39 : vector<8x32xf32>
    %41 = math.exp %40 : vector<8x32xf32>
    %cst_20 = arith.constant 1.000000e+00 : f32
    %42 = vector.broadcast %cst_20 : f32 to vector<8x32xf32>
    %43 = arith.addf %42, %41 : vector<8x32xf32>
    %44 = arith.divf %42, %43 : vector<8x32xf32>
    %45 = arith.mulf %36, %17 : vector<8x32xf32>
    %46 = arith.mulf %30, %38 : vector<8x32xf32>
    %47 = arith.addf %45, %46 : vector<8x32xf32>
    %48 = math.tanh %47 : vector<8x32xf32>
    %49 = arith.mulf %44, %48 : vector<8x32xf32>
    %50 = vector.extract_strided_slice %19 {offsets = [0, 128], sizes = [8, 128], strides = [1, 1]} : vector<8x256xf32> to vector<8x128xf32>
    %51 = vector.extract_strided_slice %21 {offsets = [0, 128], sizes = [8, 128], strides = [1, 1]} : vector<8x256xf32> to vector<8x128xf32>
    %52 = arith.addf %50, %51 : vector<8x128xf32>
    %53 = vector.extract_strided_slice %52 {offsets = [0, 0], sizes = [8, 32], strides = [1, 1]} : vector<8x128xf32> to vector<8x32xf32>
    %54 = arith.negf %53 : vector<8x32xf32>
    %55 = math.exp %54 : vector<8x32xf32>
    %cst_21 = arith.constant 1.000000e+00 : f32
    %56 = vector.broadcast %cst_21 : f32 to vector<8x32xf32>
    %57 = arith.addf %56, %55 : vector<8x32xf32>
    %58 = arith.divf %56, %57 : vector<8x32xf32>
    %59 = vector.extract_strided_slice %52 {offsets = [0, 32], sizes = [8, 32], strides = [1, 1]} : vector<8x128xf32> to vector<8x32xf32>
    %60 = arith.negf %59 : vector<8x32xf32>
    %61 = math.exp %60 : vector<8x32xf32>
    %cst_22 = arith.constant 1.000000e+00 : f32
    %62 = vector.broadcast %cst_22 : f32 to vector<8x32xf32>
    %63 = arith.addf %62, %61 : vector<8x32xf32>
    %64 = arith.divf %62, %63 : vector<8x32xf32>
    %65 = vector.extract_strided_slice %52 {offsets = [0, 64], sizes = [8, 32], strides = [1, 1]} : vector<8x128xf32> to vector<8x32xf32>
    %66 = math.tanh %65 : vector<8x32xf32>
    %67 = vector.extract_strided_slice %52 {offsets = [0, 96], sizes = [8, 32], strides = [1, 1]} : vector<8x128xf32> to vector<8x32xf32>
    %68 = arith.negf %67 : vector<8x32xf32>
    %69 = math.exp %68 : vector<8x32xf32>
    %cst_23 = arith.constant 1.000000e+00 : f32
    %70 = vector.broadcast %cst_23 : f32 to vector<8x32xf32>
    %71 = arith.addf %70, %69 : vector<8x32xf32>
    %72 = arith.divf %70, %71 : vector<8x32xf32>
    %73 = arith.mulf %64, %17 : vector<8x32xf32>
    %74 = arith.mulf %58, %66 : vector<8x32xf32>
    %75 = arith.addf %73, %74 : vector<8x32xf32>
    %76 = math.tanh %75 : vector<8x32xf32>
    %77 = arith.mulf %72, %76 : vector<8x32xf32>
    %78 = vector.extract_strided_slice %16 {offsets = [8, 0], sizes = [8, 256], strides = [1, 1]} : vector<64x256xf32> to vector<8x256xf32>
    %79 = vector.extract_strided_slice %16 {offsets = [48, 0], sizes = [8, 256], strides = [1, 1]} : vector<64x256xf32> to vector<8x256xf32>
    %80 = tpu.concatenate %49, %77 in 1 : vector<8x32xf32>, vector<8x32xf32> -> vector<8x64xf32>
    %cst_24 = arith.constant dense<0.000000e+00> : vector<8x256xf32>
    %81 = tpu.matmul %80, %2, %cst_24 {dimension_numbers = #tpu.dot_dimension_numbers<[1], [0], [0], [1], [0, 0, 1, 1], [], []>} : vector<8x64xf32>, vector<64x256xf32>, vector<8x256xf32> -> vector<8x256xf32>
    %82 = vector.extract_strided_slice %78 {offsets = [0, 0], sizes = [8, 128], strides = [1, 1]} : vector<8x256xf32> to vector<8x128xf32>
    %83 = vector.extract_strided_slice %81 {offsets = [0, 0], sizes = [8, 128], strides = [1, 1]} : vector<8x256xf32> to vector<8x128xf32>
    %84 = arith.addf %82, %83 : vector<8x128xf32>
    %85 = vector.extract_strided_slice %84 {offsets = [0, 0], sizes = [8, 32], strides = [1, 1]} : vector<8x128xf32> to vector<8x32xf32>
    %86 = arith.negf %85 : vector<8x32xf32>
    %87 = math.exp %86 : vector<8x32xf32>
    %cst_25 = arith.constant 1.000000e+00 : f32
    %88 = vector.broadcast %cst_25 : f32 to vector<8x32xf32>
    %89 = arith.addf %88, %87 : vector<8x32xf32>
    %90 = arith.divf %88, %89 : vector<8x32xf32>
    %91 = vector.extract_strided_slice %84 {offsets = [0, 32], sizes = [8, 32], strides = [1, 1]} : vector<8x128xf32> to vector<8x32xf32>
    %92 = arith.negf %91 : vector<8x32xf32>
    %93 = math.exp %92 : vector<8x32xf32>
    %cst_26 = arith.constant 1.000000e+00 : f32
    %94 = vector.broadcast %cst_26 : f32 to vector<8x32xf32>
    %95 = arith.addf %94, %93 : vector<8x32xf32>
    %96 = arith.divf %94, %95 : vector<8x32xf32>
    %97 = vector.extract_strided_slice %84 {offsets = [0, 64], sizes = [8, 32], strides = [1, 1]} : vector<8x128xf32> to vector<8x32xf32>
    %98 = math.tanh %97 : vector<8x32xf32>
    %99 = vector.extract_strided_slice %84 {offsets = [0, 96], sizes = [8, 32], strides = [1, 1]} : vector<8x128xf32> to vector<8x32xf32>
    %100 = arith.negf %99 : vector<8x32xf32>
    %101 = math.exp %100 : vector<8x32xf32>
    %cst_27 = arith.constant 1.000000e+00 : f32
    %102 = vector.broadcast %cst_27 : f32 to vector<8x32xf32>
    %103 = arith.addf %102, %101 : vector<8x32xf32>
    %104 = arith.divf %102, %103 : vector<8x32xf32>
    %105 = arith.mulf %96, %47 : vector<8x32xf32>
    %106 = arith.mulf %90, %98 : vector<8x32xf32>
    %107 = arith.addf %105, %106 : vector<8x32xf32>
    %108 = math.tanh %107 : vector<8x32xf32>
    %109 = arith.mulf %104, %108 : vector<8x32xf32>
    %110 = vector.extract_strided_slice %79 {offsets = [0, 128], sizes = [8, 128], strides = [1, 1]} : vector<8x256xf32> to vector<8x128xf32>
    %111 = vector.extract_strided_slice %81 {offsets = [0, 128], sizes = [8, 128], strides = [1, 1]} : vector<8x256xf32> to vector<8x128xf32>
    %112 = arith.addf %110, %111 : vector<8x128xf32>
    %113 = vector.extract_strided_slice %112 {offsets = [0, 0], sizes = [8, 32], strides = [1, 1]} : vector<8x128xf32> to vector<8x32xf32>
    %114 = arith.negf %113 : vector<8x32xf32>
    %115 = math.exp %114 : vector<8x32xf32>
    %cst_28 = arith.constant 1.000000e+00 : f32
    %116 = vector.broadcast %cst_28 : f32 to vector<8x32xf32>
    %117 = arith.addf %116, %115 : vector<8x32xf32>
    %118 = arith.divf %116, %117 : vector<8x32xf32>
    %119 = vector.extract_strided_slice %112 {offsets = [0, 32], sizes = [8, 32], strides = [1, 1]} : vector<8x128xf32> to vector<8x32xf32>
    %120 = arith.negf %119 : vector<8x32xf32>
    %121 = math.exp %120 : vector<8x32xf32>
    %cst_29 = arith.constant 1.000000e+00 : f32
    %122 = vector.broadcast %cst_29 : f32 to vector<8x32xf32>
    %123 = arith.addf %122, %121 : vector<8x32xf32>
    %124 = arith.divf %122, %123 : vector<8x32xf32>
    %125 = vector.extract_strided_slice %112 {offsets = [0, 64], sizes = [8, 32], strides = [1, 1]} : vector<8x128xf32> to vector<8x32xf32>
    %126 = math.tanh %125 : vector<8x32xf32>
    %127 = vector.extract_strided_slice %112 {offsets = [0, 96], sizes = [8, 32], strides = [1, 1]} : vector<8x128xf32> to vector<8x32xf32>
    %128 = arith.negf %127 : vector<8x32xf32>
    %129 = math.exp %128 : vector<8x32xf32>
    %cst_30 = arith.constant 1.000000e+00 : f32
    %130 = vector.broadcast %cst_30 : f32 to vector<8x32xf32>
    %131 = arith.addf %130, %129 : vector<8x32xf32>
    %132 = arith.divf %130, %131 : vector<8x32xf32>
    %133 = arith.mulf %124, %75 : vector<8x32xf32>
    %134 = arith.mulf %118, %126 : vector<8x32xf32>
    %135 = arith.addf %133, %134 : vector<8x32xf32>
    %136 = math.tanh %135 : vector<8x32xf32>
    %137 = arith.mulf %132, %136 : vector<8x32xf32>
    %138 = vector.extract_strided_slice %16 {offsets = [16, 0], sizes = [8, 256], strides = [1, 1]} : vector<64x256xf32> to vector<8x256xf32>
    %139 = vector.extract_strided_slice %16 {offsets = [40, 0], sizes = [8, 256], strides = [1, 1]} : vector<64x256xf32> to vector<8x256xf32>
    %140 = tpu.concatenate %109, %137 in 1 : vector<8x32xf32>, vector<8x32xf32> -> vector<8x64xf32>
    %cst_31 = arith.constant dense<0.000000e+00> : vector<8x256xf32>
    %141 = tpu.matmul %140, %2, %cst_31 {dimension_numbers = #tpu.dot_dimension_numbers<[1], [0], [0], [1], [0, 0, 1, 1], [], []>} : vector<8x64xf32>, vector<64x256xf32>, vector<8x256xf32> -> vector<8x256xf32>
    %142 = vector.extract_strided_slice %138 {offsets = [0, 0], sizes = [8, 128], strides = [1, 1]} : vector<8x256xf32> to vector<8x128xf32>
    %143 = vector.extract_strided_slice %141 {offsets = [0, 0], sizes = [8, 128], strides = [1, 1]} : vector<8x256xf32> to vector<8x128xf32>
    %144 = arith.addf %142, %143 : vector<8x128xf32>
    %145 = vector.extract_strided_slice %144 {offsets = [0, 0], sizes = [8, 32], strides = [1, 1]} : vector<8x128xf32> to vector<8x32xf32>
    %146 = arith.negf %145 : vector<8x32xf32>
    %147 = math.exp %146 : vector<8x32xf32>
    %cst_32 = arith.constant 1.000000e+00 : f32
    %148 = vector.broadcast %cst_32 : f32 to vector<8x32xf32>
    %149 = arith.addf %148, %147 : vector<8x32xf32>
    %150 = arith.divf %148, %149 : vector<8x32xf32>
    %151 = vector.extract_strided_slice %144 {offsets = [0, 32], sizes = [8, 32], strides = [1, 1]} : vector<8x128xf32> to vector<8x32xf32>
    %152 = arith.negf %151 : vector<8x32xf32>
    %153 = math.exp %152 : vector<8x32xf32>
    %cst_33 = arith.constant 1.000000e+00 : f32
    %154 = vector.broadcast %cst_33 : f32 to vector<8x32xf32>
    %155 = arith.addf %154, %153 : vector<8x32xf32>
    %156 = arith.divf %154, %155 : vector<8x32xf32>
    %157 = vector.extract_strided_slice %144 {offsets = [0, 64], sizes = [8, 32], strides = [1, 1]} : vector<8x128xf32> to vector<8x32xf32>
    %158 = math.tanh %157 : vector<8x32xf32>
    %159 = vector.extract_strided_slice %144 {offsets = [0, 96], sizes = [8, 32], strides = [1, 1]} : vector<8x128xf32> to vector<8x32xf32>
    %160 = arith.negf %159 : vector<8x32xf32>
    %161 = math.exp %160 : vector<8x32xf32>
    %cst_34 = arith.constant 1.000000e+00 : f32
    %162 = vector.broadcast %cst_34 : f32 to vector<8x32xf32>
    %163 = arith.addf %162, %161 : vector<8x32xf32>
    %164 = arith.divf %162, %163 : vector<8x32xf32>
    %165 = arith.mulf %156, %107 : vector<8x32xf32>
    %166 = arith.mulf %150, %158 : vector<8x32xf32>
    %167 = arith.addf %165, %166 : vector<8x32xf32>
    %168 = math.tanh %167 : vector<8x32xf32>
    %169 = arith.mulf %164, %168 : vector<8x32xf32>
    %170 = vector.extract_strided_slice %139 {offsets = [0, 128], sizes = [8, 128], strides = [1, 1]} : vector<8x256xf32> to vector<8x128xf32>
    %171 = vector.extract_strided_slice %141 {offsets = [0, 128], sizes = [8, 128], strides = [1, 1]} : vector<8x256xf32> to vector<8x128xf32>
    %172 = arith.addf %170, %171 : vector<8x128xf32>
    %173 = vector.extract_strided_slice %172 {offsets = [0, 0], sizes = [8, 32], strides = [1, 1]} : vector<8x128xf32> to vector<8x32xf32>
    %174 = arith.negf %173 : vector<8x32xf32>
    %175 = math.exp %174 : vector<8x32xf32>
    %cst_35 = arith.constant 1.000000e+00 : f32
    %176 = vector.broadcast %cst_35 : f32 to vector<8x32xf32>
    %177 = arith.addf %176, %175 : vector<8x32xf32>
    %178 = arith.divf %176, %177 : vector<8x32xf32>
    %179 = vector.extract_strided_slice %172 {offsets = [0, 32], sizes = [8, 32], strides = [1, 1]} : vector<8x128xf32> to vector<8x32xf32>
    %180 = arith.negf %179 : vector<8x32xf32>
    %181 = math.exp %180 : vector<8x32xf32>
    %cst_36 = arith.constant 1.000000e+00 : f32
    %182 = vector.broadcast %cst_36 : f32 to vector<8x32xf32>
    %183 = arith.addf %182, %181 : vector<8x32xf32>
    %184 = arith.divf %182, %183 : vector<8x32xf32>
    %185 = vector.extract_strided_slice %172 {offsets = [0, 64], sizes = [8, 32], strides = [1, 1]} : vector<8x128xf32> to vector<8x32xf32>
    %186 = math.tanh %185 : vector<8x32xf32>
    %187 = vector.extract_strided_slice %172 {offsets = [0, 96], sizes = [8, 32], strides = [1, 1]} : vector<8x128xf32> to vector<8x32xf32>
    %188 = arith.negf %187 : vector<8x32xf32>
    %189 = math.exp %188 : vector<8x32xf32>
    %cst_37 = arith.constant 1.000000e+00 : f32
    %190 = vector.broadcast %cst_37 : f32 to vector<8x32xf32>
    %191 = arith.addf %190, %189 : vector<8x32xf32>
    %192 = arith.divf %190, %191 : vector<8x32xf32>
    %193 = arith.mulf %184, %135 : vector<8x32xf32>
    %194 = arith.mulf %178, %186 : vector<8x32xf32>
    %195 = arith.addf %193, %194 : vector<8x32xf32>
    %196 = math.tanh %195 : vector<8x32xf32>
    %197 = arith.mulf %192, %196 : vector<8x32xf32>
    %198 = vector.extract_strided_slice %16 {offsets = [24, 0], sizes = [8, 256], strides = [1, 1]} : vector<64x256xf32> to vector<8x256xf32>
    %199 = vector.extract_strided_slice %16 {offsets = [32, 0], sizes = [8, 256], strides = [1, 1]} : vector<64x256xf32> to vector<8x256xf32>
    %200 = tpu.concatenate %169, %197 in 1 : vector<8x32xf32>, vector<8x32xf32> -> vector<8x64xf32>
    %cst_38 = arith.constant dense<0.000000e+00> : vector<8x256xf32>
    %201 = tpu.matmul %200, %2, %cst_38 {dimension_numbers = #tpu.dot_dimension_numbers<[1], [0], [0], [1], [0, 0, 1, 1], [], []>} : vector<8x64xf32>, vector<64x256xf32>, vector<8x256xf32> -> vector<8x256xf32>
    %202 = vector.extract_strided_slice %198 {offsets = [0, 0], sizes = [8, 128], strides = [1, 1]} : vector<8x256xf32> to vector<8x128xf32>
    %203 = vector.extract_strided_slice %201 {offsets = [0, 0], sizes = [8, 128], strides = [1, 1]} : vector<8x256xf32> to vector<8x128xf32>
    %204 = arith.addf %202, %203 : vector<8x128xf32>
    %205 = vector.extract_strided_slice %204 {offsets = [0, 0], sizes = [8, 32], strides = [1, 1]} : vector<8x128xf32> to vector<8x32xf32>
    %206 = arith.negf %205 : vector<8x32xf32>
    %207 = math.exp %206 : vector<8x32xf32>
    %cst_39 = arith.constant 1.000000e+00 : f32
    %208 = vector.broadcast %cst_39 : f32 to vector<8x32xf32>
    %209 = arith.addf %208, %207 : vector<8x32xf32>
    %210 = arith.divf %208, %209 : vector<8x32xf32>
    %211 = vector.extract_strided_slice %204 {offsets = [0, 32], sizes = [8, 32], strides = [1, 1]} : vector<8x128xf32> to vector<8x32xf32>
    %212 = arith.negf %211 : vector<8x32xf32>
    %213 = math.exp %212 : vector<8x32xf32>
    %cst_40 = arith.constant 1.000000e+00 : f32
    %214 = vector.broadcast %cst_40 : f32 to vector<8x32xf32>
    %215 = arith.addf %214, %213 : vector<8x32xf32>
    %216 = arith.divf %214, %215 : vector<8x32xf32>
    %217 = vector.extract_strided_slice %204 {offsets = [0, 64], sizes = [8, 32], strides = [1, 1]} : vector<8x128xf32> to vector<8x32xf32>
    %218 = math.tanh %217 : vector<8x32xf32>
    %219 = vector.extract_strided_slice %204 {offsets = [0, 96], sizes = [8, 32], strides = [1, 1]} : vector<8x128xf32> to vector<8x32xf32>
    %220 = arith.negf %219 : vector<8x32xf32>
    %221 = math.exp %220 : vector<8x32xf32>
    %cst_41 = arith.constant 1.000000e+00 : f32
    %222 = vector.broadcast %cst_41 : f32 to vector<8x32xf32>
    %223 = arith.addf %222, %221 : vector<8x32xf32>
    %224 = arith.divf %222, %223 : vector<8x32xf32>
    %225 = arith.mulf %216, %167 : vector<8x32xf32>
    %226 = arith.mulf %210, %218 : vector<8x32xf32>
    %227 = arith.addf %225, %226 : vector<8x32xf32>
    %228 = math.tanh %227 : vector<8x32xf32>
    %229 = arith.mulf %224, %228 : vector<8x32xf32>
    %230 = vector.extract_strided_slice %199 {offsets = [0, 128], sizes = [8, 128], strides = [1, 1]} : vector<8x256xf32> to vector<8x128xf32>
    %231 = vector.extract_strided_slice %201 {offsets = [0, 128], sizes = [8, 128], strides = [1, 1]} : vector<8x256xf32> to vector<8x128xf32>
    %232 = arith.addf %230, %231 : vector<8x128xf32>
    %233 = vector.extract_strided_slice %232 {offsets = [0, 0], sizes = [8, 32], strides = [1, 1]} : vector<8x128xf32> to vector<8x32xf32>
    %234 = arith.negf %233 : vector<8x32xf32>
    %235 = math.exp %234 : vector<8x32xf32>
    %cst_42 = arith.constant 1.000000e+00 : f32
    %236 = vector.broadcast %cst_42 : f32 to vector<8x32xf32>
    %237 = arith.addf %236, %235 : vector<8x32xf32>
    %238 = arith.divf %236, %237 : vector<8x32xf32>
    %239 = vector.extract_strided_slice %232 {offsets = [0, 32], sizes = [8, 32], strides = [1, 1]} : vector<8x128xf32> to vector<8x32xf32>
    %240 = arith.negf %239 : vector<8x32xf32>
    %241 = math.exp %240 : vector<8x32xf32>
    %cst_43 = arith.constant 1.000000e+00 : f32
    %242 = vector.broadcast %cst_43 : f32 to vector<8x32xf32>
    %243 = arith.addf %242, %241 : vector<8x32xf32>
    %244 = arith.divf %242, %243 : vector<8x32xf32>
    %245 = vector.extract_strided_slice %232 {offsets = [0, 64], sizes = [8, 32], strides = [1, 1]} : vector<8x128xf32> to vector<8x32xf32>
    %246 = math.tanh %245 : vector<8x32xf32>
    %247 = vector.extract_strided_slice %232 {offsets = [0, 96], sizes = [8, 32], strides = [1, 1]} : vector<8x128xf32> to vector<8x32xf32>
    %248 = arith.negf %247 : vector<8x32xf32>
    %249 = math.exp %248 : vector<8x32xf32>
    %cst_44 = arith.constant 1.000000e+00 : f32
    %250 = vector.broadcast %cst_44 : f32 to vector<8x32xf32>
    %251 = arith.addf %250, %249 : vector<8x32xf32>
    %252 = arith.divf %250, %251 : vector<8x32xf32>
    %253 = arith.mulf %244, %195 : vector<8x32xf32>
    %254 = arith.mulf %238, %246 : vector<8x32xf32>
    %255 = arith.addf %253, %254 : vector<8x32xf32>
    %256 = math.tanh %255 : vector<8x32xf32>
    %257 = arith.mulf %252, %256 : vector<8x32xf32>
    %258 = vector.extract_strided_slice %16 {offsets = [32, 0], sizes = [8, 256], strides = [1, 1]} : vector<64x256xf32> to vector<8x256xf32>
    %259 = vector.extract_strided_slice %16 {offsets = [24, 0], sizes = [8, 256], strides = [1, 1]} : vector<64x256xf32> to vector<8x256xf32>
    %260 = tpu.concatenate %229, %257 in 1 : vector<8x32xf32>, vector<8x32xf32> -> vector<8x64xf32>
    %cst_45 = arith.constant dense<0.000000e+00> : vector<8x256xf32>
    %261 = tpu.matmul %260, %2, %cst_45 {dimension_numbers = #tpu.dot_dimension_numbers<[1], [0], [0], [1], [0, 0, 1, 1], [], []>} : vector<8x64xf32>, vector<64x256xf32>, vector<8x256xf32> -> vector<8x256xf32>
    %262 = vector.extract_strided_slice %258 {offsets = [0, 0], sizes = [8, 128], strides = [1, 1]} : vector<8x256xf32> to vector<8x128xf32>
    %263 = vector.extract_strided_slice %261 {offsets = [0, 0], sizes = [8, 128], strides = [1, 1]} : vector<8x256xf32> to vector<8x128xf32>
    %264 = arith.addf %262, %263 : vector<8x128xf32>
    %265 = vector.extract_strided_slice %264 {offsets = [0, 0], sizes = [8, 32], strides = [1, 1]} : vector<8x128xf32> to vector<8x32xf32>
    %266 = arith.negf %265 : vector<8x32xf32>
    %267 = math.exp %266 : vector<8x32xf32>
    %cst_46 = arith.constant 1.000000e+00 : f32
    %268 = vector.broadcast %cst_46 : f32 to vector<8x32xf32>
    %269 = arith.addf %268, %267 : vector<8x32xf32>
    %270 = arith.divf %268, %269 : vector<8x32xf32>
    %271 = vector.extract_strided_slice %264 {offsets = [0, 32], sizes = [8, 32], strides = [1, 1]} : vector<8x128xf32> to vector<8x32xf32>
    %272 = arith.negf %271 : vector<8x32xf32>
    %273 = math.exp %272 : vector<8x32xf32>
    %cst_47 = arith.constant 1.000000e+00 : f32
    %274 = vector.broadcast %cst_47 : f32 to vector<8x32xf32>
    %275 = arith.addf %274, %273 : vector<8x32xf32>
    %276 = arith.divf %274, %275 : vector<8x32xf32>
    %277 = vector.extract_strided_slice %264 {offsets = [0, 64], sizes = [8, 32], strides = [1, 1]} : vector<8x128xf32> to vector<8x32xf32>
    %278 = math.tanh %277 : vector<8x32xf32>
    %279 = vector.extract_strided_slice %264 {offsets = [0, 96], sizes = [8, 32], strides = [1, 1]} : vector<8x128xf32> to vector<8x32xf32>
    %280 = arith.negf %279 : vector<8x32xf32>
    %281 = math.exp %280 : vector<8x32xf32>
    %cst_48 = arith.constant 1.000000e+00 : f32
    %282 = vector.broadcast %cst_48 : f32 to vector<8x32xf32>
    %283 = arith.addf %282, %281 : vector<8x32xf32>
    %284 = arith.divf %282, %283 : vector<8x32xf32>
    %285 = arith.mulf %276, %227 : vector<8x32xf32>
    %286 = arith.mulf %270, %278 : vector<8x32xf32>
    %287 = arith.addf %285, %286 : vector<8x32xf32>
    %288 = math.tanh %287 : vector<8x32xf32>
    %289 = arith.mulf %284, %288 : vector<8x32xf32>
    %290 = vector.extract_strided_slice %259 {offsets = [0, 128], sizes = [8, 128], strides = [1, 1]} : vector<8x256xf32> to vector<8x128xf32>
    %291 = vector.extract_strided_slice %261 {offsets = [0, 128], sizes = [8, 128], strides = [1, 1]} : vector<8x256xf32> to vector<8x128xf32>
    %292 = arith.addf %290, %291 : vector<8x128xf32>
    %293 = vector.extract_strided_slice %292 {offsets = [0, 0], sizes = [8, 32], strides = [1, 1]} : vector<8x128xf32> to vector<8x32xf32>
    %294 = arith.negf %293 : vector<8x32xf32>
    %295 = math.exp %294 : vector<8x32xf32>
    %cst_49 = arith.constant 1.000000e+00 : f32
    %296 = vector.broadcast %cst_49 : f32 to vector<8x32xf32>
    %297 = arith.addf %296, %295 : vector<8x32xf32>
    %298 = arith.divf %296, %297 : vector<8x32xf32>
    %299 = vector.extract_strided_slice %292 {offsets = [0, 32], sizes = [8, 32], strides = [1, 1]} : vector<8x128xf32> to vector<8x32xf32>
    %300 = arith.negf %299 : vector<8x32xf32>
    %301 = math.exp %300 : vector<8x32xf32>
    %cst_50 = arith.constant 1.000000e+00 : f32
    %302 = vector.broadcast %cst_50 : f32 to vector<8x32xf32>
    %303 = arith.addf %302, %301 : vector<8x32xf32>
    %304 = arith.divf %302, %303 : vector<8x32xf32>
    %305 = vector.extract_strided_slice %292 {offsets = [0, 64], sizes = [8, 32], strides = [1, 1]} : vector<8x128xf32> to vector<8x32xf32>
    %306 = math.tanh %305 : vector<8x32xf32>
    %307 = vector.extract_strided_slice %292 {offsets = [0, 96], sizes = [8, 32], strides = [1, 1]} : vector<8x128xf32> to vector<8x32xf32>
    %308 = arith.negf %307 : vector<8x32xf32>
    %309 = math.exp %308 : vector<8x32xf32>
    %cst_51 = arith.constant 1.000000e+00 : f32
    %310 = vector.broadcast %cst_51 : f32 to vector<8x32xf32>
    %311 = arith.addf %310, %309 : vector<8x32xf32>
    %312 = arith.divf %310, %311 : vector<8x32xf32>
    %313 = arith.mulf %304, %255 : vector<8x32xf32>
    %314 = arith.mulf %298, %306 : vector<8x32xf32>
    %315 = arith.addf %313, %314 : vector<8x32xf32>
    %316 = math.tanh %315 : vector<8x32xf32>
    %317 = arith.mulf %312, %316 : vector<8x32xf32>
    %318 = vector.extract_strided_slice %16 {offsets = [40, 0], sizes = [8, 256], strides = [1, 1]} : vector<64x256xf32> to vector<8x256xf32>
    %319 = vector.extract_strided_slice %16 {offsets = [16, 0], sizes = [8, 256], strides = [1, 1]} : vector<64x256xf32> to vector<8x256xf32>
    %320 = tpu.concatenate %289, %317 in 1 : vector<8x32xf32>, vector<8x32xf32> -> vector<8x64xf32>
    %cst_52 = arith.constant dense<0.000000e+00> : vector<8x256xf32>
    %321 = tpu.matmul %320, %2, %cst_52 {dimension_numbers = #tpu.dot_dimension_numbers<[1], [0], [0], [1], [0, 0, 1, 1], [], []>} : vector<8x64xf32>, vector<64x256xf32>, vector<8x256xf32> -> vector<8x256xf32>
    %322 = vector.extract_strided_slice %318 {offsets = [0, 0], sizes = [8, 128], strides = [1, 1]} : vector<8x256xf32> to vector<8x128xf32>
    %323 = vector.extract_strided_slice %321 {offsets = [0, 0], sizes = [8, 128], strides = [1, 1]} : vector<8x256xf32> to vector<8x128xf32>
    %324 = arith.addf %322, %323 : vector<8x128xf32>
    %325 = vector.extract_strided_slice %324 {offsets = [0, 0], sizes = [8, 32], strides = [1, 1]} : vector<8x128xf32> to vector<8x32xf32>
    %326 = arith.negf %325 : vector<8x32xf32>
    %327 = math.exp %326 : vector<8x32xf32>
    %cst_53 = arith.constant 1.000000e+00 : f32
    %328 = vector.broadcast %cst_53 : f32 to vector<8x32xf32>
    %329 = arith.addf %328, %327 : vector<8x32xf32>
    %330 = arith.divf %328, %329 : vector<8x32xf32>
    %331 = vector.extract_strided_slice %324 {offsets = [0, 32], sizes = [8, 32], strides = [1, 1]} : vector<8x128xf32> to vector<8x32xf32>
    %332 = arith.negf %331 : vector<8x32xf32>
    %333 = math.exp %332 : vector<8x32xf32>
    %cst_54 = arith.constant 1.000000e+00 : f32
    %334 = vector.broadcast %cst_54 : f32 to vector<8x32xf32>
    %335 = arith.addf %334, %333 : vector<8x32xf32>
    %336 = arith.divf %334, %335 : vector<8x32xf32>
    %337 = vector.extract_strided_slice %324 {offsets = [0, 64], sizes = [8, 32], strides = [1, 1]} : vector<8x128xf32> to vector<8x32xf32>
    %338 = math.tanh %337 : vector<8x32xf32>
    %339 = vector.extract_strided_slice %324 {offsets = [0, 96], sizes = [8, 32], strides = [1, 1]} : vector<8x128xf32> to vector<8x32xf32>
    %340 = arith.negf %339 : vector<8x32xf32>
    %341 = math.exp %340 : vector<8x32xf32>
    %cst_55 = arith.constant 1.000000e+00 : f32
    %342 = vector.broadcast %cst_55 : f32 to vector<8x32xf32>
    %343 = arith.addf %342, %341 : vector<8x32xf32>
    %344 = arith.divf %342, %343 : vector<8x32xf32>
    %345 = arith.mulf %336, %287 : vector<8x32xf32>
    %346 = arith.mulf %330, %338 : vector<8x32xf32>
    %347 = arith.addf %345, %346 : vector<8x32xf32>
    %348 = math.tanh %347 : vector<8x32xf32>
    %349 = arith.mulf %344, %348 : vector<8x32xf32>
    %350 = vector.extract_strided_slice %319 {offsets = [0, 128], sizes = [8, 128], strides = [1, 1]} : vector<8x256xf32> to vector<8x128xf32>
    %351 = vector.extract_strided_slice %321 {offsets = [0, 128], sizes = [8, 128], strides = [1, 1]} : vector<8x256xf32> to vector<8x128xf32>
    %352 = arith.addf %350, %351 : vector<8x128xf32>
    %353 = vector.extract_strided_slice %352 {offsets = [0, 0], sizes = [8, 32], strides = [1, 1]} : vector<8x128xf32> to vector<8x32xf32>
    %354 = arith.negf %353 : vector<8x32xf32>
    %355 = math.exp %354 : vector<8x32xf32>
    %cst_56 = arith.constant 1.000000e+00 : f32
    %356 = vector.broadcast %cst_56 : f32 to vector<8x32xf32>
    %357 = arith.addf %356, %355 : vector<8x32xf32>
    %358 = arith.divf %356, %357 : vector<8x32xf32>
    %359 = vector.extract_strided_slice %352 {offsets = [0, 32], sizes = [8, 32], strides = [1, 1]} : vector<8x128xf32> to vector<8x32xf32>
    %360 = arith.negf %359 : vector<8x32xf32>
    %361 = math.exp %360 : vector<8x32xf32>
    %cst_57 = arith.constant 1.000000e+00 : f32
    %362 = vector.broadcast %cst_57 : f32 to vector<8x32xf32>
    %363 = arith.addf %362, %361 : vector<8x32xf32>
    %364 = arith.divf %362, %363 : vector<8x32xf32>
    %365 = vector.extract_strided_slice %352 {offsets = [0, 64], sizes = [8, 32], strides = [1, 1]} : vector<8x128xf32> to vector<8x32xf32>
    %366 = math.tanh %365 : vector<8x32xf32>
    %367 = vector.extract_strided_slice %352 {offsets = [0, 96], sizes = [8, 32], strides = [1, 1]} : vector<8x128xf32> to vector<8x32xf32>
    %368 = arith.negf %367 : vector<8x32xf32>
    %369 = math.exp %368 : vector<8x32xf32>
    %cst_58 = arith.constant 1.000000e+00 : f32
    %370 = vector.broadcast %cst_58 : f32 to vector<8x32xf32>
    %371 = arith.addf %370, %369 : vector<8x32xf32>
    %372 = arith.divf %370, %371 : vector<8x32xf32>
    %373 = arith.mulf %364, %315 : vector<8x32xf32>
    %374 = arith.mulf %358, %366 : vector<8x32xf32>
    %375 = arith.addf %373, %374 : vector<8x32xf32>
    %376 = math.tanh %375 : vector<8x32xf32>
    %377 = arith.mulf %372, %376 : vector<8x32xf32>
    %378 = vector.extract_strided_slice %16 {offsets = [48, 0], sizes = [8, 256], strides = [1, 1]} : vector<64x256xf32> to vector<8x256xf32>
    %379 = vector.extract_strided_slice %16 {offsets = [8, 0], sizes = [8, 256], strides = [1, 1]} : vector<64x256xf32> to vector<8x256xf32>
    %380 = tpu.concatenate %349, %377 in 1 : vector<8x32xf32>, vector<8x32xf32> -> vector<8x64xf32>
    %cst_59 = arith.constant dense<0.000000e+00> : vector<8x256xf32>
    %381 = tpu.matmul %380, %2, %cst_59 {dimension_numbers = #tpu.dot_dimension_numbers<[1], [0], [0], [1], [0, 0, 1, 1], [], []>} : vector<8x64xf32>, vector<64x256xf32>, vector<8x256xf32> -> vector<8x256xf32>
    %382 = vector.extract_strided_slice %378 {offsets = [0, 0], sizes = [8, 128], strides = [1, 1]} : vector<8x256xf32> to vector<8x128xf32>
    %383 = vector.extract_strided_slice %381 {offsets = [0, 0], sizes = [8, 128], strides = [1, 1]} : vector<8x256xf32> to vector<8x128xf32>
    %384 = arith.addf %382, %383 : vector<8x128xf32>
    %385 = vector.extract_strided_slice %384 {offsets = [0, 0], sizes = [8, 32], strides = [1, 1]} : vector<8x128xf32> to vector<8x32xf32>
    %386 = arith.negf %385 : vector<8x32xf32>
    %387 = math.exp %386 : vector<8x32xf32>
    %cst_60 = arith.constant 1.000000e+00 : f32
    %388 = vector.broadcast %cst_60 : f32 to vector<8x32xf32>
    %389 = arith.addf %388, %387 : vector<8x32xf32>
    %390 = arith.divf %388, %389 : vector<8x32xf32>
    %391 = vector.extract_strided_slice %384 {offsets = [0, 32], sizes = [8, 32], strides = [1, 1]} : vector<8x128xf32> to vector<8x32xf32>
    %392 = arith.negf %391 : vector<8x32xf32>
    %393 = math.exp %392 : vector<8x32xf32>
    %cst_61 = arith.constant 1.000000e+00 : f32
    %394 = vector.broadcast %cst_61 : f32 to vector<8x32xf32>
    %395 = arith.addf %394, %393 : vector<8x32xf32>
    %396 = arith.divf %394, %395 : vector<8x32xf32>
    %397 = vector.extract_strided_slice %384 {offsets = [0, 64], sizes = [8, 32], strides = [1, 1]} : vector<8x128xf32> to vector<8x32xf32>
    %398 = math.tanh %397 : vector<8x32xf32>
    %399 = vector.extract_strided_slice %384 {offsets = [0, 96], sizes = [8, 32], strides = [1, 1]} : vector<8x128xf32> to vector<8x32xf32>
    %400 = arith.negf %399 : vector<8x32xf32>
    %401 = math.exp %400 : vector<8x32xf32>
    %cst_62 = arith.constant 1.000000e+00 : f32
    %402 = vector.broadcast %cst_62 : f32 to vector<8x32xf32>
    %403 = arith.addf %402, %401 : vector<8x32xf32>
    %404 = arith.divf %402, %403 : vector<8x32xf32>
    %405 = arith.mulf %396, %347 : vector<8x32xf32>
    %406 = arith.mulf %390, %398 : vector<8x32xf32>
    %407 = arith.addf %405, %406 : vector<8x32xf32>
    %408 = math.tanh %407 : vector<8x32xf32>
    %409 = arith.mulf %404, %408 : vector<8x32xf32>
    %410 = vector.extract_strided_slice %379 {offsets = [0, 128], sizes = [8, 128], strides = [1, 1]} : vector<8x256xf32> to vector<8x128xf32>
    %411 = vector.extract_strided_slice %381 {offsets = [0, 128], sizes = [8, 128], strides = [1, 1]} : vector<8x256xf32> to vector<8x128xf32>
    %412 = arith.addf %410, %411 : vector<8x128xf32>
    %413 = vector.extract_strided_slice %412 {offsets = [0, 0], sizes = [8, 32], strides = [1, 1]} : vector<8x128xf32> to vector<8x32xf32>
    %414 = arith.negf %413 : vector<8x32xf32>
    %415 = math.exp %414 : vector<8x32xf32>
    %cst_63 = arith.constant 1.000000e+00 : f32
    %416 = vector.broadcast %cst_63 : f32 to vector<8x32xf32>
    %417 = arith.addf %416, %415 : vector<8x32xf32>
    %418 = arith.divf %416, %417 : vector<8x32xf32>
    %419 = vector.extract_strided_slice %412 {offsets = [0, 32], sizes = [8, 32], strides = [1, 1]} : vector<8x128xf32> to vector<8x32xf32>
    %420 = arith.negf %419 : vector<8x32xf32>
    %421 = math.exp %420 : vector<8x32xf32>
    %cst_64 = arith.constant 1.000000e+00 : f32
    %422 = vector.broadcast %cst_64 : f32 to vector<8x32xf32>
    %423 = arith.addf %422, %421 : vector<8x32xf32>
    %424 = arith.divf %422, %423 : vector<8x32xf32>
    %425 = vector.extract_strided_slice %412 {offsets = [0, 64], sizes = [8, 32], strides = [1, 1]} : vector<8x128xf32> to vector<8x32xf32>
    %426 = math.tanh %425 : vector<8x32xf32>
    %427 = vector.extract_strided_slice %412 {offsets = [0, 96], sizes = [8, 32], strides = [1, 1]} : vector<8x128xf32> to vector<8x32xf32>
    %428 = arith.negf %427 : vector<8x32xf32>
    %429 = math.exp %428 : vector<8x32xf32>
    %cst_65 = arith.constant 1.000000e+00 : f32
    %430 = vector.broadcast %cst_65 : f32 to vector<8x32xf32>
    %431 = arith.addf %430, %429 : vector<8x32xf32>
    %432 = arith.divf %430, %431 : vector<8x32xf32>
    %433 = arith.mulf %424, %375 : vector<8x32xf32>
    %434 = arith.mulf %418, %426 : vector<8x32xf32>
    %435 = arith.addf %433, %434 : vector<8x32xf32>
    %436 = math.tanh %435 : vector<8x32xf32>
    %437 = arith.mulf %432, %436 : vector<8x32xf32>
    %438 = vector.extract_strided_slice %16 {offsets = [56, 0], sizes = [8, 256], strides = [1, 1]} : vector<64x256xf32> to vector<8x256xf32>
    %439 = vector.extract_strided_slice %16 {offsets = [0, 0], sizes = [8, 256], strides = [1, 1]} : vector<64x256xf32> to vector<8x256xf32>
    %440 = tpu.concatenate %409, %437 in 1 : vector<8x32xf32>, vector<8x32xf32> -> vector<8x64xf32>
    %cst_66 = arith.constant dense<0.000000e+00> : vector<8x256xf32>
    %441 = tpu.matmul %440, %2, %cst_66 {dimension_numbers = #tpu.dot_dimension_numbers<[1], [0], [0], [1], [0, 0, 1, 1], [], []>} : vector<8x64xf32>, vector<64x256xf32>, vector<8x256xf32> -> vector<8x256xf32>
    %442 = vector.extract_strided_slice %438 {offsets = [0, 0], sizes = [8, 128], strides = [1, 1]} : vector<8x256xf32> to vector<8x128xf32>
    %443 = vector.extract_strided_slice %441 {offsets = [0, 0], sizes = [8, 128], strides = [1, 1]} : vector<8x256xf32> to vector<8x128xf32>
    %444 = arith.addf %442, %443 : vector<8x128xf32>
    %445 = vector.extract_strided_slice %444 {offsets = [0, 0], sizes = [8, 32], strides = [1, 1]} : vector<8x128xf32> to vector<8x32xf32>
    %446 = arith.negf %445 : vector<8x32xf32>
    %447 = math.exp %446 : vector<8x32xf32>
    %cst_67 = arith.constant 1.000000e+00 : f32
    %448 = vector.broadcast %cst_67 : f32 to vector<8x32xf32>
    %449 = arith.addf %448, %447 : vector<8x32xf32>
    %450 = arith.divf %448, %449 : vector<8x32xf32>
    %451 = vector.extract_strided_slice %444 {offsets = [0, 32], sizes = [8, 32], strides = [1, 1]} : vector<8x128xf32> to vector<8x32xf32>
    %452 = arith.negf %451 : vector<8x32xf32>
    %453 = math.exp %452 : vector<8x32xf32>
    %cst_68 = arith.constant 1.000000e+00 : f32
    %454 = vector.broadcast %cst_68 : f32 to vector<8x32xf32>
    %455 = arith.addf %454, %453 : vector<8x32xf32>
    %456 = arith.divf %454, %455 : vector<8x32xf32>
    %457 = vector.extract_strided_slice %444 {offsets = [0, 64], sizes = [8, 32], strides = [1, 1]} : vector<8x128xf32> to vector<8x32xf32>
    %458 = math.tanh %457 : vector<8x32xf32>
    %459 = vector.extract_strided_slice %444 {offsets = [0, 96], sizes = [8, 32], strides = [1, 1]} : vector<8x128xf32> to vector<8x32xf32>
    %460 = arith.negf %459 : vector<8x32xf32>
    %461 = math.exp %460 : vector<8x32xf32>
    %cst_69 = arith.constant 1.000000e+00 : f32
    %462 = vector.broadcast %cst_69 : f32 to vector<8x32xf32>
    %463 = arith.addf %462, %461 : vector<8x32xf32>
    %464 = arith.divf %462, %463 : vector<8x32xf32>
    %465 = arith.mulf %456, %407 : vector<8x32xf32>
    %466 = arith.mulf %450, %458 : vector<8x32xf32>
    %467 = arith.addf %465, %466 : vector<8x32xf32>
    %468 = math.tanh %467 : vector<8x32xf32>
    %469 = arith.mulf %464, %468 : vector<8x32xf32>
    %470 = vector.extract_strided_slice %439 {offsets = [0, 128], sizes = [8, 128], strides = [1, 1]} : vector<8x256xf32> to vector<8x128xf32>
    %471 = vector.extract_strided_slice %441 {offsets = [0, 128], sizes = [8, 128], strides = [1, 1]} : vector<8x256xf32> to vector<8x128xf32>
    %472 = arith.addf %470, %471 : vector<8x128xf32>
    %473 = vector.extract_strided_slice %472 {offsets = [0, 0], sizes = [8, 32], strides = [1, 1]} : vector<8x128xf32> to vector<8x32xf32>
    %474 = arith.negf %473 : vector<8x32xf32>
    %475 = math.exp %474 : vector<8x32xf32>
    %cst_70 = arith.constant 1.000000e+00 : f32
    %476 = vector.broadcast %cst_70 : f32 to vector<8x32xf32>
    %477 = arith.addf %476, %475 : vector<8x32xf32>
    %478 = arith.divf %476, %477 : vector<8x32xf32>
    %479 = vector.extract_strided_slice %472 {offsets = [0, 32], sizes = [8, 32], strides = [1, 1]} : vector<8x128xf32> to vector<8x32xf32>
    %480 = arith.negf %479 : vector<8x32xf32>
    %481 = math.exp %480 : vector<8x32xf32>
    %cst_71 = arith.constant 1.000000e+00 : f32
    %482 = vector.broadcast %cst_71 : f32 to vector<8x32xf32>
    %483 = arith.addf %482, %481 : vector<8x32xf32>
    %484 = arith.divf %482, %483 : vector<8x32xf32>
    %485 = vector.extract_strided_slice %472 {offsets = [0, 64], sizes = [8, 32], strides = [1, 1]} : vector<8x128xf32> to vector<8x32xf32>
    %486 = math.tanh %485 : vector<8x32xf32>
    %487 = vector.extract_strided_slice %472 {offsets = [0, 96], sizes = [8, 32], strides = [1, 1]} : vector<8x128xf32> to vector<8x32xf32>
    %488 = arith.negf %487 : vector<8x32xf32>
    %489 = math.exp %488 : vector<8x32xf32>
    %cst_72 = arith.constant 1.000000e+00 : f32
    %490 = vector.broadcast %cst_72 : f32 to vector<8x32xf32>
    %491 = arith.addf %490, %489 : vector<8x32xf32>
    %492 = arith.divf %490, %491 : vector<8x32xf32>
    %493 = arith.mulf %484, %435 : vector<8x32xf32>
    %494 = arith.mulf %478, %486 : vector<8x32xf32>
    %495 = arith.addf %493, %494 : vector<8x32xf32>
    %496 = math.tanh %495 : vector<8x32xf32>
    %497 = arith.mulf %492, %496 : vector<8x32xf32>
    %498 = tpu.concatenate %49, %497 in 1 : vector<8x32xf32>, vector<8x32xf32> -> vector<8x64xf32>
    %499 = tpu.concatenate %109, %437 in 1 : vector<8x32xf32>, vector<8x32xf32> -> vector<8x64xf32>
    %500 = tpu.concatenate %169, %377 in 1 : vector<8x32xf32>, vector<8x32xf32> -> vector<8x64xf32>
    %501 = tpu.concatenate %229, %317 in 1 : vector<8x32xf32>, vector<8x32xf32> -> vector<8x64xf32>
    %502 = tpu.concatenate %289, %257 in 1 : vector<8x32xf32>, vector<8x32xf32> -> vector<8x64xf32>
    %503 = tpu.concatenate %349, %197 in 1 : vector<8x32xf32>, vector<8x32xf32> -> vector<8x64xf32>
    %504 = tpu.concatenate %409, %137 in 1 : vector<8x32xf32>, vector<8x32xf32> -> vector<8x64xf32>
    %505 = tpu.concatenate %469, %77 in 1 : vector<8x32xf32>, vector<8x32xf32> -> vector<8x64xf32>
    %506 = tpu.concatenate %498, %499, %500, %501, %502, %503, %504, %505 in 0 : vector<8x64xf32>, vector<8x64xf32>, vector<8x64xf32>, vector<8x64xf32>, vector<8x64xf32>, vector<8x64xf32>, vector<8x64xf32>, vector<8x64xf32> -> vector<64x64xf32>
    "tpu.trace_start"() <{level = 10 : i32, message = "id,jd->ij"}> : () -> ()
    %cst_73 = arith.constant dense<0.000000e+00> : vector<64x64xf32>
    %507 = tpu.matmul %506, %506, %cst_73 {dimension_numbers = #tpu.dot_dimension_numbers<[1], [1], [0], [0], [0, 0, 1, 0], [], []>} : vector<64x64xf32>, vector<64x64xf32>, vector<64x64xf32> -> vector<64x64xf32>
    "tpu.trace_stop"() : () -> ()
    %cst_74 = arith.constant 1.250000e-01 : f32
    %508 = vector.broadcast %cst_74 : f32 to vector<64x64xf32>
    %509 = arith.mulf %507, %508 : vector<64x64xf32>
    %510 = tpu.iota {dimensions = array<i32: 0>} : vector<64x64xi32>
    %511 = tpu.iota {dimensions = array<i32: 1>} : vector<64x64xi32>
    %512 = arith.subi %510, %511 : vector<64x64xi32>
    %c0_i32 = arith.constant 0 : i32
    %513 = vector.broadcast %c0_i32 : i32 to vector<64x64xi32>
    %514 = arith.cmpi eq, %512, %513 : vector<64x64xi32>
    %c8_i32 = arith.constant 8 : i32
    %515 = vector.broadcast %c8_i32 : i32 to vector<64x64xi32>
    %516 = arith.cmpi eq, %512, %515 : vector<64x64xi32>
    %517 = arith.ori %514, %516 : vector<64x64xi1>
    %c-8_i32 = arith.constant -8 : i32
    %518 = vector.broadcast %c-8_i32 : i32 to vector<64x64xi32>
    %519 = arith.cmpi eq, %512, %518 : vector<64x64xi32>
    %520 = arith.ori %517, %519 : vector<64x64xi1>
    %c16_i32 = arith.constant 16 : i32
    %521 = vector.broadcast %c16_i32 : i32 to vector<64x64xi32>
    %522 = arith.cmpi eq, %512, %521 : vector<64x64xi32>
    %523 = arith.ori %520, %522 : vector<64x64xi1>
    %c-16_i32 = arith.constant -16 : i32
    %524 = vector.broadcast %c-16_i32 : i32 to vector<64x64xi32>
    %525 = arith.cmpi eq, %512, %524 : vector<64x64xi32>
    %526 = arith.ori %523, %525 : vector<64x64xi1>
    %c24_i32 = arith.constant 24 : i32
    %527 = vector.broadcast %c24_i32 : i32 to vector<64x64xi32>
    %528 = arith.cmpi eq, %512, %527 : vector<64x64xi32>
    %529 = arith.ori %526, %528 : vector<64x64xi1>
    %c-24_i32 = arith.constant -24 : i32
    %530 = vector.broadcast %c-24_i32 : i32 to vector<64x64xi32>
    %531 = arith.cmpi eq, %512, %530 : vector<64x64xi32>
    %532 = arith.ori %529, %531 : vector<64x64xi1>
    %c32_i32 = arith.constant 32 : i32
    %533 = vector.broadcast %c32_i32 : i32 to vector<64x64xi32>
    %534 = arith.cmpi eq, %512, %533 : vector<64x64xi32>
    %535 = arith.ori %532, %534 : vector<64x64xi1>
    %c-32_i32 = arith.constant -32 : i32
    %536 = vector.broadcast %c-32_i32 : i32 to vector<64x64xi32>
    %537 = arith.cmpi eq, %512, %536 : vector<64x64xi32>
    %538 = arith.ori %535, %537 : vector<64x64xi1>
    %c40_i32 = arith.constant 40 : i32
    %539 = vector.broadcast %c40_i32 : i32 to vector<64x64xi32>
    %540 = arith.cmpi eq, %512, %539 : vector<64x64xi32>
    %541 = arith.ori %538, %540 : vector<64x64xi1>
    %c-40_i32 = arith.constant -40 : i32
    %542 = vector.broadcast %c-40_i32 : i32 to vector<64x64xi32>
    %543 = arith.cmpi eq, %512, %542 : vector<64x64xi32>
    %544 = arith.ori %541, %543 : vector<64x64xi1>
    %c48_i32 = arith.constant 48 : i32
    %545 = vector.broadcast %c48_i32 : i32 to vector<64x64xi32>
    %546 = arith.cmpi eq, %512, %545 : vector<64x64xi32>
    %547 = arith.ori %544, %546 : vector<64x64xi1>
    %c-48_i32 = arith.constant -48 : i32
    %548 = vector.broadcast %c-48_i32 : i32 to vector<64x64xi32>
    %549 = arith.cmpi eq, %512, %548 : vector<64x64xi32>
    %550 = arith.ori %547, %549 : vector<64x64xi1>
    %c56_i32 = arith.constant 56 : i32
    %551 = vector.broadcast %c56_i32 : i32 to vector<64x64xi32>
    %552 = arith.cmpi eq, %512, %551 : vector<64x64xi32>
    %553 = arith.ori %550, %552 : vector<64x64xi1>
    %c-56_i32 = arith.constant -56 : i32
    %554 = vector.broadcast %c-56_i32 : i32 to vector<64x64xi32>
    %555 = arith.cmpi eq, %512, %554 : vector<64x64xi32>
    %556 = arith.ori %553, %555 : vector<64x64xi1>
    %cst_75 = arith.constant -1.000000e+30 : f32
    %557 = vector.broadcast %cst_75 : f32 to vector<64x64xf32>
    %558 = arith.select %556, %509, %557 : vector<64x64xi1>, vector<64x64xf32>
    %cst_76 = arith.constant dense<0xFF800000> : vector<64xf32>
    %559 = vector.multi_reduction <maximumf>, %558, %cst_76 [1] : vector<64x64xf32> to vector<64xf32>
    %560 = vector.shape_cast %559 : vector<64xf32> to vector<64x1xf32>
    %561 = vector.broadcast %560 : vector<64x1xf32> to vector<64x64xf32>
    %562 = arith.subf %558, %561 : vector<64x64xf32>
    %563 = math.exp %562 : vector<64x64xf32>
    %cst_77 = arith.constant dense<0.000000e+00> : vector<64xf32>
    %564 = vector.multi_reduction <add>, %563, %cst_77 [1] : vector<64x64xf32> to vector<64xf32>
    %565 = vector.shape_cast %564 : vector<64xf32> to vector<64x1xf32>
    %566 = vector.broadcast %565 : vector<64x1xf32> to vector<64x64xf32>
    %567 = arith.divf %563, %566 : vector<64x64xf32>
    %cst_78 = arith.constant dense<0.000000e+00> : vector<64xf32>
    %568 = vector.multi_reduction <add>, %567, %cst_78 [0] : vector<64x64xf32> to vector<64xf32>
    %569 = vector.shape_cast %568 : vector<64xf32> to vector<1x64xf32>
    %570 = tpu.iota {dimensions = array<i32: 0>} : vector<8x64xi32>
    %571 = tpu.iota {dimensions = array<i32: 1>} : vector<8x64xi32>
    %572 = arith.subi %571, %570 : vector<8x64xi32>
    %c0_i32_79 = arith.constant 0 : i32
    %573 = vector.broadcast %c0_i32_79 : i32 to vector<8x64xi32>
    %574 = arith.cmpi eq, %572, %573 : vector<8x64xi32>
    %c8_i32_80 = arith.constant 8 : i32
    %575 = vector.broadcast %c8_i32_80 : i32 to vector<8x64xi32>
    %576 = arith.cmpi eq, %572, %575 : vector<8x64xi32>
    %577 = arith.ori %574, %576 : vector<8x64xi1>
    %c16_i32_81 = arith.constant 16 : i32
    %578 = vector.broadcast %c16_i32_81 : i32 to vector<8x64xi32>
    %579 = arith.cmpi eq, %572, %578 : vector<8x64xi32>
    %580 = arith.ori %577, %579 : vector<8x64xi1>
    %c24_i32_82 = arith.constant 24 : i32
    %581 = vector.broadcast %c24_i32_82 : i32 to vector<8x64xi32>
    %582 = arith.cmpi eq, %572, %581 : vector<8x64xi32>
    %583 = arith.ori %580, %582 : vector<8x64xi1>
    %c32_i32_83 = arith.constant 32 : i32
    %584 = vector.broadcast %c32_i32_83 : i32 to vector<8x64xi32>
    %585 = arith.cmpi eq, %572, %584 : vector<8x64xi32>
    %586 = arith.ori %583, %585 : vector<8x64xi1>
    %c40_i32_84 = arith.constant 40 : i32
    %587 = vector.broadcast %c40_i32_84 : i32 to vector<8x64xi32>
    %588 = arith.cmpi eq, %572, %587 : vector<8x64xi32>
    %589 = arith.ori %586, %588 : vector<8x64xi1>
    %c48_i32_85 = arith.constant 48 : i32
    %590 = vector.broadcast %c48_i32_85 : i32 to vector<8x64xi32>
    %591 = arith.cmpi eq, %572, %590 : vector<8x64xi32>
    %592 = arith.ori %589, %591 : vector<8x64xi1>
    %c56_i32_86 = arith.constant 56 : i32
    %593 = vector.broadcast %c56_i32_86 : i32 to vector<8x64xi32>
    %594 = arith.cmpi eq, %572, %593 : vector<8x64xi32>
    %595 = arith.ori %592, %594 : vector<8x64xi1>
    %596 = arith.extui %595 : vector<8x64xi1> to vector<8x64xi32>
    %597 = arith.sitofp %596 : vector<8x64xi32> to vector<8x64xf32>
    %598 = vector.broadcast %569 : vector<1x64xf32> to vector<8x64xf32>
    %599 = arith.mulf %597, %598 : vector<8x64xf32>
    %cst_87 = arith.constant dense<0.000000e+00> : vector<8x64xf32>
    %600 = tpu.matmul %599, %506, %cst_87 {dimension_numbers = #tpu.dot_dimension_numbers<[1], [0], [0], [1], [0, 0, 1, 1], [], []>} : vector<8x64xf32>, vector<64x64xf32>, vector<8x64xf32> -> vector<8x64xf32>
    %c0_88 = arith.constant 0 : index
    %c0_89 = arith.constant 0 : index
    %601 = vector.load %arg5[%c0_88, %c0_89] : memref<64x32xf32, #tpu.memory_space<vmem>>, vector<64x32xf32>
    %cst_90 = arith.constant dense<0.000000e+00> : vector<8x32xf32>
    %602 = tpu.matmul %600, %601, %cst_90 {dimension_numbers = #tpu.dot_dimension_numbers<[1], [0], [0], [1], [0, 0, 1, 1], [], []>} : vector<8x64xf32>, vector<64x32xf32>, vector<8x32xf32> -> vector<8x32xf32>
    %c0_91 = arith.constant 0 : index
    %c0_92 = arith.constant 0 : index
    %603 = vector.load %arg6[%c0_91, %c0_92] : memref<1x32xf32, #tpu.memory_space<vmem>>, vector<1x32xf32>
    %604 = vector.broadcast %603 : vector<1x32xf32> to vector<8x32xf32>
    %605 = arith.addf %602, %604 : vector<8x32xf32>
    %606 = vector.extract_strided_slice %605 {offsets = [0, 0], sizes = [6, 32], strides = [1, 1]} : vector<8x32xf32> to vector<6x32xf32>
    %cst_93 = arith.constant dense<0.000000e+00> : vector<6x256xf32>
    %607 = tpu.matmul %606, %3, %cst_93 {dimension_numbers = #tpu.dot_dimension_numbers<[1], [0], [0], [1], [0, 0, 1, 1], [], []>} : vector<6x32xf32>, vector<32x256xf32>, vector<6x256xf32> -> vector<6x256xf32>
    %608 = vector.broadcast %4 : vector<1x256xf32> to vector<6x256xf32>
    %609 = arith.addf %607, %608 : vector<6x256xf32>
    %cst_94 = arith.constant 0.000000e+00 : f32
    %610 = vector.broadcast %cst_94 : f32 to vector<2x32xf32>
    %611 = vector.extract_strided_slice %609 {offsets = [0, 0], sizes = [2, 256], strides = [1, 1]} : vector<6x256xf32> to vector<2x256xf32>
    %612 = vector.extract_strided_slice %609 {offsets = [4, 0], sizes = [2, 256], strides = [1, 1]} : vector<6x256xf32> to vector<2x256xf32>
    %613 = tpu.concatenate %610, %610 in 1 : vector<2x32xf32>, vector<2x32xf32> -> vector<2x64xf32>
    %cst_95 = arith.constant dense<0.000000e+00> : vector<2x256xf32>
    %614 = tpu.matmul %613, %5, %cst_95 {dimension_numbers = #tpu.dot_dimension_numbers<[1], [0], [0], [1], [0, 0, 1, 1], [], []>} : vector<2x64xf32>, vector<64x256xf32>, vector<2x256xf32> -> vector<2x256xf32>
    %615 = vector.extract_strided_slice %611 {offsets = [0, 0], sizes = [2, 128], strides = [1, 1]} : vector<2x256xf32> to vector<2x128xf32>
    %616 = vector.extract_strided_slice %614 {offsets = [0, 0], sizes = [2, 128], strides = [1, 1]} : vector<2x256xf32> to vector<2x128xf32>
    %617 = arith.addf %615, %616 : vector<2x128xf32>
    %618 = vector.extract_strided_slice %617 {offsets = [0, 0], sizes = [2, 32], strides = [1, 1]} : vector<2x128xf32> to vector<2x32xf32>
    %619 = arith.negf %618 : vector<2x32xf32>
    %620 = math.exp %619 : vector<2x32xf32>
    %cst_96 = arith.constant 1.000000e+00 : f32
    %621 = vector.broadcast %cst_96 : f32 to vector<2x32xf32>
    %622 = arith.addf %621, %620 : vector<2x32xf32>
    %623 = arith.divf %621, %622 : vector<2x32xf32>
    %624 = vector.extract_strided_slice %617 {offsets = [0, 32], sizes = [2, 32], strides = [1, 1]} : vector<2x128xf32> to vector<2x32xf32>
    %625 = arith.negf %624 : vector<2x32xf32>
    %626 = math.exp %625 : vector<2x32xf32>
    %cst_97 = arith.constant 1.000000e+00 : f32
    %627 = vector.broadcast %cst_97 : f32 to vector<2x32xf32>
    %628 = arith.addf %627, %626 : vector<2x32xf32>
    %629 = arith.divf %627, %628 : vector<2x32xf32>
    %630 = vector.extract_strided_slice %617 {offsets = [0, 64], sizes = [2, 32], strides = [1, 1]} : vector<2x128xf32> to vector<2x32xf32>
    %631 = math.tanh %630 : vector<2x32xf32>
    %632 = vector.extract_strided_slice %617 {offsets = [0, 96], sizes = [2, 32], strides = [1, 1]} : vector<2x128xf32> to vector<2x32xf32>
    %633 = arith.negf %632 : vector<2x32xf32>
    %634 = math.exp %633 : vector<2x32xf32>
    %cst_98 = arith.constant 1.000000e+00 : f32
    %635 = vector.broadcast %cst_98 : f32 to vector<2x32xf32>
    %636 = arith.addf %635, %634 : vector<2x32xf32>
    %637 = arith.divf %635, %636 : vector<2x32xf32>
    %638 = arith.mulf %629, %610 : vector<2x32xf32>
    %639 = arith.mulf %623, %631 : vector<2x32xf32>
    %640 = arith.addf %638, %639 : vector<2x32xf32>
    %641 = math.tanh %640 : vector<2x32xf32>
    %642 = arith.mulf %637, %641 : vector<2x32xf32>
    %643 = vector.extract_strided_slice %612 {offsets = [0, 128], sizes = [2, 128], strides = [1, 1]} : vector<2x256xf32> to vector<2x128xf32>
    %644 = vector.extract_strided_slice %614 {offsets = [0, 128], sizes = [2, 128], strides = [1, 1]} : vector<2x256xf32> to vector<2x128xf32>
    %645 = arith.addf %643, %644 : vector<2x128xf32>
    %646 = vector.extract_strided_slice %645 {offsets = [0, 0], sizes = [2, 32], strides = [1, 1]} : vector<2x128xf32> to vector<2x32xf32>
    %647 = arith.negf %646 : vector<2x32xf32>
    %648 = math.exp %647 : vector<2x32xf32>
    %cst_99 = arith.constant 1.000000e+00 : f32
    %649 = vector.broadcast %cst_99 : f32 to vector<2x32xf32>
    %650 = arith.addf %649, %648 : vector<2x32xf32>
    %651 = arith.divf %649, %650 : vector<2x32xf32>
    %652 = vector.extract_strided_slice %645 {offsets = [0, 32], sizes = [2, 32], strides = [1, 1]} : vector<2x128xf32> to vector<2x32xf32>
    %653 = arith.negf %652 : vector<2x32xf32>
    %654 = math.exp %653 : vector<2x32xf32>
    %cst_100 = arith.constant 1.000000e+00 : f32
    %655 = vector.broadcast %cst_100 : f32 to vector<2x32xf32>
    %656 = arith.addf %655, %654 : vector<2x32xf32>
    %657 = arith.divf %655, %656 : vector<2x32xf32>
    %658 = vector.extract_strided_slice %645 {offsets = [0, 64], sizes = [2, 32], strides = [1, 1]} : vector<2x128xf32> to vector<2x32xf32>
    %659 = math.tanh %658 : vector<2x32xf32>
    %660 = vector.extract_strided_slice %645 {offsets = [0, 96], sizes = [2, 32], strides = [1, 1]} : vector<2x128xf32> to vector<2x32xf32>
    %661 = arith.negf %660 : vector<2x32xf32>
    %662 = math.exp %661 : vector<2x32xf32>
    %cst_101 = arith.constant 1.000000e+00 : f32
    %663 = vector.broadcast %cst_101 : f32 to vector<2x32xf32>
    %664 = arith.addf %663, %662 : vector<2x32xf32>
    %665 = arith.divf %663, %664 : vector<2x32xf32>
    %666 = arith.mulf %657, %610 : vector<2x32xf32>
    %667 = arith.mulf %651, %659 : vector<2x32xf32>
    %668 = arith.addf %666, %667 : vector<2x32xf32>
    %669 = math.tanh %668 : vector<2x32xf32>
    %670 = arith.mulf %665, %669 : vector<2x32xf32>
    %671 = vector.extract_strided_slice %609 {offsets = [2, 0], sizes = [2, 256], strides = [1, 1]} : vector<6x256xf32> to vector<2x256xf32>
    %672 = vector.extract_strided_slice %609 {offsets = [2, 0], sizes = [2, 256], strides = [1, 1]} : vector<6x256xf32> to vector<2x256xf32>
    %673 = tpu.concatenate %642, %670 in 1 : vector<2x32xf32>, vector<2x32xf32> -> vector<2x64xf32>
    %cst_102 = arith.constant dense<0.000000e+00> : vector<2x256xf32>
    %674 = tpu.matmul %673, %5, %cst_102 {dimension_numbers = #tpu.dot_dimension_numbers<[1], [0], [0], [1], [0, 0, 1, 1], [], []>} : vector<2x64xf32>, vector<64x256xf32>, vector<2x256xf32> -> vector<2x256xf32>
    %675 = vector.extract_strided_slice %671 {offsets = [0, 0], sizes = [2, 128], strides = [1, 1]} : vector<2x256xf32> to vector<2x128xf32>
    %676 = vector.extract_strided_slice %674 {offsets = [0, 0], sizes = [2, 128], strides = [1, 1]} : vector<2x256xf32> to vector<2x128xf32>
    %677 = arith.addf %675, %676 : vector<2x128xf32>
    %678 = vector.extract_strided_slice %677 {offsets = [0, 0], sizes = [2, 32], strides = [1, 1]} : vector<2x128xf32> to vector<2x32xf32>
    %679 = arith.negf %678 : vector<2x32xf32>
    %680 = math.exp %679 : vector<2x32xf32>
    %cst_103 = arith.constant 1.000000e+00 : f32
    %681 = vector.broadcast %cst_103 : f32 to vector<2x32xf32>
    %682 = arith.addf %681, %680 : vector<2x32xf32>
    %683 = arith.divf %681, %682 : vector<2x32xf32>
    %684 = vector.extract_strided_slice %677 {offsets = [0, 32], sizes = [2, 32], strides = [1, 1]} : vector<2x128xf32> to vector<2x32xf32>
    %685 = arith.negf %684 : vector<2x32xf32>
    %686 = math.exp %685 : vector<2x32xf32>
    %cst_104 = arith.constant 1.000000e+00 : f32
    %687 = vector.broadcast %cst_104 : f32 to vector<2x32xf32>
    %688 = arith.addf %687, %686 : vector<2x32xf32>
    %689 = arith.divf %687, %688 : vector<2x32xf32>
    %690 = vector.extract_strided_slice %677 {offsets = [0, 64], sizes = [2, 32], strides = [1, 1]} : vector<2x128xf32> to vector<2x32xf32>
    %691 = math.tanh %690 : vector<2x32xf32>
    %692 = vector.extract_strided_slice %677 {offsets = [0, 96], sizes = [2, 32], strides = [1, 1]} : vector<2x128xf32> to vector<2x32xf32>
    %693 = arith.negf %692 : vector<2x32xf32>
    %694 = math.exp %693 : vector<2x32xf32>
    %cst_105 = arith.constant 1.000000e+00 : f32
    %695 = vector.broadcast %cst_105 : f32 to vector<2x32xf32>
    %696 = arith.addf %695, %694 : vector<2x32xf32>
    %697 = arith.divf %695, %696 : vector<2x32xf32>
    %698 = arith.mulf %689, %640 : vector<2x32xf32>
    %699 = arith.mulf %683, %691 : vector<2x32xf32>
    %700 = arith.addf %698, %699 : vector<2x32xf32>
    %701 = math.tanh %700 : vector<2x32xf32>
    %702 = arith.mulf %697, %701 : vector<2x32xf32>
    %703 = vector.extract_strided_slice %672 {offsets = [0, 128], sizes = [2, 128], strides = [1, 1]} : vector<2x256xf32> to vector<2x128xf32>
    %704 = vector.extract_strided_slice %674 {offsets = [0, 128], sizes = [2, 128], strides = [1, 1]} : vector<2x256xf32> to vector<2x128xf32>
    %705 = arith.addf %703, %704 : vector<2x128xf32>
    %706 = vector.extract_strided_slice %705 {offsets = [0, 0], sizes = [2, 32], strides = [1, 1]} : vector<2x128xf32> to vector<2x32xf32>
    %707 = arith.negf %706 : vector<2x32xf32>
    %708 = math.exp %707 : vector<2x32xf32>
    %cst_106 = arith.constant 1.000000e+00 : f32
    %709 = vector.broadcast %cst_106 : f32 to vector<2x32xf32>
    %710 = arith.addf %709, %708 : vector<2x32xf32>
    %711 = arith.divf %709, %710 : vector<2x32xf32>
    %712 = vector.extract_strided_slice %705 {offsets = [0, 32], sizes = [2, 32], strides = [1, 1]} : vector<2x128xf32> to vector<2x32xf32>
    %713 = arith.negf %712 : vector<2x32xf32>
    %714 = math.exp %713 : vector<2x32xf32>
    %cst_107 = arith.constant 1.000000e+00 : f32
    %715 = vector.broadcast %cst_107 : f32 to vector<2x32xf32>
    %716 = arith.addf %715, %714 : vector<2x32xf32>
    %717 = arith.divf %715, %716 : vector<2x32xf32>
    %718 = vector.extract_strided_slice %705 {offsets = [0, 64], sizes = [2, 32], strides = [1, 1]} : vector<2x128xf32> to vector<2x32xf32>
    %719 = math.tanh %718 : vector<2x32xf32>
    %720 = vector.extract_strided_slice %705 {offsets = [0, 96], sizes = [2, 32], strides = [1, 1]} : vector<2x128xf32> to vector<2x32xf32>
    %721 = arith.negf %720 : vector<2x32xf32>
    %722 = math.exp %721 : vector<2x32xf32>
    %cst_108 = arith.constant 1.000000e+00 : f32
    %723 = vector.broadcast %cst_108 : f32 to vector<2x32xf32>
    %724 = arith.addf %723, %722 : vector<2x32xf32>
    %725 = arith.divf %723, %724 : vector<2x32xf32>
    %726 = arith.mulf %717, %668 : vector<2x32xf32>
    %727 = arith.mulf %711, %719 : vector<2x32xf32>
    %728 = arith.addf %726, %727 : vector<2x32xf32>
    %729 = math.tanh %728 : vector<2x32xf32>
    %730 = arith.mulf %725, %729 : vector<2x32xf32>
    %731 = vector.extract_strided_slice %609 {offsets = [4, 0], sizes = [2, 256], strides = [1, 1]} : vector<6x256xf32> to vector<2x256xf32>
    %732 = vector.extract_strided_slice %609 {offsets = [0, 0], sizes = [2, 256], strides = [1, 1]} : vector<6x256xf32> to vector<2x256xf32>
    %733 = tpu.concatenate %702, %730 in 1 : vector<2x32xf32>, vector<2x32xf32> -> vector<2x64xf32>
    %cst_109 = arith.constant dense<0.000000e+00> : vector<2x256xf32>
    %734 = tpu.matmul %733, %5, %cst_109 {dimension_numbers = #tpu.dot_dimension_numbers<[1], [0], [0], [1], [0, 0, 1, 1], [], []>} : vector<2x64xf32>, vector<64x256xf32>, vector<2x256xf32> -> vector<2x256xf32>
    %735 = vector.extract_strided_slice %731 {offsets = [0, 0], sizes = [2, 128], strides = [1, 1]} : vector<2x256xf32> to vector<2x128xf32>
    %736 = vector.extract_strided_slice %734 {offsets = [0, 0], sizes = [2, 128], strides = [1, 1]} : vector<2x256xf32> to vector<2x128xf32>
    %737 = arith.addf %735, %736 : vector<2x128xf32>
    %738 = vector.extract_strided_slice %737 {offsets = [0, 0], sizes = [2, 32], strides = [1, 1]} : vector<2x128xf32> to vector<2x32xf32>
    %739 = arith.negf %738 : vector<2x32xf32>
    %740 = math.exp %739 : vector<2x32xf32>
    %cst_110 = arith.constant 1.000000e+00 : f32
    %741 = vector.broadcast %cst_110 : f32 to vector<2x32xf32>
    %742 = arith.addf %741, %740 : vector<2x32xf32>
    %743 = arith.divf %741, %742 : vector<2x32xf32>
    %744 = vector.extract_strided_slice %737 {offsets = [0, 32], sizes = [2, 32], strides = [1, 1]} : vector<2x128xf32> to vector<2x32xf32>
    %745 = arith.negf %744 : vector<2x32xf32>
    %746 = math.exp %745 : vector<2x32xf32>
    %cst_111 = arith.constant 1.000000e+00 : f32
    %747 = vector.broadcast %cst_111 : f32 to vector<2x32xf32>
    %748 = arith.addf %747, %746 : vector<2x32xf32>
    %749 = arith.divf %747, %748 : vector<2x32xf32>
    %750 = vector.extract_strided_slice %737 {offsets = [0, 64], sizes = [2, 32], strides = [1, 1]} : vector<2x128xf32> to vector<2x32xf32>
    %751 = math.tanh %750 : vector<2x32xf32>
    %752 = vector.extract_strided_slice %737 {offsets = [0, 96], sizes = [2, 32], strides = [1, 1]} : vector<2x128xf32> to vector<2x32xf32>
    %753 = arith.negf %752 : vector<2x32xf32>
    %754 = math.exp %753 : vector<2x32xf32>
    %cst_112 = arith.constant 1.000000e+00 : f32
    %755 = vector.broadcast %cst_112 : f32 to vector<2x32xf32>
    %756 = arith.addf %755, %754 : vector<2x32xf32>
    %757 = arith.divf %755, %756 : vector<2x32xf32>
    %758 = arith.mulf %749, %700 : vector<2x32xf32>
    %759 = arith.mulf %743, %751 : vector<2x32xf32>
    %760 = arith.addf %758, %759 : vector<2x32xf32>
    %761 = math.tanh %760 : vector<2x32xf32>
    %762 = arith.mulf %757, %761 : vector<2x32xf32>
    %763 = vector.extract_strided_slice %732 {offsets = [0, 128], sizes = [2, 128], strides = [1, 1]} : vector<2x256xf32> to vector<2x128xf32>
    %764 = vector.extract_strided_slice %734 {offsets = [0, 128], sizes = [2, 128], strides = [1, 1]} : vector<2x256xf32> to vector<2x128xf32>
    %765 = arith.addf %763, %764 : vector<2x128xf32>
    %766 = vector.extract_strided_slice %765 {offsets = [0, 0], sizes = [2, 32], strides = [1, 1]} : vector<2x128xf32> to vector<2x32xf32>
    %767 = arith.negf %766 : vector<2x32xf32>
    %768 = math.exp %767 : vector<2x32xf32>
    %cst_113 = arith.constant 1.000000e+00 : f32
    %769 = vector.broadcast %cst_113 : f32 to vector<2x32xf32>
    %770 = arith.addf %769, %768 : vector<2x32xf32>
    %771 = arith.divf %769, %770 : vector<2x32xf32>
    %772 = vector.extract_strided_slice %765 {offsets = [0, 32], sizes = [2, 32], strides = [1, 1]} : vector<2x128xf32> to vector<2x32xf32>
    %773 = arith.negf %772 : vector<2x32xf32>
    %774 = math.exp %773 : vector<2x32xf32>
    %cst_114 = arith.constant 1.000000e+00 : f32
    %775 = vector.broadcast %cst_114 : f32 to vector<2x32xf32>
    %776 = arith.addf %775, %774 : vector<2x32xf32>
    %777 = arith.divf %775, %776 : vector<2x32xf32>
    %778 = vector.extract_strided_slice %765 {offsets = [0, 64], sizes = [2, 32], strides = [1, 1]} : vector<2x128xf32> to vector<2x32xf32>
    %779 = math.tanh %778 : vector<2x32xf32>
    %780 = vector.extract_strided_slice %765 {offsets = [0, 96], sizes = [2, 32], strides = [1, 1]} : vector<2x128xf32> to vector<2x32xf32>
    %781 = arith.negf %780 : vector<2x32xf32>
    %782 = math.exp %781 : vector<2x32xf32>
    %cst_115 = arith.constant 1.000000e+00 : f32
    %783 = vector.broadcast %cst_115 : f32 to vector<2x32xf32>
    %784 = arith.addf %783, %782 : vector<2x32xf32>
    %785 = arith.divf %783, %784 : vector<2x32xf32>
    %786 = arith.mulf %777, %728 : vector<2x32xf32>
    %787 = arith.mulf %771, %779 : vector<2x32xf32>
    %788 = arith.addf %786, %787 : vector<2x32xf32>
    %789 = math.tanh %788 : vector<2x32xf32>
    %790 = arith.mulf %785, %789 : vector<2x32xf32>
    %791 = tpu.concatenate %642, %790 in 1 : vector<2x32xf32>, vector<2x32xf32> -> vector<2x64xf32>
    %792 = tpu.concatenate %702, %730 in 1 : vector<2x32xf32>, vector<2x32xf32> -> vector<2x64xf32>
    %793 = tpu.concatenate %762, %670 in 1 : vector<2x32xf32>, vector<2x32xf32> -> vector<2x64xf32>
    %794 = tpu.concatenate %791, %792, %793 in 0 : vector<2x64xf32>, vector<2x64xf32>, vector<2x64xf32> -> vector<6x64xf32>
    "tpu.trace_start"() <{level = 10 : i32, message = "id,jd->ij"}> : () -> ()
    %cst_116 = arith.constant dense<0.000000e+00> : vector<6x6xf32>
    %795 = tpu.matmul %794, %794, %cst_116 {dimension_numbers = #tpu.dot_dimension_numbers<[1], [1], [0], [0], [0, 0, 1, 0], [], []>} : vector<6x64xf32>, vector<6x64xf32>, vector<6x6xf32> -> vector<6x6xf32>
    "tpu.trace_stop"() : () -> ()
    %cst_117 = arith.constant 1.250000e-01 : f32
    %796 = vector.broadcast %cst_117 : f32 to vector<6x6xf32>
    %797 = arith.mulf %795, %796 : vector<6x6xf32>
    %798 = tpu.iota {dimensions = array<i32: 0>} : vector<6x6xi32>
    %799 = tpu.iota {dimensions = array<i32: 1>} : vector<6x6xi32>
    %800 = arith.subi %798, %799 : vector<6x6xi32>
    %c0_i32_118 = arith.constant 0 : i32
    %801 = vector.broadcast %c0_i32_118 : i32 to vector<6x6xi32>
    %802 = arith.cmpi eq, %800, %801 : vector<6x6xi32>
    %c2_i32 = arith.constant 2 : i32
    %803 = vector.broadcast %c2_i32 : i32 to vector<6x6xi32>
    %804 = arith.cmpi eq, %800, %803 : vector<6x6xi32>
    %805 = arith.ori %802, %804 : vector<6x6xi1>
    %c-2_i32 = arith.constant -2 : i32
    %806 = vector.broadcast %c-2_i32 : i32 to vector<6x6xi32>
    %807 = arith.cmpi eq, %800, %806 : vector<6x6xi32>
    %808 = arith.ori %805, %807 : vector<6x6xi1>
    %c4_i32 = arith.constant 4 : i32
    %809 = vector.broadcast %c4_i32 : i32 to vector<6x6xi32>
    %810 = arith.cmpi eq, %800, %809 : vector<6x6xi32>
    %811 = arith.ori %808, %810 : vector<6x6xi1>
    %c-4_i32 = arith.constant -4 : i32
    %812 = vector.broadcast %c-4_i32 : i32 to vector<6x6xi32>
    %813 = arith.cmpi eq, %800, %812 : vector<6x6xi32>
    %814 = arith.ori %811, %813 : vector<6x6xi1>
    %cst_119 = arith.constant -1.000000e+30 : f32
    %815 = vector.broadcast %cst_119 : f32 to vector<6x6xf32>
    %816 = arith.select %814, %797, %815 : vector<6x6xi1>, vector<6x6xf32>
    %cst_120 = arith.constant dense<0xFF800000> : vector<6xf32>
    %817 = vector.multi_reduction <maximumf>, %816, %cst_120 [1] : vector<6x6xf32> to vector<6xf32>
    %818 = vector.shape_cast %817 : vector<6xf32> to vector<6x1xf32>
    %819 = vector.broadcast %818 : vector<6x1xf32> to vector<6x6xf32>
    %820 = arith.subf %816, %819 : vector<6x6xf32>
    %821 = math.exp %820 : vector<6x6xf32>
    %cst_121 = arith.constant dense<0.000000e+00> : vector<6xf32>
    %822 = vector.multi_reduction <add>, %821, %cst_121 [1] : vector<6x6xf32> to vector<6xf32>
    %823 = vector.shape_cast %822 : vector<6xf32> to vector<6x1xf32>
    %824 = vector.broadcast %823 : vector<6x1xf32> to vector<6x6xf32>
    %825 = arith.divf %821, %824 : vector<6x6xf32>
    %cst_122 = arith.constant dense<0.000000e+00> : vector<6xf32>
    %826 = vector.multi_reduction <add>, %825, %cst_122 [0] : vector<6x6xf32> to vector<6xf32>
    %827 = vector.shape_cast %826 : vector<6xf32> to vector<1x6xf32>
    %828 = tpu.iota {dimensions = array<i32: 0>} : vector<2x6xi32>
    %829 = tpu.iota {dimensions = array<i32: 1>} : vector<2x6xi32>
    %830 = arith.subi %829, %828 : vector<2x6xi32>
    %c0_i32_123 = arith.constant 0 : i32
    %831 = vector.broadcast %c0_i32_123 : i32 to vector<2x6xi32>
    %832 = arith.cmpi eq, %830, %831 : vector<2x6xi32>
    %c2_i32_124 = arith.constant 2 : i32
    %833 = vector.broadcast %c2_i32_124 : i32 to vector<2x6xi32>
    %834 = arith.cmpi eq, %830, %833 : vector<2x6xi32>
    %835 = arith.ori %832, %834 : vector<2x6xi1>
    %c4_i32_125 = arith.constant 4 : i32
    %836 = vector.broadcast %c4_i32_125 : i32 to vector<2x6xi32>
    %837 = arith.cmpi eq, %830, %836 : vector<2x6xi32>
    %838 = arith.ori %835, %837 : vector<2x6xi1>
    %839 = arith.extui %838 : vector<2x6xi1> to vector<2x6xi32>
    %840 = arith.sitofp %839 : vector<2x6xi32> to vector<2x6xf32>
    %841 = vector.broadcast %827 : vector<1x6xf32> to vector<2x6xf32>
    %842 = arith.mulf %840, %841 : vector<2x6xf32>
    %cst_126 = arith.constant dense<0.000000e+00> : vector<2x64xf32>
    %843 = tpu.matmul %842, %794, %cst_126 {dimension_numbers = #tpu.dot_dimension_numbers<[1], [0], [0], [1], [0, 0, 1, 1], [], []>} : vector<2x6xf32>, vector<6x64xf32>, vector<2x64xf32> -> vector<2x64xf32>
    %c0_127 = arith.constant 0 : index
    %c0_128 = arith.constant 0 : index
    %844 = vector.load %arg10[%c0_127, %c0_128] : memref<64x32xf32, #tpu.memory_space<vmem>>, vector<64x32xf32>
    %cst_129 = arith.constant dense<0.000000e+00> : vector<2x32xf32>
    %845 = tpu.matmul %843, %844, %cst_129 {dimension_numbers = #tpu.dot_dimension_numbers<[1], [0], [0], [1], [0, 0, 1, 1], [], []>} : vector<2x64xf32>, vector<64x32xf32>, vector<2x32xf32> -> vector<2x32xf32>
    %c0_130 = arith.constant 0 : index
    %c0_131 = arith.constant 0 : index
    %846 = vector.load %arg11[%c0_130, %c0_131] : memref<1x32xf32, #tpu.memory_space<vmem>>, vector<1x32xf32>
    %847 = vector.broadcast %846 : vector<1x32xf32> to vector<2x32xf32>
    %848 = arith.addf %845, %847 : vector<2x32xf32>
    %c0_132 = arith.constant 0 : index
    %c0_133 = arith.constant 0 : index
    %849 = vector.load %arg12[%c0_132, %c0_133] : memref<2x32xf32, #tpu.memory_space<vmem>>, vector<2x32xf32>
    tpu.vector_store %arg12[%c0_132, %c0_133], %848 {strides = array<i32>} : memref<2x32xf32, #tpu.memory_space<vmem>>, vector<2x32xf32>,
    return
  }
}

</mosaic_0001>

<bundles_post_ra>
// kernel: hierarchical_attention_forward.1
= control target key start
LH: loop header
LB: loop body
LE: loop exit
PB: predicated region body
PF: predicated region fallthrough
CT: control target
= control target key end

     0   :  { %17 = vsyncpa [#allocation3], 0  ;;  %s4955_s0 = inlined_call_operand.vmem [shape: s32[64,1], index: 0, kind: input, shape index: {}]   ;;  %s4956_s1 = inlined_call_operand.vmem [shape: f32[30,16], index: 1, kind: input, shape index: {}]   ;;  %s4957_s2 = inlined_call_operand.hbm [shape: f32[16,256], index: 2, kind: input, shape index: {}]   ;;  %s4958_s3 = inlined_call_operand.hbm [shape: f32[1,256], index: 3, kind: input, shape index: {}]   ;;  %s4959_s4 = inlined_call_operand.vmem [shape: f32[64,256], index: 4, kind: input, shape index: {}]   ;;  %s4960_s5 = inlined_call_operand.vmem [shape: f32[64,32], index: 5, kind: input, shape index: {}]   ;;  %s4961_s6 = inlined_call_operand.hbm [shape: f32[1,32], index: 6, kind: input, shape index: {}]   ;;  %s4962_s7 = inlined_call_operand.vmem [shape: f32[32,256], index: 7, kind: input, shape index: {}]   ;;  %s4963_s8 = inlined_call_operand.vmem [shape: f32[1,256], index: 8, kind: input, shape index: {}]   ;;  %s4964_s9 = inlined_call_operand.vmem [shape: f32[64,256], index: 9, kind: input, shape index: {}]   ;;  %s4965_s10 = inlined_call_operand.vmem [shape: f32[64,32], index: 10, kind: input, shape index: {}]   ;;  %s4966_s11 = inlined_call_operand.vmem [shape: f32[1,32], index: 11, kind: input, shape index: {}]   ;;  %s4967_s12 = inlined_call_operand.hbm [shape: f32[2,32], index: 12, kind: output, shape index: {}]  }
   0x1   :  { %18 = vsyncpa [#allocation6], 0 }
   0x2   :  { %19 = vsyncpa [#allocation4], 0  ;;  %s3869_s21 = smov [#allocation5]   ;;  %s3870_s23 = smov [#allocation2]  }
   0x3   :  { %s42_s22 = sshll.u32 %s3869_s21, 4  ;;  %s29_s24 = sshll.u32 %s3870_s23, 4  ;;  %s43_s22 = int_to_ptr.vmem [resolvable:$true] %s42_s22  ;;  %s3947_s24 = int_to_ptr.vmem [resolvable:$true] %s29_s24 }
   0x4   :  { %s3775_s27 = scalar_lea.hbm %s4958_s3, 32 }
   0x5   :  { %p3776_p0 = scmp.ne.s32.totalorder %s4958_s3, %s3775_s27  ;;  %p3779_p1 = scmp.lt.u32.totalorder %s3775_s27, %s4958_s3 }
   0x7   :  { %p3781_p2 = pnand %p3779_p1, %p3776_p0 }
   0x9   :  { %3784 = shalt.err (!%p3781_p2)
}
   0xa   :  { %s3785_s14 = scalar_lea.vmem %s43_s22, 32  ;;  %p3790_p4 = scmp.lt.s32.totalorder %s43_s22, %s43_s22 }
   0xb   :  { %p3786_p3 = scmp.ne.s32.totalorder %s43_s22, %s3785_s14  ;;  %p3791_p5 = scmp.lt.s32.totalorder %s3785_s14, %s3785_s14 }
   0xd   :  { %p3792_p6 = por %p3791_p5, %p3790_p4 }
   0xf   :  { %p3793_p7 = pnand %p3792_p6, %p3786_p3 }
  0x11   :  { %3796 = shalt.err (!%p3793_p7)
}
  0x12   :  { %45 = dma.hbm_to_vmem [thread:$0]  %s4958_s3, 32, %s43_s22, [#allocation6]  }
  0x13   :  { %s3797_s19 = scalar_lea.hbm %s4957_s2, 512 }
  0x14   :  { %p3798_p8 = scmp.ne.s32.totalorder %s4957_s2, %s3797_s19  ;;  %p3801_p9 = scmp.lt.u32.totalorder %s3797_s19, %s4957_s2 }
  0x16   :  { %p3803_p10 = pnand %p3801_p9, %p3798_p8 }
  0x18   :  { %3806 = shalt.err (!%p3803_p10)
}
  0x19   :  { %s3807_s26 = scalar_lea.vmem %s3947_s24, 512  ;;  %p3812_p12 = scmp.lt.s32.totalorder %s3947_s24, %s3947_s24 }
  0x1a   :  { %p3808_p11 = scmp.ne.s32.totalorder %s3947_s24, %s3807_s26  ;;  %p3813_p13 = scmp.lt.s32.totalorder %s3807_s26, %s3807_s26 }
  0x1c   :  { %p3814_p0 = por %p3813_p13, %p3812_p12 }
  0x1e   :  { %p3815_p1 = pnand %p3814_p0, %p3808_p11 }
  0x20   :  { %3818 = shalt.err (!%p3815_p1)
}
  0x21   :  { %s3871_s3 = smov 256   ;;  %s3872_s22 = smov 16  }
  0x22   :  { %35 = dma.hbm_to_vmem [thread:$0]  %s4957_s2, 512, %s3947_s24, [#allocation3], %s3871_s3, %s3871_s3, %s3872_s22  }
  0x23   :  { %s3873_s29 = smov [#allocation7]   ;;  %s3819_s15 = scalar_lea.hbm %s4961_s6, 16 }
  0x24   :  { %s56_s30 = sshll.u32 %s3873_s29, 4  ;;  %p3820_p2 = scmp.ne.s32.totalorder %s4961_s6, %s3819_s15  ;;  %s57_s30 = int_to_ptr.vmem [resolvable:$true] %s56_s30 }
  0x25   :  { %p3823_p3 = scmp.lt.u32.totalorder %s3819_s15, %s4961_s6 }
  0x27   :  { %p3825_p4 = pnand %p3823_p3, %p3820_p2 }
  0x29   :  { %3828 = shalt.err (!%p3825_p4)
}
  0x2a   :  { %s3829_s20 = scalar_lea.vmem %s57_s30, 16  ;;  %s3833_s2 = scalar_lea.vmem %s57_s30, 32 }
  0x2b   :  { %p3830_p5 = scmp.ne.s32.totalorder %s57_s30, %s3829_s20  ;;  %p3834_p6 = scmp.lt.s32.totalorder %s57_s30, %s57_s30 }
  0x2c   :  { %p3835_p7 = scmp.lt.s32.totalorder %s3833_s2, %s3829_s20 }
  0x2e   :  { %p3836_p8 = por %p3835_p7, %p3834_p6 }
  0x30   :  { %p3837_p9 = pnand %p3836_p8, %p3830_p5 }
  0x32   :  { %3840 = shalt.err (!%p3837_p9)
}
  0x33   :  { %59 = dma.hbm_to_vmem [thread:$0]  %s4961_s6, 16, %s57_s30, [#allocation6]  }
  0x34   :  { %3863 = dma.done.wait [#allocation3], 512  }
  0x35   :  { %3864 = vsyncadd [#allocation3], 4294966784 }
  0x36   :  { %3865 = dma.done.wait [#allocation6], 48  }
  0x37   :  { %3866 = vsyncadd [#allocation6], 4294967248  ;;  %v3874_v0 = vmov 0   ;;  %v3875_v1 = vmov 0.0   ;;  %v127_v2 = vld [vmem:[%s4955_s0 + $0x10] sm:$0xff]  ;;  %v125_v3 = vld [vmem:[%s4955_s0] sm:$0xff]  ;;  %v133_v25 = vlaneseq }
  0x38   :  { %3562 = vset.pattern.permute.xlu1 %v3874_v0  ;;  %3561 = vset.pattern.permute.xlu0 %v3874_v0  ;;  %v128_v4 = vld [vmem:[%s4955_s0 + $0x18] sm:$0xff]  ;;  %v126_v5 = vld [vmem:[%s4955_s0 + $0x8] sm:$0xff]  ;;  %v183_v6 = vld [vmem:[%s4956_s1] sm:$0xff]  ;;  %vm4969_vm0 = vcmask 1045504   ;;  %vm3876_vm1 = vmmov 1   ;;  %vm187_vm3 = vcmask 244736  }
  0x39   :  { %421 = vmatprep.mubr.f32.mxu1 %v3875_v1  ;;  %142 = vperm.xlu1 %3562, %v127_v2   ;;  %v184_v7 = vld [vmem:[%s4956_s1 + $0x8] sm:$0xff]  ;;  %v185_v8 = vld [vmem:[%s4956_s1 + $0x10] sm:$0xff]  ;;  %v186_v9 = vld [vmem:[%s4956_s1 + $0x18] sm:$0x3f]  ;;  %v4039_v26 = vand.u32 127, %v133_v25  ;;  %vm332_vm12 = vcmask 130048  }
  0x3a   :  { %136 = vperm.xlu0 %3561, %v125_v3   ;;  %v3290_v10 = vpack.c.bf16 %v184_v7, %v183_v6  ;;  %v3294_v11 = vpack.c.bf16 %v186_v9, %v185_v8  ;;  %vm3295_vm2 = vmpackc.low %vm4969_vm0, %vm3876_vm1  ;;  %v130_v12 = vld [vmem:[%s4955_s0 + $0x28] sm:$0xff]  ;;  %v129_v13 = vld [vmem:[%s4955_s0 + $0x20] sm:$0xff]  ;;  %s3878_s13 = smov 32   ;;  %vm4970_vm13 = vcmask 261120   ;;  %vm4971_vm14 = vcmask 523264   ;;  %s3881_s1 = smov [#allocation8]  }
  0x3b   :  { %v132_v14 = vld [vmem:[%s4955_s0 + $0x38] sm:$0xff]  ;;  %v131_v15 = vld [vmem:[%s4955_s0 + $0x30] sm:$0xff]  ;;  %v85_v16 = vld [vmem:[%s4959_s4 + $0x8] sm:$0xff]  ;;  %s3022_s21 = sshll.u32 %s3881_s1, 4  ;;  %s3023_s21 = int_to_ptr.vmem [resolvable:$true] %s3022_s21 }
  0x3c   :  { %3291 = vmatprep.subr.bf16.mxu0 %v3290_v10  ;;  %v87_v17 = vld [vmem:[%s4959_s4 + $0x18] sm:$0xff]  ;;  %v80_v19 = vld [vmem:[#allocation2 + $0x8] sm:$0xff]  ;;  %v79_v21 = vld [vmem:[#allocation2] sm:$0xff]  ;;  %p3846_p11 = scmp.lt.s32.totalorder %s3023_s21, %s3023_s21 }
  0x3d   :  { %145 = vperm.xlu1 %3562, %v128_v4   ;;  %3293 = vmatpush3.bf16.msra.mxu0 %v3290_v10  ;;  %v4034_v18 = vpack.c.bf16 %v87_v17, %v85_v16  ;;  %v82_v20 = vld [vmem:[#allocation2 + $0x18] sm:$0xff]  ;;  %v81_v23 = vld [vmem:[#allocation2 + $0x10] sm:$0xff]  ;;  %v84_v29 = vld [vmem:[%s4959_s4] sm:$0xff] }
  0x3e   :  { %139 = vperm.xlu0 %3561, %v126_v5   ;;  %3296 = vmatprep.subr.msk.bf16.mxu0 %vm3295_vm2, %v3294_v11  ;;  %v3300_v22 = vpack.c.bf16 %v82_v20, %v80_v19  ;;  %v3302_v24 = vpack.c.bf16 %v81_v23, %v79_v21  ;;  %v86_v30 = vld [vmem:[%s4959_s4 + $0x10] sm:$0xff]  ;;  %v89_v32 = vld [vmem:[%s4959_s4 + $0x28] sm:$0xff]  ;;  %v91_v33 = vld [vmem:[%s4959_s4 + $0x38] sm:$0xff] }
  0x3f   :  { %v4057_v36 = vpack.c.bf16 %v86_v30, %v84_v29  ;;  %v4062_v38 = vpack.c.bf16 %v91_v33, %v89_v32  ;;  %v88_v39 = vld [vmem:[%s4959_s4 + $0x20] sm:$0xff]  ;;  %v90_v40 = vld [vmem:[%s4959_s4 + $0x30] sm:$0xff]  ;;  %v93_v42 = vld [vmem:[%s4959_s4 + $0x48] sm:$0xff] }
  0x40   :  { %3301 = vmatprep.subr.bf16.mxu1 %v3300_v22  ;;  %v95_v43 = vld [vmem:[%s4959_s4 + $0x58] sm:$0xff]  ;;  %v4081_v47 = vpack.c.bf16 %v90_v40, %v88_v39  ;;  %v92_v49 = vld [vmem:[%s4959_s4 + $0x40] sm:$0xff]  ;;  %v94_v50 = vld [vmem:[%s4959_s4 + $0x50] sm:$0xff] }
  0x41   :  { %151 = vperm.xlu1 %3562, %v130_v12   ;;  %3299 = vmatpush3.bf16.msk.msra.mxu0 %vm3295_vm2, %v3294_v11  ;;  %v4085_v48 = vpack.c.bf16 %v95_v43, %v93_v42  ;;  %v4098_v54 = vpack.c.bf16 %v94_v50, %v92_v49  ;;  %v97_v58 = vld [vmem:[%s4959_s4 + $0x68] sm:$0xff]  ;;  %v99_v59 = vld [vmem:[%s4959_s4 + $0x78] sm:$0xff]  ;;  %v96_v61 = vld [vmem:[%s4959_s4 + $0x60] sm:$0xff]  ;;  %v4165_v11 = vshrl.u32 %v133_v25, 7 }
  0x42   :  { %148 = vperm.xlu0 %3561, %v129_v13   ;;  %3305 = vmatprep.subr.bf16.mxu0 %v4034_v18  ;;  %v4117_v60 = vpack.c.bf16 %v99_v59, %v97_v58  ;;  %v98_v62 = vld [vmem:[%s4959_s4 + $0x70] sm:$0xff]  ;;  %v83_v13 = vld [vmem:[#allocation5] sm:$0x3]  ;;  %s3877_s4 = smov 64   ;;  %vm4385_vm15 = vmpackc.low %vm4971_vm14, %vm4971_vm14 }
  0x43   :  { %3303 = vmatpush1.bf16.msra.mxu1 %v3302_v24  ;;  %v4125_v63 = vpack.c.bf16 %v98_v62, %v96_v61  ;;  %v324_v12 = vsub.s32 0, %v4165_v11 }
  0x44   :  { %3321 = vmatprep.subr.bf16.mxu1 %v4034_v18 }
  0x45   :  { %157 = vperm.xlu1 %3562, %v132_v14   ;;  %v328_v14 = vsub.s32 1, %v4165_v11 }
  0x46   :  { %154 = vperm.xlu0 %3561, %v131_v15   ;;  %v325_v15 = vrot.slane %v83_v13, %v324_v12 }
  0x47   :  { %v329_v16 = vrot.slane %v83_v13, %v328_v14 }
  0xb8   :  { %v143_v27 = vpop.permute.xlu1 %142 }
  0xb9   :  { %v137_v28 = vpop.permute.xlu0 %136  ;;  %vm161_vm5 = vcmp.eq.s32.totalorder %v143_v27, %v4039_v26 }
  0xba   :  { %vm159_vm4 = vcmp.eq.s32.totalorder %v137_v28, %v4039_v26  ;;  %v3034_v37 = vsel %vm161_vm5, 1.0, %v3875_v1 }
  0xbb   :  { %v3032_v31 = vsel %vm159_vm4, 1.0, %v3875_v1 }
  0xbc   :  { %3183 = vmatprep.mubr.msk.f32.mxu0 %vm187_vm3, %v3032_v31  ;;  %v146_v34 = vpop.permute.xlu1 %145 }
  0xbd   :  { %v140_v35 = vpop.permute.xlu0 %139  ;;  %vm162_vm6 = vcmp.eq.s32.totalorder %v146_v34, %v4039_v26 }
  0xbe   :  { %vm160_vm7 = vcmp.eq.s32.totalorder %v140_v35, %v4039_v26  ;;  %v3035_v44 = vsel %vm162_vm6, 1.0, %v3875_v1 }
  0xbf   :  { %v3033_v41 = vsel %vm160_vm7, 1.0, %v3875_v1 }
  0xc0   :  { %3184 = vmatmul.mubr.msk.f32.vlgmr.msra.gmra.mrb[0].mxu0 %vm187_vm3, %v3033_v41  ;;  %v152_v45 = vpop.permute.xlu1 %151 }
  0xc1   :  { %v149_v46 = vpop.permute.xlu0 %148  ;;  %3186 = vmatprep.mubr.msk.f32.mxu0 %vm187_vm3, %v3034_v37  ;;  %3307 = vmatpush1.bf16.msra.mxu0 %v4057_v36  ;;  %vm164_vm9 = vcmp.eq.s32.totalorder %v152_v45, %v4039_v26 }
  0xc2   :  { %vm163_vm8 = vcmp.eq.s32.totalorder %v149_v46, %v4039_v26  ;;  %3309 = vmatprep.subr.bf16.mxu0 %v4062_v38  ;;  %v3037_v55 = vsel %vm164_vm9, 1.0, %v3875_v1 }
  0xc3   :  { %v3036_v51 = vsel %vm163_vm8, 1.0, %v3875_v1 }
  0xc4   :  { %3187 = vmatmul.mubr.msk.f32.gmra.mrb[2].mxu0 %vm187_vm3, %v3035_v44  ;;  %v158_v52 = vpop.permute.xlu1 %157 }
  0xc5   :  { %3189 = vmatprep.mubr.msk.f32.mxu0 %vm187_vm3, %v3036_v51  ;;  %v155_v53 = vpop.permute.xlu0 %154  ;;  %3311 = vmatpush1.bf16.msra.mxu0 %v4081_v47  ;;  %vm166_vm11 = vcmp.eq.s32.totalorder %v158_v52, %v4039_v26 }
  0xc6   :  { %vm165_vm10 = vcmp.eq.s32.totalorder %v155_v53, %v4039_v26  ;;  %3313 = vmatprep.subr.bf16.mxu0 %v4085_v48  ;;  %v3039_v57 = vsel %vm166_vm11, 1.0, %v3875_v1 }
  0xc7   :  { %v3038_v56 = vsel %vm165_vm10, 1.0, %v3875_v1 }
  0xc8   :  { %3190 = vmatmul.mubr.msk.f32.gmra.mrb[4].mxu0 %vm187_vm3, %v3037_v55 }
  0xc9   :  { %3192 = vmatprep.mubr.msk.f32.mxu0 %vm187_vm3, %v3038_v56  ;;  %3315 = vmatpush1.bf16.msra.mxu0 %v4098_v54 }
  0xca   :  { %3317 = vmatprep.subr.bf16.mxu0 %v4117_v60 }
  0xcc   :  { %3193 = vmatmul.mubr.msk.f32.gmra.mrb[6].mxu0 %vm187_vm3, %v3039_v57 }
  0xcd   :  { %538 = vmatprep.mubr.f32.mxu0 %v3875_v1  ;;  %3319 = vmatpush1.bf16.msra.mxu0 %v4125_v63 }
  0xce   :  { %3337 = vmatprep.subr.bf16.mxu0 %v4034_v18 }
  0xd0   :  { %539 = vmatmul.mubr.f32.vlgmr.msra.gmra.mrb[8].mxu0 %v3875_v1 }
  0xd1   :  { %3339 = vmatpush1.bf16.msra.mxu0 %v4057_v36  ;;  %805 = vmatprep.mubr.f32.mxu0 %v3875_v1 }
  0xd2   :  { %3341 = vmatprep.subr.bf16.mxu0 %v4062_v38 }
  0xd5   :  { %3343 = vmatpush1.bf16.msra.mxu0 %v4081_v47 }
  0xd6   :  { %3345 = vmatprep.subr.bf16.mxu0 %v4085_v48 }
  0xd9   :  { %3347 = vmatpush1.bf16.msra.mxu0 %v4098_v54 }
  0xda   :  { %3349 = vmatprep.subr.bf16.mxu0 %v4117_v60 }
  0xdd   :  { %3351 = vmatpush1.bf16.msra.mxu0 %v4125_v63 }
  0xde   :  { %3369 = vmatprep.subr.bf16.mxu0 %v4034_v18 }
 0x193   :  { %v3185_v0 = vpop.f32.mrb[0].mxu0 }
 0x194   :  { %v282_v2 = vpop.f32.mrb[1].mxu0 }
 0x195   :  { %3049 = vmatmul.mubr.msk.f32.vlgmr.msra.gmra.mrb[0].mxu1 %vm332_vm12, %v282_v2 }
 0x196   :  { %427 = vmatprep.mubr.f32.mxu1 %v3875_v1  ;;  %3323 = vmatpush1.bf16.msra.mxu1 %v4057_v36 }
 0x197   :  { %v3188_v3 = vpop.f32.mrb[2].mxu0  ;;  %3325 = vmatprep.subr.bf16.mxu1 %v4062_v38 }
 0x198   :  { %v292_v4 = vpop.f32.mrb[3].mxu0 }
 0x199   :  { %3050 = vmatmul.mubr.msk.f32.gmra.mrb[2].mxu1 %vm332_vm12, %v3185_v0 }
 0x19a   :  { %433 = vmatprep.mubr.f32.mxu1 %v3875_v1  ;;  %3327 = vmatpush1.bf16.msra.mxu1 %v4081_v47 }
 0x19b   :  { %v3191_v5 = vpop.f32.mrb[4].mxu0  ;;  %3329 = vmatprep.subr.bf16.mxu1 %v4085_v48 }
 0x19c   :  { %v302_v6 = vpop.f32.mrb[5].mxu0 }
 0x19d   :  { %3051 = vmatmul.mubr.msk.f32.gmra.mrb[4].mxu1 %vm332_vm12, %v292_v4 }
 0x19e   :  { %439 = vmatprep.mubr.f32.mxu1 %v3875_v1  ;;  %3331 = vmatpush1.bf16.msra.mxu1 %v4098_v54 }
 0x19f   :  { %v3194_v7 = vpop.f32.mrb[6].mxu0  ;;  %3333 = vmatprep.subr.bf16.mxu1 %v4117_v60 }
 0x1a0   :  { %v312_v8 = vpop.f32.mrb[7].mxu0 }
 0x1a1   :  { %3052 = vmatmul.mubr.msk.f32.gmra.mrb[6].mxu1 %vm332_vm12, %v3188_v3 }
 0x1a2   :  { %445 = vmatprep.mubr.f32.mxu1 %v3875_v1  ;;  %3335 = vmatpush1.bf16.msra.mxu1 %v4125_v63 }
 0x1a3   :  { %3353 = vmatprep.subr.bf16.mxu1 %v4034_v18  ;;  %v540_v9 = vpop.f32.mrb[8].mxu0 }
 0x1a4   :  { %v542_v10 = vpop.f32.mrb[9].mxu0 }
 0x1a5   :  { %3053 = vmatmul.mubr.msk.f32.gmra.mrb[8].mxu1 %vm332_vm12, %v302_v6 }
 0x1a6   :  { %451 = vmatprep.mubr.f32.mxu1 %v3875_v1 }
 0x1a9   :  { %3054 = vmatmul.mubr.msk.f32.gmra.mrb[10].mxu1 %vm332_vm12, %v3191_v5 }
 0x1aa   :  { %457 = vmatprep.mubr.f32.mxu1 %v3875_v1 }
 0x1ad   :  { %3055 = vmatmul.mubr.msk.f32.gmra.mrb[12].mxu1 %vm332_vm12, %v312_v8 }
 0x1ae   :  { %463 = vmatprep.mubr.f32.mxu1 %v3875_v1 }
 0x1b1   :  { %3056 = vmatmul.mubr.msk.f32.gmra.mrb[14].mxu1 %vm332_vm12, %v3194_v7 }
 0x1b2   :  { %672 = vmatprep.mubr.f32.mxu1 %v3875_v1 }
 0x268   :  { %v423_v17 = vpop.f32.mrb[0].mxu1 }
 0x269   :  { %v424_v19 = vadd.f32 %v423_v17, %v325_v15  ;;  %v425_v20 = vpop.f32.mrb[1].mxu1 }
 0x26a   :  { %v4173_v21 = vadd.f32 %v425_v20, %v329_v16 }
 0x26b   :  { %v545_v22 = vadd.f32 %v540_v9, %v424_v19 }
 0x26c   :  { %v429_v23 = vpop.f32.mrb[2].mxu1 }
 0x26d   :  { %3563 = vtanh.f32 %v545_v22  ;;  %v4175_v24 = vadd.f32 %v429_v23, %v325_v15  ;;  %v431_v25 = vpop.f32.mrb[3].mxu1  ;;  %v3057_v61 = vmul.f32 -1.442695, %v545_v22 }
 0x26e   :  { %v4177_v27 = vadd.f32 %v431_v25, %v329_v16 }
 0x270   :  { %v435_v28 = vpop.f32.mrb[4].mxu1 }
 0x271   :  { %v4179_v29 = vadd.f32 %v435_v28, %v325_v15  ;;  %v437_v30 = vpop.f32.mrb[5].mxu1 }
 0x272   :  { %v4181_v31 = vadd.f32 %v437_v30, %v329_v16 }
 0x274   :  { %v441_v32 = vpop.f32.mrb[6].mxu1 }
 0x275   :  { %v4183_v33 = vadd.f32 %v441_v32, %v325_v15  ;;  %v443_v34 = vpop.f32.mrb[7].mxu1 }
 0x276   :  { %v4185_v35 = vadd.f32 %v443_v34, %v329_v16 }
 0x277   :  { %v3564_v37 = vpop.eup %3563 }
 0x278   :  { %v447_v39 = vpop.f32.mrb[8].mxu1  ;;  %555 = vrot.lane.b32.xlu0 %v3564_v37, %s3877_s4 }
 0x279   :  { %v4188_v40 = vadd.f32 %v447_v39, %v325_v15  ;;  %v449_v41 = vpop.f32.mrb[9].mxu1 }
 0x27a   :  { %v4190_v42 = vadd.f32 %v449_v41, %v329_v16 }
 0x27c   :  { %v453_v43 = vpop.f32.mrb[10].mxu1 }
 0x27d   :  { %v4192_v44 = vadd.f32 %v453_v43, %v325_v15  ;;  %v455_v45 = vpop.f32.mrb[11].mxu1 }
 0x27e   :  { %v4194_v46 = vadd.f32 %v455_v45, %v329_v16 }
 0x280   :  { %v459_v49 = vpop.f32.mrb[12].mxu1 }
 0x281   :  { %v4196_v50 = vadd.f32 %v459_v49, %v325_v15  ;;  %v461_v51 = vpop.f32.mrb[13].mxu1 }
 0x282   :  { %v4198_v52 = vadd.f32 %v461_v51, %v329_v16 }
 0x284   :  { %v465_v53 = vpop.f32.mrb[14].mxu1 }
 0x285   :  { %v4200_v55 = vadd.f32 %v465_v53, %v325_v15  ;;  %v467_v56 = vpop.f32.mrb[15].mxu1 }
 0x286   :  { %v468_v57 = vadd.f32 %v467_v56, %v329_v16 }
 0x288   :  { %v570_v58 = vadd.f32 %v542_v10, %v468_v57 }
 0x28a   :  { %3565 = vtanh.f32 %v570_v58  ;;  %v3058_v2 = vmul.f32 -1.442695, %v570_v58 }
 0x28b   :  { %3567 = vpow2.f32 %v3057_v61 }
 0x294   :  { %v3566_v59 = vpop.eup %3565 }
 0x295   :  { %580 = vrot.lane.b32.xlu1 %v3566_v59, %s3877_s4  ;;  %v3568_v62 = vpop.eup %3567 }
 0x296   :  { %v549_v0 = vadd.f32 1.0, %v3568_v62 }
 0x298   :  { %3569 = vrcp.f32 %v549_v0 }
 0x299   :  { %3571 = vpow2.f32 %v3058_v2 }
 0x2a2   :  { %v3570_v3 = vpop.eup %3569 }
 0x2a3   :  { %v3572_v6 = vpop.eup %3571  ;;  %v553_v13 = vmul.f32 0.0, %v3570_v3 }
 0x2a4   :  { %v574_v7 = vadd.f32 1.0, %v3572_v6 }
 0x2a6   :  { %3573 = vrcp.f32 %v574_v7 }
 0x2b0   :  { %v3574_v8 = vpop.eup %3573 }
 0x2b1   :  { %v578_v19 = vmul.f32 0.0, %v3574_v8 }
 0x2ea   :  { %v556_v4 = vpop.permute.xlu0 %555 }
 0x2eb   :  { %v558_v5 = vmul.f32 %v3570_v3, %v556_v4 }
 0x2ed   :  { %560 = vrot.lane.b32.xlu0 %v558_v5, %s3878_s13 }
 0x307   :  { %v581_v9 = vpop.permute.xlu1 %580 }
 0x308   :  { %v583_v10 = vmul.f32 %v3574_v8, %v581_v9 }
 0x30a   :  { %585 = vrot.lane.b32.xlu1 %v583_v10, %s3878_s13 }
 0x35f   :  { %v561_v15 = vpop.permute.xlu0 %560 }
 0x360   :  { %v563_v16 = vadd.f32 %v561_v15, %v553_v13 }
 0x362   :  { %3575 = vtanh.f32 %v563_v16 }
 0x36c   :  { %v3576_v17 = vpop.eup %3575 }
 0x36d   :  { %566 = vrot.lane.b32.xlu0 %v3576_v17, %s3877_s4 }
 0x37c   :  { %v586_v20 = vpop.permute.xlu1 %585 }
 0x37d   :  { %v588_v22 = vadd.f32 %v586_v20, %v578_v19 }
 0x37f   :  { %3577 = vtanh.f32 %v588_v22 }
 0x389   :  { %v3578_v23 = vpop.eup %3577 }
 0x38a   :  { %591 = vrot.lane.b32.xlu1 %v3578_v23, %s3877_s4 }
 0x3df   :  { %v567_v25 = vpop.permute.xlu0 %566 }
 0x3e0   :  { %v569_v28 = vmul.f32 %v3570_v3, %v567_v25 }
 0x3e2   :  { %596 = vrot.lane.b32.xlu0 %v569_v28, %s3878_s13 }
 0x3fc   :  { %v592_v30 = vpop.permute.xlu1 %591 }
 0x3fd   :  { %v594_v32 = vmul.f32 %v3574_v8, %v592_v30 }
 0x3ff   :  { %600 = vrot.lane.b32.xlu1 %v594_v32, %s3877_s4 }
 0x454   :  { %v4209_v34 = vpop.permute.xlu0 %596 }
 0x471   :  { %v4211_v37 = vpop.permute.xlu1 %600 }
 0x472   :  { %v604_v39 = vsel %vm4970_vm13, %v4209_v34, %v4211_v37 }
 0x473   :  { %3059 = vmatmul.mubr.msk.f32.vlgmr.msra.gmra.mrb[16].mxu1 %vm4971_vm14, %v604_v39 }
 0x474   :  { %3355 = vmatpush1.bf16.msra.mxu1 %v4057_v36  ;;  %938 = vmatprep.mubr.f32.mxu1 %v3875_v1 }
 0x475   :  { %3357 = vmatprep.subr.bf16.mxu1 %v4062_v38 }
 0x478   :  { %3359 = vmatpush1.bf16.msra.mxu1 %v4081_v47 }
 0x479   :  { %3361 = vmatprep.subr.bf16.mxu1 %v4085_v48 }
 0x47c   :  { %3363 = vmatpush1.bf16.msra.mxu1 %v4098_v54 }
 0x47d   :  { %3365 = vmatprep.subr.bf16.mxu1 %v4117_v60 }
 0x480   :  { %3367 = vmatpush1.bf16.msra.mxu1 %v4125_v63 }
 0x481   :  { %3385 = vmatprep.subr.bf16.mxu1 %v4034_v18 }
 0x546   :  { %v674_v41 = vpop.f32.mrb[16].mxu1 }
 0x547   :  { %v679_v43 = vadd.f32 %v674_v41, %v4175_v24  ;;  %v676_v45 = vpop.f32.mrb[17].mxu1 }
 0x548   :  { %v704_v49 = vadd.f32 %v676_v45, %v4198_v52 }
 0x549   :  { %3579 = vtanh.f32 %v679_v43  ;;  %v3060_v56 = vmul.f32 -1.442695, %v679_v43 }
 0x54a   :  { %3581 = vtanh.f32 %v704_v49  ;;  %v3061_v57 = vmul.f32 -1.442695, %v704_v49 }
 0x54b   :  { %3583 = vpow2.f32 %v3060_v56 }
 0x54c   :  { %3585 = vpow2.f32 %v3061_v57 }
 0x553   :  { %v3580_v51 = vpop.eup %3579 }
 0x554   :  { %v3582_v53 = vpop.eup %3581  ;;  %689 = vrot.lane.b32.xlu0 %v3580_v51, %s3877_s4 }
 0x555   :  { %714 = vrot.lane.b32.xlu1 %v3582_v53, %s3877_s4  ;;  %v3584_v58 = vpop.eup %3583 }
 0x556   :  { %v3586_v59 = vpop.eup %3585  ;;  %v683_v61 = vadd.f32 1.0, %v3584_v58 }
 0x557   :  { %v708_v62 = vadd.f32 1.0, %v3586_v59 }
 0x558   :  { %3587 = vrcp.f32 %v683_v61 }
 0x559   :  { %3589 = vrcp.f32 %v708_v62 }
 0x562   :  { %v3588_v24 = vpop.eup %3587 }
 0x563   :  { %v3590_v0 = vpop.eup %3589  ;;  %v687_v5 = vmul.f32 %v3588_v24, %v563_v16 }
 0x564   :  { %v712_v7 = vmul.f32 %v3590_v0, %v588_v22 }
 0x5c6   :  { %v690_v52 = vpop.permute.xlu0 %689 }
 0x5c7   :  { %v692_v2 = vmul.f32 %v3588_v24, %v690_v52  ;;  %v715_v3 = vpop.permute.xlu1 %714 }
 0x5c8   :  { %v717_v4 = vmul.f32 %v3590_v0, %v715_v3 }
 0x5c9   :  { %694 = vrot.lane.b32.xlu0 %v692_v2, %s3878_s13 }
 0x5ca   :  { %719 = vrot.lane.b32.xlu1 %v717_v4, %s3878_s13 }
 0x63b   :  { %v695_v6 = vpop.permute.xlu0 %694 }
 0x63c   :  { %v697_v8 = vadd.f32 %v695_v6, %v687_v5  ;;  %v720_v9 = vpop.permute.xlu1 %719 }
 0x63d   :  { %v722_v10 = vadd.f32 %v720_v9, %v712_v7 }
 0x63e   :  { %3591 = vtanh.f32 %v697_v8 }
 0x63f   :  { %3593 = vtanh.f32 %v722_v10 }
 0x648   :  { %v3592_v13 = vpop.eup %3591 }
 0x649   :  { %v3594_v15 = vpop.eup %3593  ;;  %700 = vrot.lane.b32.xlu0 %v3592_v13, %s3877_s4 }
 0x64a   :  { %725 = vrot.lane.b32.xlu1 %v3594_v15, %s3877_s4 }
 0x6bb   :  { %v701_v17 = vpop.permute.xlu0 %700 }
 0x6bc   :  { %v703_v19 = vmul.f32 %v3588_v24, %v701_v17  ;;  %v726_v20 = vpop.permute.xlu1 %725 }
 0x6bd   :  { %v728_v23 = vmul.f32 %v3590_v0, %v726_v20 }
 0x6be   :  { %730 = vrot.lane.b32.xlu0 %v703_v19, %s3878_s13 }
 0x6bf   :  { %734 = vrot.lane.b32.xlu1 %v728_v23, %s3877_s4 }
 0x730   :  { %v4236_v16 = vpop.permute.xlu0 %730 }
 0x731   :  { %v4238_v22 = vpop.permute.xlu1 %734 }
 0x732   :  { %v737_v25 = vsel %vm4970_vm13, %v4236_v16, %v4238_v22 }
 0x733   :  { %3062 = vmatmul.mubr.msk.f32.vlgmr.msra.gmra.mrb[10].mxu0 %vm4971_vm14, %v737_v25 }
 0x734   :  { %3371 = vmatpush1.bf16.msra.mxu0 %v4057_v36  ;;  %1071 = vmatprep.mubr.f32.mxu0 %v3875_v1 }
 0x735   :  { %3373 = vmatprep.subr.bf16.mxu0 %v4062_v38 }
 0x738   :  { %3375 = vmatpush1.bf16.msra.mxu0 %v4081_v47 }
 0x739   :  { %3377 = vmatprep.subr.bf16.mxu0 %v4085_v48 }
 0x73c   :  { %3379 = vmatpush1.bf16.msra.mxu0 %v4098_v54 }
 0x73d   :  { %3381 = vmatprep.subr.bf16.mxu0 %v4117_v60 }
 0x740   :  { %3383 = vmatpush1.bf16.msra.mxu0 %v4125_v63 }
 0x741   :  { %3401 = vmatprep.subr.bf16.mxu0 %v4034_v18 }
 0x806   :  { %v807_v28 = vpop.f32.mrb[10].mxu0 }
 0x807   :  { %v812_v30 = vadd.f32 %v807_v28, %v4179_v29  ;;  %v809_v32 = vpop.f32.mrb[11].mxu0 }
 0x808   :  { %v837_v39 = vadd.f32 %v809_v32, %v4194_v46 }
 0x809   :  { %3595 = vtanh.f32 %v812_v30  ;;  %v3063_v45 = vmul.f32 -1.442695, %v812_v30 }
 0x80a   :  { %3597 = vtanh.f32 %v837_v39  ;;  %v3064_v49 = vmul.f32 -1.442695, %v837_v39 }
 0x80b   :  { %3599 = vpow2.f32 %v3063_v45 }
 0x80c   :  { %3601 = vpow2.f32 %v3064_v49 }
 0x813   :  { %v3596_v41 = vpop.eup %3595 }
 0x814   :  { %v3598_v43 = vpop.eup %3597  ;;  %822 = vrot.lane.b32.xlu0 %v3596_v41, %s3877_s4 }
 0x815   :  { %847 = vrot.lane.b32.xlu1 %v3598_v43, %s3877_s4  ;;  %v3600_v51 = vpop.eup %3599 }
 0x816   :  { %v3602_v53 = vpop.eup %3601  ;;  %v816_v56 = vadd.f32 1.0, %v3600_v51 }
 0x817   :  { %v841_v57 = vadd.f32 1.0, %v3602_v53 }
 0x818   :  { %3603 = vrcp.f32 %v816_v56 }
 0x819   :  { %3605 = vrcp.f32 %v841_v57 }
 0x822   :  { %v3604_v29 = vpop.eup %3603 }
 0x823   :  { %v3606_v58 = vpop.eup %3605  ;;  %v820_v24 = vmul.f32 %v3604_v29, %v697_v8 }
 0x824   :  { %v845_v0 = vmul.f32 %v3606_v58, %v722_v10 }
 0x886   :  { %v823_v46 = vpop.permute.xlu0 %822 }
 0x887   :  { %v825_v59 = vmul.f32 %v3604_v29, %v823_v46  ;;  %v848_v61 = vpop.permute.xlu1 %847 }
 0x888   :  { %v850_v62 = vmul.f32 %v3606_v58, %v848_v61 }
 0x889   :  { %827 = vrot.lane.b32.xlu0 %v825_v59, %s3878_s13 }
 0x88a   :  { %852 = vrot.lane.b32.xlu1 %v850_v62, %s3878_s13 }
 0x8fb   :  { %v828_v52 = vpop.permute.xlu0 %827 }
 0x8fc   :  { %v830_v2 = vadd.f32 %v828_v52, %v820_v24  ;;  %v853_v3 = vpop.permute.xlu1 %852 }
 0x8fd   :  { %v855_v4 = vadd.f32 %v853_v3, %v845_v0 }
 0x8fe   :  { %3607 = vtanh.f32 %v830_v2 }
 0x8ff   :  { %3609 = vtanh.f32 %v855_v4 }
 0x908   :  { %v3608_v5 = vpop.eup %3607 }
 0x909   :  { %v3610_v6 = vpop.eup %3609  ;;  %833 = vrot.lane.b32.xlu0 %v3608_v5, %s3877_s4 }
 0x90a   :  { %858 = vrot.lane.b32.xlu1 %v3610_v6, %s3877_s4 }
 0x97b   :  { %v834_v7 = vpop.permute.xlu0 %833 }
 0x97c   :  { %v836_v9 = vmul.f32 %v3604_v29, %v834_v7  ;;  %v859_v13 = vpop.permute.xlu1 %858 }
 0x97d   :  { %v861_v15 = vmul.f32 %v3606_v58, %v859_v13 }
 0x97e   :  { %863 = vrot.lane.b32.xlu0 %v836_v9, %s3878_s13 }
 0x97f   :  { %867 = vrot.lane.b32.xlu1 %v861_v15, %s3877_s4 }
 0x9f0   :  { %v4263_v8 = vpop.permute.xlu0 %863 }
 0x9f1   :  { %v4265_v10 = vpop.permute.xlu1 %867 }
 0x9f2   :  { %v870_v17 = vsel %vm4970_vm13, %v4263_v8, %v4265_v10 }
 0x9f3   :  { %3065 = vmatmul.mubr.msk.f32.vlgmr.msra.gmra.mrb[18].mxu1 %vm4971_vm14, %v870_v17 }
 0x9f4   :  { %3387 = vmatpush1.bf16.msra.mxu1 %v4057_v36  ;;  %1204 = vmatprep.mubr.f32.mxu1 %v3875_v1 }
 0x9f5   :  { %3389 = vmatprep.subr.bf16.mxu1 %v4062_v38 }
 0x9f8   :  { %3391 = vmatpush1.bf16.msra.mxu1 %v4081_v47 }
 0x9f9   :  { %3393 = vmatprep.subr.bf16.mxu1 %v4085_v48 }
 0x9fc   :  { %3395 = vmatpush1.bf16.msra.mxu1 %v4098_v54 }
 0x9fd   :  { %3397 = vmatprep.subr.bf16.mxu1 %v4117_v60 }
 0xa00   :  { %3399 = vmatpush1.bf16.msra.mxu1 %v4125_v63 }
 0xa01   :  { %3417 = vmatprep.subr.bf16.mxu1 %v4034_v18 }
 0xac6   :  { %v940_v19 = vpop.f32.mrb[18].mxu1 }
 0xac7   :  { %v945_v20 = vadd.f32 %v940_v19, %v4183_v33  ;;  %v942_v23 = vpop.f32.mrb[19].mxu1 }
 0xac8   :  { %v970_v25 = vadd.f32 %v942_v23, %v4190_v42 }
 0xac9   :  { %3611 = vtanh.f32 %v945_v20  ;;  %v3066_v32 = vmul.f32 -1.442695, %v945_v20 }
 0xaca   :  { %3613 = vtanh.f32 %v970_v25  ;;  %v3067_v39 = vmul.f32 -1.442695, %v970_v25 }
 0xacb   :  { %3615 = vpow2.f32 %v3066_v32 }
 0xacc   :  { %3617 = vpow2.f32 %v3067_v39 }
 0xad3   :  { %v3612_v28 = vpop.eup %3611 }
 0xad4   :  { %v3614_v30 = vpop.eup %3613  ;;  %955 = vrot.lane.b32.xlu0 %v3612_v28, %s3877_s4 }
 0xad5   :  { %980 = vrot.lane.b32.xlu1 %v3614_v30, %s3877_s4  ;;  %v3616_v41 = vpop.eup %3615 }
 0xad6   :  { %v3618_v18 = vpop.eup %3617  ;;  %v949_v43 = vadd.f32 1.0, %v3616_v41 }
 0xad7   :  { %v974_v45 = vadd.f32 1.0, %v3618_v18 }
 0xad8   :  { %3619 = vrcp.f32 %v949_v43 }
 0xad9   :  { %3621 = vrcp.f32 %v974_v45 }
 0xae2   :  { %v3620_v33 = vpop.eup %3619 }
 0xae3   :  { %v3622_v49 = vpop.eup %3621  ;;  %v953_v57 = vmul.f32 %v3620_v33, %v830_v2 }
 0xae4   :  { %v978_v46 = vmul.f32 %v3622_v49, %v855_v4 }
 0xb46   :  { %v956_v42 = vpop.permute.xlu0 %955 }
 0xb47   :  { %v958_v51 = vmul.f32 %v3620_v33, %v956_v42  ;;  %v981_v53 = vpop.permute.xlu1 %980 }
 0xb48   :  { %v983_v56 = vmul.f32 %v3622_v49, %v981_v53 }
 0xb49   :  { %960 = vrot.lane.b32.xlu0 %v958_v51, %s3878_s13 }
 0xb4a   :  { %985 = vrot.lane.b32.xlu1 %v983_v56, %s3878_s13 }
 0xbbb   :  { %v961_v29 = vpop.permute.xlu0 %960 }
 0xbbc   :  { %v963_v58 = vadd.f32 %v961_v29, %v953_v57  ;;  %v986_v59 = vpop.permute.xlu1 %985 }
 0xbbd   :  { %v988_v61 = vadd.f32 %v986_v59, %v978_v46 }
 0xbbe   :  { %3623 = vtanh.f32 %v963_v58 }
 0xbbf   :  { %3625 = vtanh.f32 %v988_v61 }
 0xbc8   :  { %v3624_v62 = vpop.eup %3623 }
 0xbc9   :  { %v3626_v24 = vpop.eup %3625  ;;  %966 = vrot.lane.b32.xlu0 %v3624_v62, %s3877_s4 }
 0xbca   :  { %991 = vrot.lane.b32.xlu1 %v3626_v24, %s3877_s4 }
 0xc3b   :  { %v967_v52 = vpop.permute.xlu0 %966 }
 0xc3c   :  { %v969_v0 = vmul.f32 %v3620_v33, %v967_v52  ;;  %v992_v3 = vpop.permute.xlu1 %991 }
 0xc3d   :  { %v994_v5 = vmul.f32 %v3622_v49, %v992_v3 }
 0xc3e   :  { %996 = vrot.lane.b32.xlu0 %v969_v0, %s3878_s13 }
 0xc3f   :  { %1000 = vrot.lane.b32.xlu1 %v994_v5, %s3877_s4 }
 0xcb0   :  { %v4290_v2 = vpop.permute.xlu0 %996 }
 0xcb1   :  { %v4292_v4 = vpop.permute.xlu1 %1000 }
 0xcb2   :  { %v1003_v6 = vsel %vm4970_vm13, %v4290_v2, %v4292_v4 }
 0xcb3   :  { %3068 = vmatmul.mubr.msk.f32.vlgmr.msra.gmra.mrb[12].mxu0 %vm4971_vm14, %v1003_v6 }
 0xcb4   :  { %3403 = vmatpush1.bf16.msra.mxu0 %v4057_v36  ;;  %1337 = vmatprep.mubr.f32.mxu0 %v3875_v1 }
 0xcb5   :  { %3405 = vmatprep.subr.bf16.mxu0 %v4062_v38 }
 0xcb8   :  { %3407 = vmatpush1.bf16.msra.mxu0 %v4081_v47 }
 0xcb9   :  { %3409 = vmatprep.subr.bf16.mxu0 %v4085_v48 }
 0xcbc   :  { %3411 = vmatpush1.bf16.msra.mxu0 %v4098_v54 }
 0xcbd   :  { %3413 = vmatprep.subr.bf16.mxu0 %v4117_v60 }
 0xcc0   :  { %3415 = vmatpush1.bf16.msra.mxu0 %v4125_v63 }
 0xd86   :  { %v1073_v7 = vpop.f32.mrb[12].mxu0 }
 0xd87   :  { %v1078_v9 = vadd.f32 %v1073_v7, %v4188_v40  ;;  %v1075_v13 = vpop.f32.mrb[13].mxu0 }
 0xd88   :  { %v1103_v15 = vadd.f32 %v1075_v13, %v4185_v35 }
 0xd89   :  { %3627 = vtanh.f32 %v1078_v9  ;;  %v3069_v20 = vmul.f32 -1.442695, %v1078_v9 }
 0xd8a   :  { %3629 = vtanh.f32 %v1103_v15  ;;  %v3070_v23 = vmul.f32 -1.442695, %v1103_v15 }
 0xd8b   :  { %3631 = vpow2.f32 %v3069_v20 }
 0xd8c   :  { %3633 = vpow2.f32 %v3070_v23 }
 0xd93   :  { %v3628_v17 = vpop.eup %3627 }
 0xd94   :  { %v3630_v19 = vpop.eup %3629  ;;  %1088 = vrot.lane.b32.xlu0 %v3628_v17, %s3877_s4 }
 0xd95   :  { %1113 = vrot.lane.b32.xlu1 %v3630_v19, %s3877_s4  ;;  %v3632_v25 = vpop.eup %3631 }
 0xd96   :  { %v3634_v28 = vpop.eup %3633  ;;  %v1082_v30 = vadd.f32 1.0, %v3632_v25 }
 0xd97   :  { %v1107_v32 = vadd.f32 1.0, %v3634_v28 }
 0xd98   :  { %3635 = vrcp.f32 %v1082_v30 }
 0xd99   :  { %3637 = vrcp.f32 %v1107_v32 }
 0xda2   :  { %v3636_v40 = vpop.eup %3635 }
 0xda3   :  { %v3638_v39 = vpop.eup %3637  ;;  %v1086_v45 = vmul.f32 %v3636_v40, %v963_v58 }
 0xda4   :  { %v1111_v42 = vmul.f32 %v3638_v39, %v988_v61 }
 0xe06   :  { %v1089_v35 = vpop.permute.xlu0 %1088 }
 0xe07   :  { %v1091_v41 = vmul.f32 %v3636_v40, %v1089_v35  ;;  %v1114_v18 = vpop.permute.xlu1 %1113 }
 0xe08   :  { %v1116_v43 = vmul.f32 %v3638_v39, %v1114_v18 }
 0xe09   :  { %1093 = vrot.lane.b32.xlu0 %v1091_v41, %s3878_s13 }
 0xe0a   :  { %1118 = vrot.lane.b32.xlu1 %v1116_v43, %s3878_s13 }
 0xe7b   :  { %v1094_v33 = vpop.permute.xlu0 %1093 }
 0xe7c   :  { %v1096_v49 = vadd.f32 %v1094_v33, %v1086_v45  ;;  %v1119_v51 = vpop.permute.xlu1 %1118 }
 0xe7d   :  { %v1121_v53 = vadd.f32 %v1119_v51, %v1111_v42 }
 0xe7e   :  { %3639 = vtanh.f32 %v1096_v49 }
 0xe7f   :  { %3641 = vtanh.f32 %v1121_v53 }
 0xe88   :  { %v3640_v56 = vpop.eup %3639 }
 0xe89   :  { %v3642_v57 = vpop.eup %3641  ;;  %1099 = vrot.lane.b32.xlu0 %v3640_v56, %s3877_s4 }
 0xe8a   :  { %1124 = vrot.lane.b32.xlu1 %v3642_v57, %s3877_s4 }
 0xefb   :  { %v1100_v29 = vpop.permute.xlu0 %1099 }
 0xefc   :  { %v1102_v46 = vmul.f32 %v3636_v40, %v1100_v29  ;;  %v1125_v59 = vpop.permute.xlu1 %1124 }
 0xefd   :  { %v1127_v62 = vmul.f32 %v3638_v39, %v1125_v59 }
 0xefe   :  { %1129 = vrot.lane.b32.xlu0 %v1102_v46, %s3878_s13 }
 0xeff   :  { %1133 = vrot.lane.b32.xlu1 %v1127_v62, %s3877_s4 }
 0xf70   :  { %v4316_v58 = vpop.permute.xlu0 %1129 }
 0xf71   :  { %v4318_v61 = vpop.permute.xlu1 %1133 }
 0xf72   :  { %v1136_v24 = vsel %vm4970_vm13, %v4316_v58, %v4318_v61 }
 0xf73   :  { %3071 = vmatmul.mubr.msk.f32.vlgmr.msra.gmra.mrb[20].mxu1 %vm4971_vm14, %v1136_v24 }
 0xf74   :  { %3419 = vmatpush1.bf16.msra.mxu1 %v4057_v36  ;;  %1470 = vmatprep.mubr.f32.mxu1 %v3875_v1 }
 0xf75   :  { %3421 = vmatprep.subr.bf16.mxu1 %v4062_v38 }
 0xf78   :  { %3423 = vmatpush1.bf16.msra.mxu1 %v4081_v47 }
 0xf79   :  { %3425 = vmatprep.subr.bf16.mxu1 %v4085_v48 }
 0xf7c   :  { %3427 = vmatpush1.bf16.msra.mxu1 %v4098_v54 }
 0xf7d   :  { %3429 = vmatprep.subr.bf16.mxu1 %v4117_v60 }
 0xf80   :  { %3431 = vmatpush1.bf16.msra.mxu1 %v4125_v63 }
0x1046   :  { %v1206_v52 = vpop.f32.mrb[20].mxu1 }
0x1047   :  { %v1211_v0 = vadd.f32 %v1206_v52, %v4192_v44  ;;  %v1208_v3 = vpop.f32.mrb[21].mxu1 }
0x1048   :  { %v1236_v36 = vadd.f32 %v1208_v3, %v4181_v31 }
0x1049   :  { %3643 = vtanh.f32 %v1211_v0  ;;  %v3072_v47 = vmul.f32 -1.442695, %v1211_v0 }
0x104a   :  { %3645 = vtanh.f32 %v1236_v36  ;;  %v3073_v48 = vmul.f32 -1.442695, %v1236_v36 }
0x104b   :  { %3647 = vpow2.f32 %v3072_v47 }
0x104c   :  { %3649 = vpow2.f32 %v3073_v48 }
0x1053   :  { %v3644_v5 = vpop.eup %3643 }
0x1054   :  { %v3646_v38 = vpop.eup %3645  ;;  %1221 = vrot.lane.b32.xlu0 %v3644_v5, %s3877_s4 }
0x1055   :  { %1246 = vrot.lane.b32.xlu1 %v3646_v38, %s3877_s4  ;;  %v3648_v54 = vpop.eup %3647 }
0x1056   :  { %v3650_v60 = vpop.eup %3649  ;;  %v1215_v63 = vadd.f32 1.0, %v3648_v54 }
0x1057   :  { %v1240_v6 = vadd.f32 1.0, %v3650_v60 }
0x1058   :  { %3651 = vrcp.f32 %v1215_v63 }
0x1059   :  { %3653 = vrcp.f32 %v1240_v6 }
0x1062   :  { %v3652_v44 = vpop.eup %3651 }
0x1063   :  { %v3654_v7 = vpop.eup %3653  ;;  %v1219_v17 = vmul.f32 %v3652_v44, %v1096_v49 }
0x1064   :  { %v1244_v20 = vmul.f32 %v3654_v7, %v1121_v53 }
0x10c6   :  { %v1222_v31 = vpop.permute.xlu0 %1221 }
0x10c7   :  { %v1224_v9 = vmul.f32 %v3652_v44, %v1222_v31  ;;  %v1247_v13 = vpop.permute.xlu1 %1246 }
0x10c8   :  { %v1249_v15 = vmul.f32 %v3654_v7, %v1247_v13 }
0x10c9   :  { %1226 = vrot.lane.b32.xlu0 %v1224_v9, %s3878_s13 }
0x10ca   :  { %1251 = vrot.lane.b32.xlu1 %v1249_v15, %s3878_s13 }
0x113b   :  { %v1227_v19 = vpop.permute.xlu0 %1226 }
0x113c   :  { %v1229_v23 = vadd.f32 %v1227_v19, %v1219_v17  ;;  %v1252_v25 = vpop.permute.xlu1 %1251 }
0x113d   :  { %v1254_v28 = vadd.f32 %v1252_v25, %v1244_v20 }
0x113e   :  { %3655 = vtanh.f32 %v1229_v23 }
0x113f   :  { %3657 = vtanh.f32 %v1254_v28 }
0x1148   :  { %v3656_v30 = vpop.eup %3655 }
0x1149   :  { %v3658_v32 = vpop.eup %3657  ;;  %1232 = vrot.lane.b32.xlu0 %v3656_v30, %s3877_s4 }
0x114a   :  { %1257 = vrot.lane.b32.xlu1 %v3658_v32, %s3877_s4 }
0x11bb   :  { %v1233_v40 = vpop.permute.xlu0 %1232 }
0x11bc   :  { %v1235_v35 = vmul.f32 %v3652_v44, %v1233_v40  ;;  %v1258_v39 = vpop.permute.xlu1 %1257 }
0x11bd   :  { %v1260_v41 = vmul.f32 %v3654_v7, %v1258_v39 }
0x11be   :  { %1262 = vrot.lane.b32.xlu0 %v1235_v35, %s3878_s13 }
0x11bf   :  { %1266 = vrot.lane.b32.xlu1 %v1260_v41, %s3877_s4 }
0x1230   :  { %v4342_v18 = vpop.permute.xlu0 %1262 }
0x1231   :  { %v4344_v43 = vpop.permute.xlu1 %1266 }
0x1232   :  { %v1269_v45 = vsel %vm4970_vm13, %v4342_v18, %v4344_v43 }
0x1233   :  { %3074 = vmatmul.mubr.msk.f32.vlgmr.msra.gmra.mrb[14].mxu0 %vm4971_vm14, %v1269_v45 }
0x1306   :  { %v1339_v33 = vpop.f32.mrb[14].mxu0 }
0x1307   :  { %v1344_v42 = vadd.f32 %v1339_v33, %v4196_v50  ;;  %v1341_v49 = vpop.f32.mrb[15].mxu0 }
0x1308   :  { %v1369_v51 = vadd.f32 %v1341_v49, %v4177_v27 }
0x1309   :  { %3659 = vtanh.f32 %v1344_v42  ;;  %v3075_v57 = vmul.f32 -1.442695, %v1344_v42 }
0x130a   :  { %3661 = vtanh.f32 %v1369_v51  ;;  %v3076_v29 = vmul.f32 -1.442695, %v1369_v51 }
0x130b   :  { %3663 = vpow2.f32 %v3075_v57 }
0x130c   :  { %3665 = vpow2.f32 %v3076_v29 }
0x1313   :  { %v3660_v53 = vpop.eup %3659 }
0x1314   :  { %v3662_v56 = vpop.eup %3661  ;;  %1354 = vrot.lane.b32.xlu0 %v3660_v53, %s3877_s4 }
0x1315   :  { %1379 = vrot.lane.b32.xlu1 %v3662_v56, %s3877_s4  ;;  %v3664_v46 = vpop.eup %3663 }
0x1316   :  { %v3666_v59 = vpop.eup %3665  ;;  %v1348_v62 = vadd.f32 1.0, %v3664_v46 }
0x1317   :  { %v1373_v24 = vadd.f32 1.0, %v3666_v59 }
0x1318   :  { %3667 = vrcp.f32 %v1348_v62 }
0x1319   :  { %3669 = vrcp.f32 %v1373_v24 }
0x1322   :  { %v3668_v50 = vpop.eup %3667 }
0x1323   :  { %v3670_v52 = vpop.eup %3669  ;;  %v1352_v5 = vmul.f32 %v3668_v50, %v1229_v23 }
0x1324   :  { %v1377_v47 = vmul.f32 %v3670_v52, %v1254_v28 }
0x1386   :  { %v1355_v27 = vpop.permute.xlu0 %1354 }
0x1387   :  { %v1357_v0 = vmul.f32 %v3668_v50, %v1355_v27  ;;  %v1380_v3 = vpop.permute.xlu1 %1379 }
0x1388   :  { %v1382_v36 = vmul.f32 %v3670_v52, %v1380_v3 }
0x1389   :  { %1359 = vrot.lane.b32.xlu0 %v1357_v0, %s3878_s13 }
0x138a   :  { %1384 = vrot.lane.b32.xlu1 %v1382_v36, %s3878_s13 }
0x13fb   :  { %v1360_v38 = vpop.permute.xlu0 %1359 }
0x13fc   :  { %v1362_v48 = vadd.f32 %v1360_v38, %v1352_v5  ;;  %v1385_v54 = vpop.permute.xlu1 %1384  ;;  %v1533_v5 = vsel %vm4970_vm13, %v4263_v8, %v4344_v43 }
0x13fd   :  { %v1387_v60 = vadd.f32 %v1385_v54, %v1377_v47 }
0x13fe   :  { %3671 = vtanh.f32 %v1362_v48 }
0x13ff   :  { %3673 = vtanh.f32 %v1387_v60 }
0x1408   :  { %v3672_v63 = vpop.eup %3671 }
0x1409   :  { %v3674_v6 = vpop.eup %3673  ;;  %1365 = vrot.lane.b32.xlu0 %v3672_v63, %s3877_s4 }
0x140a   :  { %1390 = vrot.lane.b32.xlu1 %v3674_v6, %s3877_s4  ;;  %v1684_v6 = vadd.s32 24, %v4165_v11 }
0x147b   :  { %v1366_v44 = vpop.permute.xlu0 %1365 }
0x147c   :  { %v1368_v31 = vmul.f32 %v3668_v50, %v1366_v44  ;;  %v1391_v7 = vpop.permute.xlu1 %1390  ;;  %v3879_v50 = vmov 0.0|0.0  }
0x147d   :  { %v1393_v9 = vmul.f32 %v3670_v52, %v1391_v7  ;;  %3456 = vmatprep.subr.bf16.mxu1 %v3879_v50  ;;  %v4460_v7 = vsub.s32 %v1684_v6, %v4039_v26 }
0x147e   :  { %1395 = vrot.lane.b32.xlu0 %v1368_v31, %s3878_s13 }
0x147f   :  { %1399 = vrot.lane.b32.xlu1 %v1393_v9, %s3877_s4  ;;  %v4974_v9 = vmov 0 }
0x14f0   :  { %v4360_v13 = vpop.permute.xlu0 %1395 }
0x14f1   :  { %v1400_v15 = vpop.permute.xlu1 %1399  ;;  %v1537_v63 = vsel %vm4970_vm13, %v4360_v13, %v4238_v22 }
0x14f2   :  { %v1402_v17 = vsel %vm4970_vm13, %v4360_v13, %v1400_v15  ;;  %v1532_v38 = vsel %vm4970_vm13, %v4236_v16, %v1400_v15  ;;  %v4976_v13 = vmov 0  ;;  %v4979_v15 = vmov 0 }
0x14f3   :  { %3077 = vmatmul.mubr.msk.f32.vlgmr.msra.gmra.mrb[22].mxu1 %vm4971_vm14, %v1402_v17  ;;  %v4982_v17 = vmov 0 }
0x15c6   :  { %v1472_v19 = vpop.f32.mrb[22].mxu1 }
0x15c7   :  { %v1477_v20 = vadd.f32 %v1472_v19, %v4200_v55  ;;  %v1474_v23 = vpop.f32.mrb[23].mxu1  ;;  %v1688_v19 = vadd.s32 56, %v4165_v11 }
0x15c8   :  { %v1502_v25 = vadd.f32 %v1474_v23, %v4173_v21  ;;  %v1686_v23 = vadd.s32 40, %v4165_v11 }
0x15c9   :  { %3675 = vtanh.f32 %v1477_v20  ;;  %v3078_v32 = vmul.f32 -1.442695, %v1477_v20  ;;  %v1687_v20 = vadd.s32 48, %v4165_v11 }
0x15ca   :  { %3677 = vtanh.f32 %v1502_v25  ;;  %v3079_v40 = vmul.f32 -1.442695, %v1502_v25  ;;  %v4512_v25 = vsub.s32 %v1688_v19, %v4039_v26 }
0x15cb   :  { %3679 = vpow2.f32 %v3078_v32  ;;  %v4526_v32 = vsub.s32 %v1687_v20, %v4039_v26 }
0x15cc   :  { %3681 = vpow2.f32 %v3079_v40  ;;  %v4530_v40 = vsub.s32 %v1686_v23, %v4039_v26 }
0x15d3   :  { %v3676_v28 = vpop.eup %3675 }
0x15d4   :  { %v3678_v30 = vpop.eup %3677  ;;  %1487 = vrot.lane.b32.xlu1 %v3676_v28, %s3877_s4  ;;  %v4985_v28 = vmov 0 }
0x15d5   :  { %1512 = vrot.lane.b32.xlu0 %v3678_v30, %s3877_s4  ;;  %v3680_v35 = vpop.eup %3679  ;;  %v4987_v30 = vmov 0 }
0x15d6   :  { %v3682_v39 = vpop.eup %3681  ;;  %v1481_v41 = vadd.f32 1.0, %v3680_v35  ;;  %v4990_v35 = vmov 0 }
0x15d7   :  { %v1506_v45 = vadd.f32 1.0, %v3682_v39  ;;  %v4993_v39 = vmov 0 }
0x15d8   :  { %3683 = vrcp.f32 %v1481_v41  ;;  %v4995_v41 = vmov 0 }
0x15d9   :  { %3685 = vrcp.f32 %v1506_v45  ;;  %v4997_v45 = vmov 0 }
0x15e2   :  { %v3684_v55 = vpop.eup %3683 }
0x15e3   :  { %v3686_v33 = vpop.eup %3685  ;;  %v1485_v53 = vmul.f32 %v3684_v55, %v1362_v48 }
0x15e4   :  { %v1510_v57 = vmul.f32 %v3686_v33, %v1387_v60  ;;  %v1534_v60 = vsel %vm4970_vm13, %v4290_v2, %v4318_v61  ;;  %v1535_v2 = vsel %vm4970_vm13, %v4316_v58, %v4292_v4  ;;  %v4440_v4 = vsub.s32 %v4165_v11, %v4039_v26 }
0x15e5   :  { %v3438_v8 = vpack.c.bf16 %v1534_v60, %v1533_v5  ;;  %v1685_v58 = vadd.s32 32, %v4165_v11 }
0x15e6   :  { %vm4968_vm5 = vcmp.eq.s32.totalorder %v4440_v4, 0  ;;  %vm1721_vm6 = vcmp.eq.s32.totalorder %v4440_v4, 4294967288  ;;  %vm1753_vm10 = vcmp.eq.s32.totalorder %v4440_v4, 4294967280 }
0x15e7   :  { %vm1729_vm9 = vmor %vm4968_vm5, %vm1721_vm6  ;;  %v4453_v44 = vsub.s32 %v1685_v58, %v4039_v26 }
0x15e9   :  { %vm1725_vm0 = vcmp.eq.s32.totalorder %v4453_v44, 4294967288 }
0x1646   :  { %v1488_v21 = vpop.permute.xlu1 %1487 }
0x1647   :  { %v1490_v42 = vmul.f32 %v3684_v55, %v1488_v21  ;;  %v1513_v49 = vpop.permute.xlu0 %1512  ;;  %v5003_v21 = vmov 0 }
0x1648   :  { %v1515_v51 = vmul.f32 %v3686_v33, %v1513_v49  ;;  %v5012_v49 = vmov 0 }
0x1649   :  { %1492 = vrot.lane.b32.xlu1 %v1490_v42, %s3878_s13  ;;  %v5009_v42 = vmov 0 }
0x164a   :  { %1517 = vrot.lane.b32.xlu0 %v1515_v51, %s3878_s13  ;;  %v5015_v51 = vmov 0 }
0x16bb   :  { %v1493_v56 = vpop.permute.xlu1 %1492 }
0x16bc   :  { %v1495_v29 = vadd.f32 %v1493_v56, %v1485_v53  ;;  %v1518_v46 = vpop.permute.xlu0 %1517  ;;  %v5018_v53 = vmov 0  ;;  %v5021_v56 = vmov 0 }
0x16bd   :  { %v1520_v59 = vadd.f32 %v1518_v46, %v1510_v57  ;;  %v5024_v57 = vmov 0 }
0x16be   :  { %3687 = vtanh.f32 %v1495_v29 }
0x16bf   :  { %3689 = vtanh.f32 %v1520_v59 }
0x16c8   :  { %v3688_v62 = vpop.eup %3687 }
0x16c9   :  { %v3690_v24 = vpop.eup %3689  ;;  %1498 = vrot.lane.b32.xlu1 %v3688_v62, %s3877_s4  ;;  %v5027_v62 = vmov 0 }
0x16ca   :  { %1523 = vrot.lane.b32.xlu0 %v3690_v24, %s3877_s4 }
0x173b   :  { %v1499_v27 = vpop.permute.xlu1 %1498 }
0x173c   :  { %v1501_v52 = vmul.f32 %v3684_v55, %v1499_v27  ;;  %v1524_v0 = vpop.permute.xlu0 %1523  ;;  %v5000_v55 = vmov 0 }
0x173d   :  { %v1526_v3 = vmul.f32 %v3686_v33, %v1524_v0  ;;  %v5006_v33 = vmov 0 }
0x173e   :  { %1539 = vrot.lane.b32.xlu1 %v1501_v52, %s3878_s13 }
0x173f   :  { %1528 = vrot.lane.b32.xlu0 %v1526_v3, %s3877_s4 }
0x17b0   :  { %v1540_v16 = vpop.permute.xlu1 %1539 }
0x17b1   :  { %v1529_v36 = vpop.permute.xlu0 %1528  ;;  %v1542_v43 = vsel %vm4970_vm13, %v1540_v16, %v4211_v37  ;;  %v1682_v37 = vadd.s32 8, %v4165_v11 }
0x17b2   :  { %v1531_v47 = vsel %vm4970_vm13, %v4209_v34, %v1529_v36  ;;  %v1536_v34 = vsel %vm4970_vm13, %v4342_v18, %v4265_v10  ;;  %v3450_v10 = vpack.c.bf16 %v1542_v43, %v1537_v63  ;;  %v1683_v18 = vadd.s32 16, %v4165_v11 }
0x17b3   :  { %v3432_v54 = vpack.c.bf16 %v1532_v38, %v1531_v47  ;;  %3211 = vmatprep.mubr.msk.f32.mxu0 %vm4971_vm14, %v1531_v47  ;;  %v3444_v61 = vpack.c.bf16 %v1536_v34, %v1535_v2  ;;  %v4434_v22 = vsub.s32 %v1682_v37, %v4039_v26 }
0x17b4   :  { %v4456_v31 = vsub.s32 %v1683_v18, %v4039_v26 }
0x17b5   :  { %3434 = vmatprep.subr.msk.bf16.mxu0 %vm4385_vm15, %v3432_v54  ;;  %3458 = vmatpush3.bf16.msra.mxu1 %v3432_v54  ;;  %vm1698_vm1 = vcmp.eq.s32.totalorder %v4434_v22, 0  ;;  %vm1706_vm2 = vcmp.eq.s32.totalorder %v4434_v22, 8  ;;  %vm1722_vm4 = vcmp.eq.s32.totalorder %v4434_v22, 4294967288  ;;  %vm1754_vm8 = vcmp.eq.s32.totalorder %v4434_v22, 4294967280 }
0x17b6   :  { %3437 = vmatpush3.bf16.xpose.msk.msra.mxu0 %vm4385_vm15, %v3432_v54  ;;  %3459 = vmatprep.subr.bf16.mxu1 %v3879_v50  ;;  %vm1714_vm3 = vmor %vm1698_vm1, %vm1706_vm2  ;;  %vm1786_vm12 = vcmp.eq.s32.totalorder %v4434_v22, 4294967272  ;;  %vm1785_vm1 = vcmp.eq.s32.totalorder %v4440_v4, 4294967272  ;;  %vm1701_vm2 = vcmp.eq.s32.totalorder %v4453_v44, 0  ;;  %vm1699_vm6 = vcmp.eq.s32.totalorder %v4456_v31, 0 }
0x17b7   :  { %3440 = vmatprep.subr.msk.bf16.mxu0 %vm4385_vm15, %v3438_v8  ;;  %vm1730_vm7 = vmor %vm1714_vm3, %vm1722_vm4  ;;  %vm1709_vm3 = vcmp.eq.s32.totalorder %v4453_v44, 8 }
0x17b8   :  { %vm1762_vm11 = vmor %vm1730_vm7, %vm1754_vm8  ;;  %vm1707_vm7 = vcmp.eq.s32.totalorder %v4456_v31, 8 }
0x17b9   :  { %3461 = vmatpush3.bf16.msra.mxu1 %v3438_v8  ;;  %vm4465_vm4 = vmor %vm1762_vm11, %vm1786_vm12  ;;  %vm1723_vm11 = vcmp.eq.s32.totalorder %v4456_v31, 4294967288  ;;  %vm1818_vm12 = vcmp.eq.s32.totalorder %v4434_v22, 4294967264 }
0x17ba   :  { %3462 = vmatprep.subr.bf16.mxu1 %v3879_v50  ;;  %v4975_v9 = vsel %vm4465_vm4, 4294967295, %v4974_v9  ;;  %vm1717_vm5 = vmor %vm1701_vm2, %vm1709_vm3  ;;  %vm1724_vm4 = vcmp.eq.s32.totalorder %v4460_v7, 4294967288  ;;  %vm1739_vm2 = vcmp.eq.s32.totalorder %v4456_v31, 16 }
0x17bb   :  { %vm1715_vm13 = vmor %vm1699_vm6, %vm1707_vm7  ;;  %vm4978_vm3 = vnez %v4975_v9  ;;  %vm1817_vm7 = vcmp.eq.s32.totalorder %v4440_v4, 4294967264 }
0x17bc   :  { %vm4485_vm6 = vmor %vm4978_vm3, %vm1818_vm12 }
0x17bd   :  { %3464 = vmatpush3.bf16.msra.mxu1 %v3444_v61  ;;  %v4980_v15 = vsel %vm4485_vm6, 4294967295, %v4979_v15 }
0x17be   :  { %3443 = vmatpush3.bf16.xpose.msk.msra.mxu0 %vm4385_vm15, %v3438_v8  ;;  %3465 = vmatprep.subr.bf16.mxu1 %v3879_v50 }
0x17bf   :  { %3446 = vmatprep.subr.msk.bf16.mxu0 %vm4385_vm15, %v3444_v61 }
0x17c1   :  { %3467 = vmatpush3.bf16.msra.mxu1 %v3450_v10 }
0x17c2   :  { %3468 = vmatprep.subr.bf16.mxu1 %v3879_v50 }
0x17c6   :  { %3449 = vmatpush3.bf16.xpose.msk.msra.mxu0 %vm4385_vm15, %v3444_v61 }
0x17c7   :  { %3452 = vmatprep.subr.msk.bf16.mxu0 %vm4385_vm15, %v3450_v10 }
0x17ce   :  { %3455 = vmatpush3.bf16.xpose.msk.msra.mxu0 %vm4385_vm15, %v3450_v10  ;;  %vm1761_vm15 = vmor %vm1729_vm9, %vm1753_vm10  ;;  %vm1700_vm9 = vcmp.eq.s32.totalorder %v4460_v7, 0  ;;  %vm1708_vm10 = vcmp.eq.s32.totalorder %v4460_v7, 8 }
0x17cf   :  { %vm4471_vm8 = vmor %vm1761_vm15, %vm1785_vm1  ;;  %vm1741_vm15 = vcmp.eq.s32.totalorder %v4453_v44, 16 }
0x17d0   :  { %v4977_v13 = vsel %vm4471_vm8, 4294967295, %v4976_v13  ;;  %vm1733_vm1 = vmor %vm1717_vm5, %vm1725_vm0  ;;  %vm1757_vm5 = vcmp.eq.s32.totalorder %v4453_v44, 4294967280 }
0x17d1   :  { %vm1731_vm8 = vmor %vm1715_vm13, %vm1723_vm11  ;;  %vm1755_vm13 = vcmp.eq.s32.totalorder %v4456_v31, 4294967280  ;;  %vm4981_vm3 = vnez %v4977_v13 }
0x17d2   :  { %vm1749_vm0 = vmor %vm1733_vm1, %vm1741_vm15  ;;  %vm1773_vm1 = vcmp.eq.s32.totalorder %v4453_v44, 24 }
0x17d3   :  { %vm1747_vm11 = vmor %vm1731_vm8, %vm1739_vm2  ;;  %vm1787_vm2 = vcmp.eq.s32.totalorder %v4456_v31, 4294967272 }
0x17d4   :  { %vm4495_vm12 = vmor %vm4981_vm3, %vm1817_vm7  ;;  %vm1772_vm3 = vcmp.eq.s32.totalorder %v4460_v7, 24 }
0x17d5   :  { %3212 = vmatmul.mubr.msk.f32.vlgmr.msra.gmra.mrb[16].mxu0 %vm4971_vm14, %v1532_v38  ;;  %v4983_v17 = vsel %vm4495_vm12, 4294967295, %v4982_v17  ;;  %vm1763_vm15 = vmor %vm1747_vm11, %vm1755_vm13  ;;  %vm1789_vm12 = vcmp.eq.s32.totalorder %v4453_v44, 4294967272  ;;  %vm1788_vm11 = vcmp.eq.s32.totalorder %v4460_v7, 4294967272  ;;  %vm1805_vm13 = vcmp.eq.s32.totalorder %v4453_v44, 32 }
0x17d6   :  { %3214 = vmatprep.mubr.msk.f32.mxu0 %vm4971_vm14, %v1533_v5 }
0x17d9   :  { %3215 = vmatmul.mubr.msk.f32.gmra.mrb[18].mxu0 %vm4971_vm14, %v1534_v60 }
0x17da   :  { %3217 = vmatprep.mubr.msk.f32.mxu0 %vm4971_vm14, %v1535_v2 }
0x17dd   :  { %3218 = vmatmul.mubr.msk.f32.gmra.mrb[20].mxu0 %vm4971_vm14, %v1536_v34 }
0x17de   :  { %3220 = vmatprep.mubr.msk.f32.mxu0 %vm4971_vm14, %v1537_v63 }
0x17e1   :  { %3221 = vmatmul.mubr.msk.f32.gmra.mrb[22].mxu0 %vm4971_vm14, %v1542_v43  ;;  %vm1716_vm14 = vmor %vm1700_vm9, %vm1708_vm10  ;;  %vm1740_vm10 = vcmp.eq.s32.totalorder %v4460_v7, 16 }
0x17e2   :  { %2512 = vmatprep.mubr.f32.mxu0 %v3875_v1  ;;  %vm1732_vm9 = vmor %vm1716_vm14, %vm1724_vm4  ;;  %vm1756_vm4 = vcmp.eq.s32.totalorder %v4460_v7, 4294967280 }
0x17e3   :  { %vm1748_vm6 = vmor %vm1732_vm9, %vm1740_vm10  ;;  %vm1850_vm9 = vcmp.eq.s32.totalorder %v4434_v22, 4294967256 }
0x17e4   :  { %vm1765_vm14 = vmor %vm1749_vm0, %vm1757_vm5  ;;  %vm1819_vm0 = vcmp.eq.s32.totalorder %v4456_v31, 4294967264 }
0x17e5   :  { %vm1764_vm8 = vmor %vm1748_vm6, %vm1756_vm4  ;;  %vm4984_vm4 = vnez %v4980_v15 }
0x17e6   :  { %vm1781_vm7 = vmor %vm1765_vm14, %vm1773_vm1  ;;  %vm1849_vm1 = vcmp.eq.s32.totalorder %v4440_v4, 4294967256 }
0x17e7   :  { %vm1795_vm10 = vmor %vm1763_vm15, %vm1787_vm2  ;;  %vm1820_vm2 = vcmp.eq.s32.totalorder %v4460_v7, 4294967264 }
0x17e8   :  { %vm1780_vm5 = vmor %vm1764_vm8, %vm1772_vm3  ;;  %vm1851_vm8 = vcmp.eq.s32.totalorder %v4456_v31, 4294967256 }
0x17e9   :  { %vm1797_vm6 = vmor %vm1781_vm7, %vm1789_vm12  ;;  %vm1821_vm7 = vcmp.eq.s32.totalorder %v4453_v44, 4294967264 }
0x17ea   :  { %vm4516_vm14 = vmor %vm4984_vm4, %vm1850_vm9  ;;  %vm4989_vm9 = vnez %v4983_v17  ;;  %vm1852_vm4 = vcmp.eq.s32.totalorder %v4460_v7, 4294967256 }
0x17eb   :  { %v4986_v28 = vsel %vm4516_vm14, 4294967295, %v4985_v28  ;;  %vm4521_vm15 = vmor %vm1795_vm10, %vm1819_vm0  ;;  %vm1704_vm0 = vcmp.eq.s32.totalorder %v4512_v25, 0  ;;  %vm1703_vm14 = vcmp.eq.s32.totalorder %v4526_v32, 0 }
0x17ec   :  { %v4988_v30 = vsel %vm4521_vm15, 4294967295, %v4987_v30  ;;  %vm1796_vm12 = vmor %vm1780_vm5, %vm1788_vm11  ;;  %vm1712_vm5 = vcmp.eq.s32.totalorder %v4512_v25, 8  ;;  %vm1711_vm15 = vcmp.eq.s32.totalorder %v4526_v32, 8 }
0x17ed   :  { %vm1813_vm3 = vmor %vm1797_vm6, %vm1805_vm13  ;;  %vm4992_vm6 = vnez %v4988_v30 }
0x17ee   :  { %vm4536_vm10 = vmor %vm4989_vm9, %vm1849_vm1  ;;  %vm1702_vm9 = vcmp.eq.s32.totalorder %v4530_v40, 0 }
0x17ef   :  { %v4991_v35 = vsel %vm4536_vm10, 4294967295, %v4990_v35  ;;  %vm1828_vm11 = vmor %vm1796_vm12, %vm1820_vm2  ;;  %vm1710_vm10 = vcmp.eq.s32.totalorder %v4530_v40, 8  ;;  %vm1853_vm2 = vcmp.eq.s32.totalorder %v4453_v44, 4294967256 }
0x17f0   :  { %vm4547_vm13 = vmor %vm4992_vm6, %vm1851_vm8  ;;  %vm1728_vm6 = vcmp.eq.s32.totalorder %v4512_v25, 4294967288 }
0x17f1   :  { %v4994_v39 = vsel %vm4547_vm13, 4294967295, %v4993_v39  ;;  %vm1829_vm1 = vmor %vm1813_vm3, %vm1821_vm7  ;;  %vm1727_vm3 = vcmp.eq.s32.totalorder %v4526_v32, 4294967288  ;;  %vm1882_vm7 = vcmp.eq.s32.totalorder %v4434_v22, 4294967248 }
0x17f2   :  { %vm1720_vm12 = vmor %vm1704_vm0, %vm1712_vm5  ;;  %vm1726_vm5 = vcmp.eq.s32.totalorder %v4530_v40, 4294967288 }
0x17f3   :  { %vm4555_vm8 = vmor %vm1828_vm11, %vm1852_vm4  ;;  %vm1881_vm4 = vcmp.eq.s32.totalorder %v4440_v4, 4294967248 }
0x17f4   :  { %v4996_v41 = vsel %vm4555_vm8, 4294967295, %v4995_v41  ;;  %vm1719_vm13 = vmor %vm1703_vm14, %vm1711_vm15  ;;  %vm1744_vm14 = vcmp.eq.s32.totalorder %v4512_v25, 16 }
0x17f5   :  { %vm1718_vm0 = vmor %vm1702_vm9, %vm1710_vm10  ;;  %vm1743_vm9 = vcmp.eq.s32.totalorder %v4526_v32, 16  ;;  %vm4999_vm10 = vnez %v4986_v28 }
0x17f6   :  { %vm4563_vm11 = vmor %vm1829_vm1, %vm1853_vm2 }
0x17f7   :  { %v4998_v45 = vsel %vm4563_vm11, 4294967295, %v4997_v45  ;;  %vm1736_vm8 = vmor %vm1720_vm12, %vm1728_vm6  ;;  %vm1742_vm11 = vcmp.eq.s32.totalorder %v4530_v40, 16  ;;  %vm5002_vm6 = vnez %v4991_v35 }
0x17f8   :  { %vm1735_vm15 = vmor %vm1719_vm13, %vm1727_vm3  ;;  %vm1760_vm13 = vcmp.eq.s32.totalorder %v4512_v25, 4294967280 }
0x17f9   :  { %vm4571_vm1 = vmor %vm4999_vm10, %vm1882_vm7  ;;  %vm1883_vm7 = vcmp.eq.s32.totalorder %v4456_v31, 4294967248 }
0x17fa   :  { %v5001_v55 = vsel %vm4571_vm1, 4294967295, %v5000_v55  ;;  %vm1734_vm2 = vmor %vm1718_vm0, %vm1726_vm5  ;;  %vm1759_vm1 = vcmp.eq.s32.totalorder %v4526_v32, 4294967280  ;;  %vm1758_vm5 = vcmp.eq.s32.totalorder %v4530_v40, 4294967280 }
0x17fb   :  { %vm4578_vm12 = vmor %vm5002_vm6, %vm1881_vm4  ;;  %vm1884_vm4 = vcmp.eq.s32.totalorder %v4460_v7, 4294967248 }
0x17fc   :  { %v5004_v21 = vsel %vm4578_vm12, 4294967295, %v5003_v21  ;;  %vm1752_vm3 = vmor %vm1736_vm8, %vm1744_vm14  ;;  %vm1776_vm12 = vcmp.eq.s32.totalorder %v4512_v25, 24  ;;  %vm5005_vm8 = vnez %v4994_v39 }
0x17fd   :  { %vm1751_vm10 = vmor %vm1735_vm15, %vm1743_vm9  ;;  %vm1775_vm15 = vcmp.eq.s32.totalorder %v4526_v32, 24 }
0x17fe   :  { %vm1750_vm0 = vmor %vm1734_vm2, %vm1742_vm11  ;;  %vm1885_vm2 = vcmp.eq.s32.totalorder %v4453_v44, 4294967248 }
0x17ff   :  { %vm1768_vm6 = vmor %vm1752_vm3, %vm1760_vm13  ;;  %vm1774_vm3 = vcmp.eq.s32.totalorder %v4530_v40, 24  ;;  %vm5008_vm13 = vnez %v4996_v41 }
0x1800   :  { %vm4590_vm14 = vmor %vm5005_vm8, %vm1883_vm7 }
0x1801   :  { %v5007_v33 = vsel %vm4590_vm14, 4294967295, %v5006_v33  ;;  %vm1767_vm9 = vmor %vm1751_vm10, %vm1759_vm1  ;;  %vm1792_vm14 = vcmp.eq.s32.totalorder %v4512_v25, 4294967272  ;;  %vm1914_vm1 = vcmp.eq.s32.totalorder %v4434_v22, 4294967240 }
0x1802   :  { %vm1766_vm11 = vmor %vm1750_vm0, %vm1758_vm5  ;;  %vm1791_vm0 = vcmp.eq.s32.totalorder %v4526_v32, 4294967272  ;;  %vm1913_vm5 = vcmp.eq.s32.totalorder %v4440_v4, 4294967240 }
0x1803   :  { %vm4599_vm7 = vmor %vm5008_vm13, %vm1884_vm4  ;;  %vm5011_vm4 = vnez %v4998_v45 }
0x1804   :  { %v5010_v42 = vsel %vm4599_vm7, 4294967295, %v5009_v42  ;;  %vm1784_vm8 = vmor %vm1768_vm6, %vm1776_vm12  ;;  %vm1790_vm6 = vcmp.eq.s32.totalorder %v4530_v40, 4294967272 }
0x1805   :  { %vm1783_vm10 = vmor %vm1767_vm9, %vm1775_vm15  ;;  %vm1808_vm9 = vcmp.eq.s32.totalorder %v4512_v25, 32  ;;  %vm5014_vm15 = vnez %v5001_v55 }
0x1806   :  { %vm4609_vm13 = vmor %vm5011_vm4, %vm1885_vm2 }
0x1807   :  { %v5013_v49 = vsel %vm4609_vm13, 4294967295, %v5012_v49  ;;  %vm1782_vm7 = vmor %vm1766_vm11, %vm1774_vm3  ;;  %vm1807_vm13 = vcmp.eq.s32.totalorder %v4526_v32, 32  ;;  %vm5017_vm3 = vnez %v5004_v21 }
0x1808   :  { %vm1800_vm12 = vmor %vm1784_vm8, %vm1792_vm14  ;;  %vm1806_vm14 = vcmp.eq.s32.totalorder %v4530_v40, 32 }
0x1809   :  { %vm4617_vm2 = vmor %vm5014_vm15, %vm1914_vm1  ;;  %vm1915_vm1 = vcmp.eq.s32.totalorder %v4456_v31, 4294967240 }
0x180a   :  { %v5016_v51 = vsel %vm4617_vm2, 4294967295, %v5015_v51  ;;  %vm1799_vm4 = vmor %vm1783_vm10, %vm1791_vm0  ;;  %vm1824_vm2 = vcmp.eq.s32.totalorder %v4512_v25, 4294967264  ;;  %vm1823_vm10 = vcmp.eq.s32.totalorder %v4526_v32, 4294967264 }
0x180b   :  { %vm4624_vm11 = vmor %vm5017_vm3, %vm1913_vm5  ;;  %vm1916_vm3 = vcmp.eq.s32.totalorder %v4460_v7, 4294967240 }
0x180c   :  { %v5019_v53 = vsel %vm4624_vm11, 4294967295, %v5018_v53  ;;  %vm1798_vm8 = vmor %vm1782_vm7, %vm1790_vm6  ;;  %vm1822_vm11 = vcmp.eq.s32.totalorder %v4530_v40, 4294967264  ;;  %vm5020_vm6 = vnez %v5007_v33 }
0x180d   :  { %vm1816_vm15 = vmor %vm1800_vm12, %vm1808_vm9  ;;  %vm1840_vm12 = vcmp.eq.s32.totalorder %v4512_v25, 40 }
0x180e   :  { %vm1815_vm0 = vmor %vm1799_vm4, %vm1807_vm13  ;;  %vm1917_vm4 = vcmp.eq.s32.totalorder %v4453_v44, 4294967240 }
0x180f   :  { %vm1814_vm5 = vmor %vm1798_vm8, %vm1806_vm14  ;;  %vm1839_vm8 = vcmp.eq.s32.totalorder %v4526_v32, 40  ;;  %vm5023_vm14 = vnez %v5010_v42 }
0x1810   :  { %vm4636_vm7 = vmor %vm5020_vm6, %vm1915_vm1 }
0x1811   :  { %v5022_v56 = vsel %vm4636_vm7, 4294967295, %v5021_v56  ;;  %vm1832_vm9 = vmor %vm1816_vm15, %vm1824_vm2  ;;  %vm1838_vm7 = vcmp.eq.s32.totalorder %v4530_v40, 40  ;;  %vm1856_vm15 = vcmp.eq.s32.totalorder %v4512_v25, 4294967256 }
0x1812   :  { %vm1831_vm13 = vmor %vm1815_vm0, %vm1823_vm10  ;;  %vm5026_vm0 = vnez %v5013_v49 }
0x1813   :  { %vm4645_vm1 = vmor %vm5023_vm14, %vm1916_vm3  ;;  %vm1855_vm14 = vcmp.eq.s32.totalorder %v4526_v32, 4294967256 }
0x1814   :  { %v5025_v57 = vsel %vm4645_vm1, 4294967295, %v5024_v57  ;;  %vm1830_vm6 = vmor %vm1814_vm5, %vm1822_vm11  ;;  %vm1854_vm11 = vcmp.eq.s32.totalorder %v4530_v40, 4294967256  ;;  %vm5029_vm5 = vnez %v5016_v51 }
0x1815   :  { %vm1848_vm2 = vmor %vm1832_vm9, %vm1840_vm12  ;;  %vm1872_vm12 = vcmp.eq.s32.totalorder %v4512_v25, 48 }
0x1816   :  { %vm4653_vm10 = vmor %vm5026_vm0, %vm1917_vm4  ;;  %vm5032_vm4 = vcmask 523264  }
0x1817   :  { %v5028_v62 = vsel %vm4653_vm10, 4294967295, %v5027_v62  ;;  %vm1847_vm3 = vmor %vm1831_vm13, %vm1839_vm8  ;;  %vm5033_vm13 = vnez %v5019_v53  ;;  %vm1904_vm10 = vcmp.eq.s32.totalorder %v4512_v25, 56 }
0x1818   :  { %vm1846_vm1 = vmor %vm1830_vm6, %vm1838_vm7  ;;  %vm1871_vm7 = vcmp.eq.s32.totalorder %v4526_v32, 48 }
0x1819   :  { %vm4661_vm9 = vmor %vm1848_vm2, %vm1856_vm15  ;;  %vm1886_vm2 = vcmp.eq.s32.totalorder %v4530_v40, 4294967248 }
0x181a   :  { %vm1863_vm8 = vmor %vm1847_vm3, %vm1855_vm14  ;;  %vm1887_vm3 = vcmp.eq.s32.totalorder %v4526_v32, 4294967248  ;;  %vm5035_vm14 = vnez %v5022_v56 }
0x181b   :  { %vm5034_vm6 = vmmov %vm5032_vm4 }
0x181c   :  { %vm1862_vm0 = vmor %vm1846_vm1, %vm1854_vm11  ;;  %vm1918_vm1 = vcmp.eq.s32.totalorder %v4530_v40, 4294967240 }
0x181d   :  { %vm1880_vm15 = vmor %vm4661_vm9, %vm1872_vm12  ;;  %vm5037_vm9 = vnez %v5025_v57 }
0x181e   :  { %vm5036_vm11 = vmmov %vm5034_vm6 }
0x18a8   :  { %v3213_v29 = vpop.f32.mrb[16].mxu0 }
0x18a9   :  { %v1673_v46 = vmul.f32 0.125, %v3213_v29  ;;  %v1633_v59 = vpop.f32.mrb[17].mxu0 }
0x18aa   :  { %v1672_v24 = vmul.f32 0.125, %v1633_v59 }
0x18ab   :  { %v1930_v27 = vsel %vm5029_vm5, %v1673_v46, -1e+30  ;;  %vm1888_vm5 = vcmp.eq.s32.totalorder %v4512_v25, 4294967248 }
0x18ac   :  { %v3216_v0 = vpop.f32.mrb[18].mxu0  ;;  %v1940_v3 = vsel %vm5032_vm4, %v1930_v27, -inf  ;;  %v1929_v36 = vsel %vm5033_vm13, %v1672_v24, -1e+30  ;;  %vm1879_vm4 = vmor %vm1863_vm8, %vm1871_vm7  ;;  %vm1919_vm8 = vcmp.eq.s32.totalorder %v4526_v32, 4294967240 }
0x18ad   :  { %1941 = vmax.xlane.f32.xlu1 %v1940_v3  ;;  %v1643_v5 = vpop.f32.mrb[19].mxu0  ;;  %v1937_v38 = vsel %vm5034_vm6, %v1929_v36, -inf  ;;  %v1675_v47 = vmul.f32 0.125, %v3216_v0  ;;  %vm1894_vm13 = vmor %vm1862_vm0, %vm1886_vm2  ;;  %vm5038_vm0 = vnez %v5028_v62 }
0x18ae   :  { %v1674_v48 = vmul.f32 0.125, %v1643_v5  ;;  %1938 = vmax.xlane.f32.xlu0 %v1937_v38  ;;  %vm1896_vm6 = vmor %vm1880_vm15, %vm1888_vm5 }
0x18af   :  { %v1932_v61 = vsel %vm5037_vm9, %v1675_v47, -1e+30  ;;  %vm1895_vm12 = vmor %vm1879_vm4, %vm1887_vm3 }
0x18b0   :  { %v3219_v54 = vpop.f32.mrb[20].mxu0  ;;  %v1931_v60 = vsel %vm5035_vm14, %v1674_v48, -1e+30  ;;  %vm1926_vm7 = vmor %vm1894_vm13, %vm1918_vm1  ;;  %vm1920_vm14 = vcmp.eq.s32.totalorder %v4512_v25, 4294967240 }
0x18b1   :  { %v1653_v8 = vpop.f32.mrb[21].mxu0  ;;  %v1943_v34 = vsel %vm5036_vm11, %v1931_v60, -inf  ;;  %v1677_v16 = vmul.f32 0.125, %v3219_v54  ;;  %vm1912_vm2 = vmor %vm1896_vm6, %vm1904_vm10 }
0x18b2   :  { %v1676_v2 = vmul.f32 0.125, %v1653_v8  ;;  %1944 = vmax.xlane.f32.xlu0 %v1943_v34  ;;  %vm5039_vm15 = vmmov %vm5036_vm11 }
0x18b3   :  { %v1946_v37 = vsel %vm5039_vm15, %v1932_v61, -inf  ;;  %vm5040_vm5 = vmmov %vm5036_vm11  ;;  %v1934_v6 = vsel %vm1926_vm7, %v1677_v16, -1e+30 }
0x18b4   :  { %v3222_v43 = vpop.f32.mrb[22].mxu0  ;;  %v1933_v63 = vsel %vm5038_vm0, %v1676_v2, -1e+30  ;;  %vm1927_vm11 = vmor %vm1895_vm12, %vm1919_vm8 }
0x18b5   :  { %v1663_v10 = vpop.f32.mrb[23].mxu0  ;;  %v1949_v22 = vsel %vm5040_vm5, %v1933_v63, -inf  ;;  %v1679_v58 = vmul.f32 0.125, %v3222_v43  ;;  %vm1928_vm4 = vmor %vm1912_vm2, %vm1920_vm14  ;;  %vm3880_vm14 = vmmov 0  }
0x18b6   :  { %v1678_v18 = vmul.f32 0.125, %v1663_v10  ;;  %1947 = vmax.xlane.f32.xlu0 %v1946_v37  ;;  %1950 = vmax.xlane.f32.xlu1 %v1949_v22  ;;  %vm5041_vm3 = vmmov %vm5040_vm5 }
0x18b7   :  { %v1952_v31 = vsel %vm5041_vm3, %v1934_v6, -inf  ;;  %vm5042_vm13 = vmmov %vm5041_vm3  ;;  %v1936_v9 = vsel %vm1928_vm4, %v1679_v58, -1e+30  ;;  %3239 = vmatprep.mubr.msk.f32.mxu1 %vm3880_vm14, %v3875_v1 }
0x18b8   :  { %v1935_v44 = vsel %vm1927_vm11, %v1678_v18, -1e+30  ;;  %vm5043_vm10 = vmmov %vm5041_vm3 }
0x18b9   :  { %v1955_v7 = vsel %vm5042_vm13, %v1935_v44, -inf  ;;  %v1958_v13 = vsel %vm5043_vm10, %v1936_v9, -inf  ;;  %vm5044_vm1 = vmmov %vm5041_vm3 }
0x18ba   :  { %1953 = vmax.xlane.f32.xlu0 %v1952_v31  ;;  %1956 = vmax.xlane.f32.xlu1 %v1955_v7  ;;  %vm5045_vm6 = vmmov %vm5044_vm1 }
0x18bb   :  { %vm5046_vm9 = vmmov %vm5044_vm1 }
0x18bc   :  { %vm5047_vm12 = vmmov %vm5044_vm1 }
0x18bd   :  { %vm5048_vm8 = vmmov %vm5044_vm1 }
0x18be   :  { %1959 = vmax.xlane.f32.xlu0 %v1958_v13  ;;  %vm5049_vm7 = vmmov %vm5044_vm1 }
0x18bf   :  { %vm5050_vm0 = vmmov %vm5044_vm1 }
0x18c0   :  { %vm5051_vm2 = vmmov %vm5050_vm0 }
0x18c1   :  { %vm5052_vm15 = vmmov %vm5050_vm0 }
0x18c2   :  { %vm5053_vm5 = vmmov %vm5050_vm0 }
0x18c3   :  { %vm5054_vm11 = vmmov %vm5050_vm0 }
0x193a   :  { %v1942_v15 = vpop.xlane.xlu1 %1941 }
0x193b   :  { %v1962_v17 = vsub.f32 %v1930_v27, %v1942_v15  ;;  %v1939_v19 = vpop.xlane.xlu0 %1938 }
0x193c   :  { %v1961_v20 = vsub.f32 %v1929_v36, %v1939_v19 }
0x193d   :  { %v1971_v23 = vmul.f32 1.442695, %v1962_v17 }
0x193e   :  { %v1969_v25 = vmul.f32 1.442695, %v1961_v20 }
0x193f   :  { %3691 = vpow2.f32 %v1971_v23  ;;  %v1945_v28 = vpop.xlane.xlu0 %1944 }
0x1940   :  { %3693 = vpow2.f32 %v1969_v25  ;;  %v1963_v30 = vsub.f32 %v1931_v60, %v1945_v28 }
0x1942   :  { %v1973_v32 = vmul.f32 1.442695, %v1963_v30 }
0x1943   :  { %v1948_v40 = vpop.xlane.xlu0 %1947  ;;  %v1951_v35 = vpop.xlane.xlu1 %1950 }
0x1944   :  { %3695 = vpow2.f32 %v1973_v32  ;;  %v1964_v39 = vsub.f32 %v1932_v61, %v1948_v40  ;;  %v1965_v41 = vsub.f32 %v1933_v63, %v1951_v35 }
0x1946   :  { %v1975_v45 = vmul.f32 1.442695, %v1964_v39  ;;  %v1977_v55 = vmul.f32 1.442695, %v1965_v41 }
0x1947   :  { %v1954_v21 = vpop.xlane.xlu0 %1953  ;;  %v1957_v33 = vpop.xlane.xlu1 %1956 }
0x1948   :  { %3697 = vpow2.f32 %v1975_v45  ;;  %v1966_v42 = vsub.f32 %v1934_v6, %v1954_v21  ;;  %v1967_v49 = vsub.f32 %v1935_v44, %v1957_v33  ;;  %v4704_v6 = vsub.s32 %v4039_v26, %v4165_v11 }
0x1949   :  { %v3692_v51 = vpop.eup %3691  ;;  %3699 = vpow2.f32 %v1977_v55 }
0x194a   :  { %v3694_v53 = vpop.eup %3693  ;;  %v1979_v56 = vmul.f32 1.442695, %v1966_v42  ;;  %v1981_v57 = vmul.f32 1.442695, %v1967_v49  ;;  %v1988_v29 = vsel %vm5044_vm1, %v3692_v51, 0.0  ;;  %vm2047_vm4 = vcmp.eq.s32.totalorder %v4704_v6, 0  ;;  %vm5055_vm1 = vmmov %vm5050_vm0 }
0x194b   :  { %1989 = vadd.xlane.f32.xlu0 %v1988_v29  ;;  %v1960_v46 = vpop.xlane.xlu0 %1959  ;;  %v1985_v59 = vsel %vm5045_vm6, %v3694_v53, 0.0  ;;  %vm2048_vm3 = vcmp.eq.s32.totalorder %v4704_v6, 8  ;;  %vm2050_vm10 = vcmp.eq.s32.totalorder %v4704_v6, 16  ;;  %vm5056_vm6 = vmmov %vm5050_vm0 }
0x194c   :  { %3701 = vpow2.f32 %v1979_v56  ;;  %v1968_v62 = vsub.f32 %v1936_v9, %v1960_v46  ;;  %1986 = vadd.xlane.f32.xlu1 %v1985_v59  ;;  %vm2049_vm13 = vmor %vm2047_vm4, %vm2048_vm3 }
0x194d   :  { %3703 = vpow2.f32 %v1981_v57 }
0x194e   :  { %v3696_v24 = vpop.eup %3695  ;;  %v1983_v27 = vmul.f32 1.442695, %v1968_v62 }
0x194f   :  { %v1991_v52 = vsel %vm5046_vm9, %v3696_v24, 0.0  ;;  %vm2051_vm9 = vmor %vm2049_vm13, %vm2050_vm10  ;;  %vm2058_vm13 = vcmp.eq.s32.totalorder %v4704_v6, 48 }
0x1950   :  { %3705 = vpow2.f32 %v1983_v27  ;;  %1992 = vadd.xlane.f32.xlu1 %v1991_v52  ;;  %v2139_v27 = vld [vmem:[%s4960_s5 + $0x8] sm:$0xff] }
0x1952   :  { %v3698_v0 = vpop.eup %3697 }
0x1953   :  { %v3700_v3 = vpop.eup %3699  ;;  %v1994_v36 = vsel %vm5047_vm12, %v3698_v0, 0.0  ;;  %vm2052_vm12 = vcmp.eq.s32.totalorder %v4704_v6, 24 }
0x1954   :  { %1995 = vadd.xlane.f32.xlu0 %v1994_v36  ;;  %v1997_v5 = vsel %vm5048_vm8, %v3700_v3, 0.0  ;;  %vm5057_vm8 = vmmov %vm5050_vm0 }
0x1955   :  { %1998 = vadd.xlane.f32.xlu1 %v1997_v5  ;;  %v2140_v5 = vld [vmem:[%s4960_s5 + $0x10] sm:$0xff] }
0x1956   :  { %v3702_v38 = vpop.eup %3701 }
0x1957   :  { %v3704_v47 = vpop.eup %3703  ;;  %v2000_v48 = vsel %vm5049_vm7, %v3702_v38, 0.0  ;;  %vm2053_vm7 = vmor %vm2051_vm9, %vm2052_vm12 }
0x1958   :  { %2001 = vadd.xlane.f32.xlu0 %v2000_v48  ;;  %v2003_v54 = vsel %vm5050_vm0, %v3704_v47, 0.0  ;;  %vm2054_vm0 = vcmp.eq.s32.totalorder %v4704_v6, 32  ;;  %v2142_v48 = vld [vmem:[%s4960_s5 + $0x20] sm:$0xff] }
0x1959   :  { %2004 = vadd.xlane.f32.xlu1 %v2003_v54  ;;  %v2143_v54 = vld [vmem:[%s4960_s5 + $0x28] sm:$0xff] }
0x195a   :  { %v3706_v60 = vpop.eup %3705 }
0x195b   :  { %v2006_v8 = vsel %vm5051_vm2, %v3706_v60, 0.0  ;;  %vm5058_vm2 = vmmov %vm5055_vm1 }
0x195c   :  { %2007 = vadd.xlane.f32.xlu0 %v2006_v8  ;;  %vm5060_vm9 = vmmov %vm5058_vm2  ;;  %v2144_v8 = vld [vmem:[%s4960_s5 + $0x30] sm:$0xff] }
0x195d   :  { %vm5061_vm12 = vmmov %vm5058_vm2 }
0x19d8   :  { %v1990_v34 = vpop.xlane.xlu0 %1989 }
0x19d9   :  { %3707 = vrcp.f32 %v1990_v34  ;;  %v1987_v16 = vpop.xlane.xlu1 %1986  ;;  %v2145_v34 = vld [vmem:[%s4960_s5 + $0x38] sm:$0xff] }
0x19da   :  { %3709 = vrcp.f32 %v1987_v16  ;;  %v3478_v16 = vpack.c.bf16 %v2145_v34, %v2144_v8 }
0x19dd   :  { %v1993_v2 = vpop.xlane.xlu1 %1992 }
0x19de   :  { %3711 = vrcp.f32 %v1993_v2  ;;  %v101_v2 = vld [vmem:[%s4962_s7 + $0x8] sm:$0xff] }
0x19e1   :  { %v1996_v61 = vpop.xlane.xlu0 %1995 }
0x19e2   :  { %3713 = vrcp.f32 %v1996_v61  ;;  %v1999_v43 = vpop.xlane.xlu1 %1998  ;;  %v103_v61 = vld [vmem:[%s4962_s7 + $0x18] sm:$0xff] }
0x19e3   :  { %v3708_v63 = vpop.eup %3707  ;;  %3715 = vrcp.f32 %v1999_v43  ;;  %v3480_v43 = vpack.c.bf16 %v103_v61, %v101_v2 }
0x19e4   :  { %v3710_v10 = vpop.eup %3709  ;;  %v2012_v37 = vmul.f32 %v3708_v63, %v3692_v51  ;;  %v100_v63 = vld [vmem:[%s4962_s7] sm:$0xff] }
0x19e5   :  { %v2010_v22 = vmul.f32 %v3710_v10, %v3694_v53  ;;  %v2002_v58 = vpop.xlane.xlu0 %2001  ;;  %v102_v10 = vld [vmem:[%s4962_s7 + $0x10] sm:$0xff] }
0x19e6   :  { %3717 = vrcp.f32 %v2002_v58  ;;  %v2005_v18 = vpop.xlane.xlu1 %2004  ;;  %v2026_v31 = vsel %vm5052_vm15, %v2012_v37, 0.0  ;;  %vm5059_vm15 = vmmov %vm5055_vm1  ;;  %v105_v37 = vld [vmem:[%s4962_s7 + $0x28] sm:$0xff]  ;;  %v3482_v58 = vpack.c.bf16 %v102_v10, %v100_v63 }
0x19e7   :  { %3719 = vrcp.f32 %v2005_v18  ;;  %v2025_v7 = vsel %vm5053_vm5, %v2010_v22, 0.0  ;;  %vm2055_vm5 = vmor %vm2053_vm7, %vm2054_vm0  ;;  %v107_v22 = vld [vmem:[%s4962_s7 + $0x38] sm:$0xff] }
0x19e8   :  { %v3712_v44 = vpop.eup %3711  ;;  %v2027_v19 = vadd.f32 %v2026_v31, %v2025_v7  ;;  %v3484_v18 = vpack.c.bf16 %v107_v22, %v105_v37  ;;  %v106_v31 = vld [vmem:[%s4962_s7 + $0x30] sm:$0xff]  ;;  %vm5064_vm0 = vmmov %vm5058_vm2 }
0x19e9   :  { %v2014_v9 = vmul.f32 %v3712_v44, %v3696_v24  ;;  %v2008_v13 = vpop.xlane.xlu0 %2007  ;;  %v2138_v24 = vld [vmem:[%s4960_s5] sm:$0xff] }
0x19ea   :  { %3721 = vrcp.f32 %v2008_v13  ;;  %v104_v44 = vld [vmem:[%s4962_s7 + $0x20] sm:$0xff] }
0x19eb   :  { %v2028_v15 = vsel %vm5054_vm11, %v2014_v9, 0.0  ;;  %vm2056_vm11 = vcmp.eq.s32.totalorder %v4704_v6, 40  ;;  %v3486_v13 = vpack.c.bf16 %v106_v31, %v104_v44 }
0x19ec   :  { %v3714_v17 = vpop.eup %3713  ;;  %v2029_v26 = vadd.f32 %v2028_v15, %v2027_v19  ;;  %vm2057_vm3 = vmor %vm2055_vm5, %vm2056_vm11  ;;  %v110_v15 = vld [vmem:[%s4964_s9 + $0x8] sm:$0xff]  ;;  %vm2737_vm5 = vcmask 1041408  }
0x19ed   :  { %v3716_v20 = vpop.eup %3715  ;;  %v2016_v23 = vmul.f32 %v3714_v17, %v3698_v0  ;;  %vm2059_vm10 = vmor %vm2057_vm3, %vm2058_vm13  ;;  %v112_v17 = vld [vmem:[%s4964_s9 + $0x18] sm:$0xff]  ;;  %vm2739_vm3 = vcmask 1043456  }
0x19ee   :  { %v2018_v25 = vmul.f32 %v3716_v20, %v3700_v3  ;;  %v3469_v3 = vpack.c.bf16 %v2139_v27, %v2138_v24  ;;  %v3488_v19 = vpack.c.bf16 %v112_v17, %v110_v15  ;;  %v109_v20 = vld [vmem:[%s4964_s9] sm:$0xff] }
0x19ef   :  { %v2030_v28 = vsel %vm5055_vm1, %v2016_v23, 0.0  ;;  %vm2060_vm1 = vcmp.eq.s32.totalorder %v4704_v6, 56  ;;  %v111_v23 = vld [vmem:[%s4964_s9 + $0x10] sm:$0xff] }
0x19f0   :  { %v3718_v30 = vpop.eup %3717  ;;  %v2031_v32 = vadd.f32 %v2030_v28, %v2029_v26  ;;  %v2032_v35 = vsel %vm5056_vm6, %v2018_v25, 0.0  ;;  %vm2061_vm6 = vmor %vm2059_vm10, %vm2060_vm1  ;;  %v3490_v26 = vpack.c.bf16 %v111_v23, %v109_v20  ;;  %3505 = vmatprep.subr.bf16.mxu0 %v3488_v19  ;;  %v114_v25 = vld [vmem:[%s4964_s9 + $0x28] sm:$0xff]  ;;  %v116_v28 = vld [vmem:[%s4964_s9 + $0x38] sm:$0xff] }
0x19f1   :  { %v3720_v40 = vpop.eup %3719  ;;  %v2020_v39 = vmul.f32 %v3718_v30, %v3702_v38  ;;  %v3096_v52 = vsel %vm2061_vm6, 1.0, %v3875_v1  ;;  %v2141_v38 = vld [vmem:[%s4960_s5 + $0x18] sm:$0xff]  ;;  %v3492_v30 = vpack.c.bf16 %v116_v28, %v114_v25  ;;  %vm5069_vm10 = vmmov %vm5064_vm0  ;;  %vm5071_vm6 = vcmask 1045504  }
0x19f2   :  { %v2033_v41 = vadd.f32 %v2032_v35, %v2031_v32  ;;  %v2022_v45 = vmul.f32 %v3720_v40, %v3704_v47  ;;  %v3472_v47 = vpack.c.bf16 %v2141_v38, %v2140_v5  ;;  %3507 = vmatpush1.bf16.msra.mxu0 %v3490_v26  ;;  %v113_v32 = vld [vmem:[%s4964_s9 + $0x20] sm:$0xff]  ;;  %v115_v40 = vld [vmem:[%s4964_s9 + $0x30] sm:$0xff]  ;;  %vm5070_vm1 = vmmov %vm5064_vm0 }
0x19f3   :  { %v2034_v55 = vsel %vm5057_vm8, %v2020_v39, 0.0  ;;  %v3494_v35 = vpack.c.bf16 %v115_v40, %v113_v32  ;;  %3509 = vmatprep.subr.bf16.mxu0 %v3492_v30  ;;  %v118_v39 = vld [vmem:[%s4964_s9 + $0x48] sm:$0xff]  ;;  %vm5062_vm8 = vcmask 261120  }
0x19f4   :  { %v3722_v21 = vpop.eup %3721  ;;  %v2035_v33 = vadd.f32 %v2034_v55, %v2033_v41  ;;  %v2036_v42 = vsel %vm5058_vm2, %v2022_v45, 0.0  ;;  %v120_v41 = vld [vmem:[%s4964_s9 + $0x58] sm:$0xff]  ;;  %v117_v55 = vld [vmem:[%s4964_s9 + $0x40] sm:$0xff]  ;;  %vm5063_vm7 = vmmov %vm5062_vm8 }
0x19f5   :  { %v2024_v49 = vmul.f32 %v3722_v21, %v3706_v60  ;;  %v3475_v60 = vpack.c.bf16 %v2143_v54, %v2142_v48  ;;  %v3496_v45 = vpack.c.bf16 %v120_v41, %v118_v39  ;;  %v119_v21 = vld [vmem:[%s4964_s9 + $0x50] sm:$0xff]  ;;  %vm5065_vm2 = vmmov %vm5063_vm7 }
0x19f6   :  { %v2037_v51 = vadd.f32 %v2036_v42, %v2035_v33  ;;  %3511 = vmatpush1.bf16.msra.mxu0 %v3494_v35  ;;  %v3498_v33 = vpack.c.bf16 %v119_v21, %v117_v55  ;;  %v122_v42 = vld [vmem:[%s4964_s9 + $0x68] sm:$0xff]  ;;  %vm5067_vm11 = vmmov %vm5065_vm2 }
0x19f7   :  { %v2038_v53 = vsel %vm5059_vm15, %v2024_v49, 0.0  ;;  %3513 = vmatprep.subr.bf16.mxu0 %v3496_v45  ;;  %v124_v49 = vld [vmem:[%s4964_s9 + $0x78] sm:$0xff]  ;;  %vm5066_vm15 = vmmov %vm5064_vm0 }
0x19f8   :  { %v2039_v56 = vadd.f32 %v2038_v53, %v2037_v51  ;;  %v3500_v51 = vpack.c.bf16 %v124_v49, %v122_v42  ;;  %v121_v53 = vld [vmem:[%s4964_s9 + $0x60] sm:$0xff]  ;;  %vm5068_vm13 = vmmov %vm5065_vm2 }
0x19fa   :  { %v2040_v57 = vrot.slane %v2039_v56, 4  ;;  %3515 = vmatpush1.bf16.msra.mxu0 %v3498_v33 }
0x19fb   :  { %3517 = vmatprep.subr.bf16.mxu0 %v3500_v51 }
0x19fc   :  { %v2041_v29 = vadd.f32 %v2040_v57, %v2039_v56  ;;  %v123_v56 = vld [vmem:[%s4964_s9 + $0x70] sm:$0xff] }
0x19fd   :  { %v3502_v57 = vpack.c.bf16 %v123_v56, %v121_v53 }
0x19fe   :  { %v2042_v46 = vrot.slane %v2041_v29, 2 }
0x19ff   :  { %3519 = vmatpush1.bf16.msra.mxu0 %v3502_v57 }
0x1a00   :  { %v2043_v59 = vadd.f32 %v2042_v46, %v2041_v29  ;;  %3261 = vmatprep.subr.mxu0 %v3875_v1  ;;  %v3098_v29 = vld [vmem:[#allocation7] ss:$0 sm:$0xff] }
0x1a02   :  { %v2044_v62 = vrot.slane %v2043_v59, 1 }
0x1a04   :  { %v2045_v0 = vadd.f32 %v2044_v62, %v2043_v59 }
0x1a06   :  { %v2064_v36 = vmul.f32 %v3096_v52, %v2045_v0  ;;  %v108_v52 = vld [vmem:[%s4963_s8] sm:$0x3] }
0x1a07   :  { %v2230_v0 = vrot.slane %v108_v52, %v324_v12 }
0x1a08   :  { %3240 = vmatmul.mubr.msk.f32.vlgmr.msra.gmra.mrb[24].mxu1 %vm5060_vm9, %v2064_v36  ;;  %vm2815_vm9 = vcmp.eq.s32.totalorder %v4440_v4, 2 }
0x1a09   :  { %3470 = vmatpush3.bf16.msra.mxu1 %v3469_v3  ;;  %3258 = vmatprep.mubr.msk.f32.mxu1 %vm3880_vm14, %v3875_v1  ;;  %v2234_v3 = vrot.slane %v108_v52, %v328_v14 }
0x1a0a   :  { %3471 = vmatprep.subr.bf16.mxu1 %v3879_v50 }
0x1a0d   :  { %3473 = vmatpush3.bf16.msra.mxu1 %v3472_v47 }
0x1a0e   :  { %3474 = vmatprep.subr.bf16.mxu1 %v3879_v50 }
0x1a11   :  { %3476 = vmatpush3.bf16.msra.mxu1 %v3475_v60 }
0x1a12   :  { %3477 = vmatprep.subr.bf16.mxu1 %v3879_v50 }
0x1a15   :  { %3479 = vmatpush3.bf16.msra.mxu1 %v3478_v16 }
0x1a16   :  { %3481 = vmatprep.subr.bf16.mxu1 %v3480_v43 }
0x1adb   :  { %v2134_v7 = vpop.f32.mrb[24].mxu1 }
0x1adc   :  { %v3241_v9 = vpop.f32.mrb[25].mxu1  ;;  %3259 = vmatmul.mubr.msk.f32.vlgmr.msra.gmra.mrb[26].mxu1 %vm5061_vm12, %v2134_v7  ;;  %vm5072_vm12 = vcmp.eq.s32.totalorder %v4440_v4, 0 }
0x1add   :  { %3483 = vmatpush1.bf16.msra.mxu1 %v3482_v58  ;;  %2304 = vmatprep.mubr.f32.mxu1 %v3875_v1 }
0x1ade   :  { %3485 = vmatprep.subr.bf16.mxu1 %v3484_v18 }
0x1ae1   :  { %3487 = vmatpush1.bf16.msra.mxu1 %v3486_v13 }
0x1ae2   :  { %3489 = vmatprep.subr.bf16.mxu1 %v3488_v19 }
0x1baf   :  { %v2222_v46 = vpop.f32.mrb[26].mxu1 }
0x1bb0   :  { %v2223_v59 = vadd.f32 %v3098_v29, %v2222_v46  ;;  %v3260_v62 = vpop.f32.mrb[27].mxu1 }
0x1bb2   :  { %3100 = vmatmul.mubr.msk.f32.vlgmr.msra.gmra.mrb[28].mxu1 %vm5062_vm8, %v2223_v59  ;;  %vm2816_vm8 = vmor %vm5072_vm12, %vm2815_vm9  ;;  %vm2850_vm9 = vcmask 48128  }
0x1bb3   :  { %3491 = vmatpush1.bf16.msra.mxu1 %v3490_v26  ;;  %2375 = vmatprep.mubr.f32.mxu1 %v3875_v1 }
0x1bb4   :  { %3493 = vmatprep.subr.bf16.mxu1 %v3492_v30 }
0x1bb7   :  { %3495 = vmatpush1.bf16.msra.mxu1 %v3494_v35 }
0x1bb8   :  { %3497 = vmatprep.subr.bf16.mxu1 %v3496_v45 }
0x1bbb   :  { %3499 = vmatpush1.bf16.msra.mxu1 %v3498_v33 }
0x1bbc   :  { %3501 = vmatprep.subr.bf16.mxu1 %v3500_v51 }
0x1bbf   :  { %3503 = vmatpush1.bf16.msra.mxu1 %v3502_v57 }
0x1bc0   :  { %3521 = vmatprep.subr.bf16.mxu1 %v3488_v19 }
0x1bc2   :  { %2376 = vmatmul.mubr.f32.vlgmr.msra.gmra.mrb[30].mxu1 %v3875_v1 }
0x1bc3   :  { %3523 = vmatpush1.bf16.msra.mxu1 %v3490_v26  ;;  %2658 = vmatprep.mubr.f32.mxu1 %v3875_v1 }
0x1bc4   :  { %3525 = vmatprep.subr.bf16.mxu1 %v3492_v30 }
0x1bc7   :  { %3527 = vmatpush1.bf16.msra.mxu1 %v3494_v35 }
0x1bc8   :  { %3529 = vmatprep.subr.bf16.mxu1 %v3496_v45 }
0x1bcb   :  { %3531 = vmatpush1.bf16.msra.mxu1 %v3498_v33 }
0x1bcc   :  { %3533 = vmatprep.subr.bf16.mxu1 %v3500_v51 }
0x1bcf   :  { %3535 = vmatpush1.bf16.msra.mxu1 %v3502_v57 }
0x1c85   :  { %v2306_v24 = vpop.f32.mrb[28].mxu1 }
0x1c86   :  { %v2308_v27 = vpop.f32.mrb[29].mxu1  ;;  %v4841_v36 = vadd.f32 %v2306_v24, %v2230_v0 }
0x1c87   :  { %v4844_v48 = vadd.f32 %v2308_v27, %v2234_v3 }
0x1c95   :  { %v2377_v5 = vpop.f32.mrb[30].mxu1 }
0x1c96   :  { %v2382_v38 = vadd.f32 %v2377_v5, %v4841_v36  ;;  %v2379_v47 = vpop.f32.mrb[31].mxu1 }
0x1c97   :  { %v2408_v54 = vrot.slane %v2379_v47, 4 }
0x1c98   :  { %3723 = vtanh.f32 %v2382_v38  ;;  %v3101_v14 = vmul.f32 -1.442695, %v2382_v38 }
0x1c99   :  { %v2410_v60 = vadd.f32 %v2408_v54, %v4844_v48 }
0x1c9b   :  { %3725 = vtanh.f32 %v2410_v60  ;;  %v3102_v11 = vmul.f32 -1.442695, %v2410_v60 }
0x1c9d   :  { %3727 = vpow2.f32 %v3102_v11 }
0x1c9e   :  { %3729 = vpow2.f32 %v3101_v14 }
0x1ca2   :  { %v3724_v8 = vpop.eup %3723 }
0x1ca3   :  { %2392 = vrot.lane.b32.xlu0 %v3724_v8, %s3877_s4 }
0x1ca5   :  { %v3726_v12 = vpop.eup %3725 }
0x1ca6   :  { %2420 = vrot.lane.b32.xlu1 %v3726_v12, %s3877_s4 }
0x1ca7   :  { %v3728_v34 = vpop.eup %3727 }
0x1ca8   :  { %v2414_v16 = vadd.f32 1.0, %v3728_v34  ;;  %v3730_v2 = vpop.eup %3729 }
0x1ca9   :  { %v2386_v61 = vadd.f32 1.0, %v3730_v2 }
0x1caa   :  { %3731 = vrcp.f32 %v2414_v16 }
0x1cab   :  { %3733 = vrcp.f32 %v2386_v61 }
0x1cb4   :  { %v3732_v43 = vpop.eup %3731 }
0x1cb5   :  { %v3734_v22 = vpop.eup %3733  ;;  %v2418_v18 = vmul.f32 0.0, %v3732_v43 }
0x1cb6   :  { %v2390_v7 = vmul.f32 0.0, %v3734_v22 }
0x1d15   :  { %v2393_v37 = vpop.permute.xlu0 %2392 }
0x1d16   :  { %v2395_v58 = vmul.f32 %v3734_v22, %v2393_v37 }
0x1d18   :  { %v2421_v63 = vpop.permute.xlu1 %2420 }
0x1d19   :  { %v2423_v10 = vmul.f32 %v3732_v43, %v2421_v63 }
0x1d1b   :  { %2425 = vrot.lane.b32.xlu1 %v2423_v10, %s3878_s13 }
0x1d1f   :  { %2397 = vrot.lane.b32.xlu1 %v2395_v58, %s3878_s13 }
0x1d8d   :  { %v2426_v44 = vpop.permute.xlu1 %2425 }
0x1d8e   :  { %v2428_v31 = vadd.f32 %v2426_v44, %v2418_v18 }
0x1d90   :  { %3735 = vtanh.f32 %v2428_v31  ;;  %v2562_v0 = vrot.slane %v2428_v31, 2 }
0x1d91   :  { %v2398_v9 = vpop.permute.xlu1 %2397 }
0x1d92   :  { %v2400_v13 = vadd.f32 %v2398_v9, %v2390_v7 }
0x1d94   :  { %3737 = vtanh.f32 %v2400_v13  ;;  %v2531_v52 = vrot.slane %v2400_v13, 6 }
0x1d9a   :  { %v3736_v15 = vpop.eup %3735 }
0x1d9b   :  { %2431 = vrot.lane.b32.xlu0 %v3736_v15, %s3877_s4 }
0x1d9e   :  { %v3738_v17 = vpop.eup %3737 }
0x1d9f   :  { %2403 = vrot.lane.b32.xlu1 %v3738_v17, %s3877_s4 }
0x1e0d   :  { %v2432_v19 = vpop.permute.xlu0 %2431 }
0x1e0e   :  { %v4853_v20 = vmul.f32 %v3732_v43, %v2432_v19 }
0x1e10   :  { %v2440_v23 = vrot.slane %v4853_v20, 4 }
0x1e11   :  { %v2404_v26 = vpop.permute.xlu1 %2403 }
0x1e12   :  { %v2406_v25 = vmul.f32 %v3734_v22, %v2404_v26  ;;  %2441 = vrot.lane.b32.xlu1 %v2440_v23, %s3877_s4 }
0x1e14   :  { %2436 = vrot.lane.b32.xlu0 %v2406_v25, %s3878_s13 }
0x1e84   :  { %v2442_v28 = vpop.permute.xlu1 %2441 }
0x1e86   :  { %v4858_v30 = vpop.permute.xlu0 %2436 }
0x1e87   :  { %v2444_v32 = vsel %vm5063_vm7, %v4858_v30, %v2442_v28  ;;  %vm2817_vm7 = vcmp.eq.s32.totalorder %v4440_v4, 4294967294 }
0x1e88   :  { %3103 = vmatmul.mubr.msk.f32.vlgmr.msra.gmra.mrb[24].mxu0 %vm5064_vm0, %v2444_v32  ;;  %vm2818_vm0 = vmor %vm2816_vm8, %vm2817_vm7 }
0x1e89   :  { %3263 = vmatprep.mubr.msk.f32.mxu0 %vm3880_vm14, %v3875_v1 }
0x1f5b   :  { %v2514_v40 = vpop.f32.mrb[24].mxu0 }
0x1f5c   :  { %v2520_v35 = vrot.slane %v2514_v40, 6  ;;  %v2516_v39 = vpop.f32.mrb[25].mxu0 }
0x1f5d   :  { %v2551_v41 = vrot.slane %v2516_v39, 6 }
0x1f5e   :  { %v2522_v45 = vadd.f32 %v2520_v35, %v4841_v36 }
0x1f5f   :  { %v2553_v55 = vadd.f32 %v2551_v41, %v4844_v48 }
0x1f60   :  { %3739 = vtanh.f32 %v2522_v45  ;;  %v3104_v42 = vmul.f32 -1.442695, %v2522_v45 }
0x1f61   :  { %3741 = vtanh.f32 %v2553_v55  ;;  %v3105_v49 = vmul.f32 -1.442695, %v2553_v55 }
0x1f62   :  { %3743 = vpow2.f32 %v3104_v42 }
0x1f63   :  { %3745 = vpow2.f32 %v3105_v49 }
0x1f6a   :  { %v3740_v21 = vpop.eup %3739 }
0x1f6b   :  { %v3742_v33 = vpop.eup %3741  ;;  %2535 = vrot.lane.b32.xlu0 %v3740_v21, %s3877_s4 }
0x1f6c   :  { %2566 = vrot.lane.b32.xlu1 %v3742_v33, %s3877_s4  ;;  %v3744_v51 = vpop.eup %3743 }
0x1f6d   :  { %v3746_v53 = vpop.eup %3745  ;;  %v2526_v56 = vadd.f32 1.0, %v3744_v51 }
0x1f6e   :  { %v2557_v57 = vadd.f32 1.0, %v3746_v53 }
0x1f6f   :  { %3747 = vrcp.f32 %v2526_v56 }
0x1f70   :  { %3749 = vrcp.f32 %v2557_v57 }
0x1f79   :  { %v3748_v29 = vpop.eup %3747 }
0x1f7a   :  { %v3750_v59 = vpop.eup %3749  ;;  %v2533_v3 = vmul.f32 %v3748_v29, %v2531_v52 }
0x1f7b   :  { %v2564_v38 = vmul.f32 %v3750_v59, %v2562_v0 }
0x1fdd   :  { %v2536_v46 = vpop.permute.xlu0 %2535 }
0x1fde   :  { %v2538_v62 = vmul.f32 %v3748_v29, %v2536_v46  ;;  %v2567_v24 = vpop.permute.xlu1 %2566 }
0x1fdf   :  { %v2569_v27 = vmul.f32 %v3750_v59, %v2567_v24 }
0x1fe0   :  { %2540 = vrot.lane.b32.xlu0 %v2538_v62, %s3878_s13 }
0x1fe1   :  { %2571 = vrot.lane.b32.xlu1 %v2569_v27, %s3878_s13 }
0x2052   :  { %v2541_v5 = vpop.permute.xlu0 %2540 }
0x2053   :  { %v2543_v47 = vadd.f32 %v2541_v5, %v2533_v3  ;;  %v2572_v54 = vpop.permute.xlu1 %2571 }
0x2054   :  { %v2574_v60 = vadd.f32 %v2572_v54, %v2564_v38 }
0x2055   :  { %3751 = vtanh.f32 %v2543_v47  ;;  %v2677_v40 = vrot.slane %v2543_v47, 6 }
0x2056   :  { %3753 = vtanh.f32 %v2574_v60  ;;  %v2705_v32 = vrot.slane %v2574_v60, 2 }
0x205f   :  { %v3752_v8 = vpop.eup %3751 }
0x2060   :  { %v3754_v12 = vpop.eup %3753  ;;  %2546 = vrot.lane.b32.xlu0 %v3752_v8, %s3877_s4 }
0x2061   :  { %2577 = vrot.lane.b32.xlu1 %v3754_v12, %s3877_s4 }
0x20d2   :  { %v2547_v11 = vpop.permute.xlu0 %2546 }
0x20d3   :  { %v2549_v14 = vmul.f32 %v3748_v29, %v2547_v11  ;;  %v2578_v34 = vpop.permute.xlu1 %2577 }
0x20d4   :  { %v2580_v16 = vmul.f32 %v3750_v59, %v2578_v34 }
0x20d5   :  { %2582 = vrot.lane.b32.xlu0 %v2549_v14, %s3878_s13 }
0x20d6   :  { %2586 = vrot.lane.b32.xlu1 %v2580_v16, %s3877_s4 }
0x2147   :  { %v2583_v2 = vpop.permute.xlu0 %2582 }
0x2148   :  { %v2587_v61 = vpop.permute.xlu1 %2586 }
0x2149   :  { %v2589_v43 = vsel %vm5065_vm2, %v2583_v2, %v2587_v61  ;;  %vm2819_vm2 = vcmp.eq.s32.totalorder %v4440_v4, 4 }
0x214a   :  { %v2591_v63 = vrot.slane %v2589_v43, 2 }
0x214c   :  { %3106 = vmatmul.mubr.msk.f32.vlgmr.msra.gmra.mrb[32].mxu1 %vm5066_vm15, %v2591_v63  ;;  %vm2820_vm15 = vmor %vm2818_vm0, %vm2819_vm2  ;;  %v2927_v63 = vld [vmem:[%s4965_s10 + $0x8] sm:$0xff] }
0x221f   :  { %v2660_v10 = vpop.f32.mrb[32].mxu1 }
0x2220   :  { %v2666_v37 = vrot.slane %v2660_v10, 4  ;;  %v2662_v22 = vpop.f32.mrb[33].mxu1 }
0x2221   :  { %v2696_v58 = vadd.f32 %v2662_v22, %v4844_v48 }
0x2222   :  { %v2668_v18 = vadd.f32 %v2666_v37, %v4841_v36 }
0x2223   :  { %3755 = vtanh.f32 %v2696_v58  ;;  %v3108_v7 = vmul.f32 -1.442695, %v2696_v58 }
0x2224   :  { %3757 = vtanh.f32 %v2668_v18  ;;  %v3107_v9 = vmul.f32 -1.442695, %v2668_v18  ;;  %v2929_v18 = vld [vmem:[%s4965_s10 + $0x18] sm:$0xff] }
0x2225   :  { %3759 = vpow2.f32 %v3108_v7  ;;  %v2931_v7 = vld [vmem:[%s4965_s10 + $0x28] sm:$0xff] }
0x2226   :  { %3761 = vpow2.f32 %v3107_v9 }
0x222d   :  { %v3756_v44 = vpop.eup %3755 }
0x222e   :  { %v3758_v31 = vpop.eup %3757  ;;  %2709 = vrot.lane.b32.xlu0 %v3756_v44, %s3877_s4 }
0x222f   :  { %2681 = vrot.lane.b32.xlu1 %v3758_v31, %s3877_s4  ;;  %v3760_v13 = vpop.eup %3759  ;;  %v2930_v31 = vld [vmem:[%s4965_s10 + $0x20] sm:$0xff] }
0x2230   :  { %v3762_v15 = vpop.eup %3761  ;;  %v2700_v17 = vadd.f32 1.0, %v3760_v13  ;;  %v3543_v9 = vpack.c.bf16 %v2931_v7, %v2930_v31  ;;  %v2932_v13 = vld [vmem:[%s4965_s10 + $0x30] sm:$0xff] }
0x2231   :  { %v2672_v19 = vadd.f32 1.0, %v3762_v15 }
0x2232   :  { %3763 = vrcp.f32 %v2700_v17 }
0x2233   :  { %3765 = vrcp.f32 %v2672_v19 }
0x223c   :  { %v3764_v48 = vpop.eup %3763 }
0x223d   :  { %v3766_v23 = vpop.eup %3765  ;;  %v2707_v35 = vmul.f32 %v3764_v48, %v2705_v32 }
0x223e   :  { %v2679_v41 = vmul.f32 %v3766_v23, %v2677_v40 }
0x22a0   :  { %v2710_v36 = vpop.permute.xlu0 %2709 }
0x22a1   :  { %v2712_v26 = vmul.f32 %v3764_v48, %v2710_v36  ;;  %v2682_v25 = vpop.permute.xlu1 %2681 }
0x22a2   :  { %v2684_v28 = vmul.f32 %v3766_v23, %v2682_v25 }
0x22a3   :  { %2714 = vrot.lane.b32.xlu0 %v2712_v26, %s3878_s13 }
0x22a4   :  { %2686 = vrot.lane.b32.xlu1 %v2684_v28, %s3878_s13 }
0x2315   :  { %v2715_v39 = vpop.permute.xlu0 %2714 }
0x2316   :  { %v2717_v45 = vadd.f32 %v2715_v39, %v2707_v35  ;;  %v2687_v55 = vpop.permute.xlu1 %2686 }
0x2317   :  { %v2689_v21 = vadd.f32 %v2687_v55, %v2679_v41 }
0x2318   :  { %3767 = vtanh.f32 %v2717_v45 }
0x2319   :  { %3769 = vtanh.f32 %v2689_v21 }
0x2322   :  { %v3768_v33 = vpop.eup %3767 }
0x2323   :  { %v3770_v42 = vpop.eup %3769  ;;  %2720 = vrot.lane.b32.xlu0 %v3768_v33, %s3877_s4 }
0x2324   :  { %2692 = vrot.lane.b32.xlu1 %v3770_v42, %s3877_s4 }
0x2395   :  { %v2721_v49 = vpop.permute.xlu0 %2720 }
0x2396   :  { %v2723_v51 = vmul.f32 %v3764_v48, %v2721_v49  ;;  %v2693_v53 = vpop.permute.xlu1 %2692  ;;  %v3114_v48 = vld [vmem:[%s4966_s11] ss:$0 sm:$0xff] }
0x2397   :  { %v2695_v56 = vmul.f32 %v3766_v23, %v2693_v53 }
0x2398   :  { %2725 = vrot.lane.b32.xlu0 %v2723_v51, %s3877_s4 }
0x2399   :  { %2730 = vrot.lane.b32.xlu1 %v2695_v56, %s3878_s13 }
0x239c   :  { %2733 = vrot.lane.b32.xlu0 %v4853_v20, %s3877_s4 }
0x240a   :  { %v2726_v57 = vpop.permute.xlu0 %2725 }
0x240b   :  { %v2728_v29 = vsel %vm5067_vm11, %v4858_v30, %v2726_v57  ;;  %v2731_v46 = vpop.permute.xlu1 %2730 }
0x240c   :  { %v2738_v62 = vsel %vm2737_vm5, %v2728_v29, %v2589_v43  ;;  %vm2821_vm5 = vcmp.eq.s32.totalorder %v4440_v4, 4294967292  ;;  %v2926_v43 = vld [vmem:[%s4965_s10] sm:$0xff] }
0x240d   :  { %vm2822_vm11 = vmor %vm2820_vm15, %vm2821_vm5  ;;  %v3537_v22 = vpack.c.bf16 %v2927_v63, %v2926_v43 }
0x240e   :  { %v2734_v59 = vpop.permute.xlu0 %2733 }
0x240f   :  { %v2736_v24 = vsel %vm5068_vm13, %v2731_v46, %v2734_v59  ;;  %vm2843_vm13 = vcmp.eq.s32.totalorder %v4704_v6, 2 }
0x2410   :  { %v2740_v27 = vsel %vm2739_vm3, %v2738_v62, %v2736_v24  ;;  %vm2824_vm3 = vcmask 46080  }
0x2411   :  { %3262 = vmatpush3.xpose.msk.msra.mxu0 %vm5069_vm10, %v2740_v27  ;;  %vm2844_vm10 = vmor %vm2047_vm4, %vm2843_vm13  ;;  %vm3014_vm4 = vcmask 254976  }
0x2412   :  { %3266 = vmatprep.subr.mxu0 %v3875_v1 }
0x2414   :  { %3264 = vmatmul.mubr.msk.f32.vlgmr.msra.gmra.mrb[26].mxu0 %vm5070_vm1, %v2740_v27  ;;  %vm2845_vm1 = vcmp.eq.s32.totalorder %v4704_v6, 4  ;;  %v2928_v6 = vld [vmem:[%s4965_s10 + $0x10] sm:$0xff] }
0x2415   :  { %3267 = vmatpush3.msk.msra.mxu0 %vm5071_vm6, %v2740_v27  ;;  %3268 = vmatprep.mubr.msk.f32.mxu0 %vm3880_vm14, %v3875_v1  ;;  %vm2846_vm6 = vmor %vm2844_vm10, %vm2845_vm1  ;;  %v3540_v44 = vpack.c.bf16 %v2929_v18, %v2928_v6 }
0x2416   :  { %3536 = vmatprep.subr.bf16.mxu0 %v3879_v50  ;;  %v3111_v10 = vsel %vm2846_vm6, 1.0, %v3875_v1 }
0x24e7   :  { %v2810_v20 = vpop.f32.mrb[26].mxu0 }
0x24e8   :  { %v2814_v30 = vmul.f32 0.125, %v2810_v20  ;;  %v3265_v52 = vpop.f32.mrb[27].mxu0 }
0x24ea   :  { %v2823_v0 = vsel %vm2822_vm11, %v2814_v30, -1e+30 }
0x24eb   :  { %v2825_v3 = vsel %vm2824_vm3, %v2823_v0, -inf }
0x24ec   :  { %2826 = vmax.xlane.f32.xlu1 %v2825_v3 }
0x2579   :  { %v2827_v5 = vpop.xlane.xlu1 %2826 }
0x257a   :  { %v2828_v38 = vsub.f32 %v2823_v0, %v2827_v5 }
0x257c   :  { %v2829_v47 = vmul.f32 1.442695, %v2828_v38 }
0x257e   :  { %3771 = vpow2.f32 %v2829_v47 }
0x2588   :  { %v3772_v54 = vpop.eup %3771 }
0x2589   :  { %v2831_v60 = vsel %vm2824_vm3, %v3772_v54, 0.0 }
0x258a   :  { %2832 = vadd.xlane.f32.xlu0 %v2831_v60 }
0x2617   :  { %v2833_v8 = vpop.xlane.xlu0 %2832 }
0x2618   :  { %3773 = vrcp.f32 %v2833_v8 }
0x2622   :  { %v3774_v12 = vpop.eup %3773 }
0x2623   :  { %v2835_v11 = vmul.f32 %v3774_v12, %v3772_v54 }
0x2625   :  { %v2836_v4 = vsel %vm2824_vm3, %v2835_v11, 0.0 }
0x2626   :  { %v2837_v14 = vrot.slane %v2836_v4, 4 }
0x2628   :  { %v2838_v34 = vadd.f32 %v2837_v14, %v2836_v4 }
0x262a   :  { %v2839_v16 = vrot.slane %v2838_v34, 2 }
0x262c   :  { %v2840_v2 = vadd.f32 %v2839_v16, %v2838_v34 }
0x262e   :  { %v2841_v61 = vrot.slane %v2840_v2, 1 }
0x2630   :  { %v2842_v37 = vadd.f32 %v2841_v61, %v2840_v2 }
0x2632   :  { %v2849_v58 = vmul.f32 %v3111_v10, %v2842_v37 }
0x2634   :  { %3269 = vmatmul.mubr.msk.f32.vlgmr.msra.gmra.mrb[28].mxu0 %vm2850_vm9, %v2849_v58 }
0x2635   :  { %3538 = vmatpush3.bf16.msra.mxu0 %v3537_v22  ;;  %3287 = vmatprep.mubr.msk.f32.mxu0 %vm3880_vm14, %v3875_v1  ;;  %v2933_v1 = vld [vmem:[%s4965_s10 + $0x38] sm:$0xff]  ;;  %vm5073_vm14 = vcmask 523264   ;;  %s3841_s10 = scalar_lea.vmem %s3023_s21, 32 }
0x2636   :  { %3539 = vmatprep.subr.bf16.mxu0 %v3879_v50  ;;  %v3546_v15 = vpack.c.bf16 %v2933_v1, %v2932_v13  ;;  %p3842_p10 = scmp.ne.s32.totalorder %s3023_s21, %s3841_s10  ;;  %p3847_p12 = scmp.lt.s32.totalorder %s3841_s10, %s3841_s10 }
0x2638   :  { %p3848_p13 = por %p3847_p12, %p3846_p11 }
0x2639   :  { %3541 = vmatpush3.bf16.msra.mxu0 %v3540_v44 }
0x263a   :  { %3542 = vmatprep.subr.bf16.mxu0 %v3879_v50  ;;  %p3849_p0 = pnand %p3848_p13, %p3842_p10 }
0x263d   :  { %3544 = vmatpush3.bf16.msra.mxu0 %v3543_v9 }
0x263e   :  { %3545 = vmatprep.subr.bf16.mxu0 %v3879_v50 }
0x2641   :  { %3547 = vmatpush3.bf16.msra.mxu0 %v3546_v15 }
0x2707   :  { %v2922_v17 = vpop.f32.mrb[28].mxu0 }
0x2708   :  { %v3270_v19 = vpop.f32.mrb[29].mxu0  ;;  %3288 = vmatmul.mubr.msk.f32.vlgmr.msra.gmra.mrb[30].mxu0 %vm5073_vm14, %v2922_v17 }
0x27db   :  { %v3010_v36 = vpop.f32.mrb[30].mxu0 }
0x27dc   :  { %v3011_v23 = vadd.f32 %v3114_v48, %v3010_v36  ;;  %v3289_v26 = vpop.f32.mrb[31].mxu0 }
0x27de   :  { %3015 = vst.msk [vmem:[#allocation8] sm:$0x3] %vm3014_vm4, %v3011_v23 }
0x27df   :  { %3852 = shalt.err (!%p3849_p0)
}
0x27e0   :  { %s3853_s7 = scalar_lea.hbm %s4967_s12, 32 }
0x27e1   :  { %p3854_p1 = scmp.ne.s32.totalorder %s4967_s12, %s3853_s7  ;;  %p3857_p2 = scmp.lt.u32.totalorder %s3853_s7, %s4967_s12 }
0x27e3   :  { %p3859_p3 = pnand %p3857_p2, %p3854_p1 }
0x27e5   :  { %3862 = shalt.err (!%p3859_p3)
}
0x27e6   :  { %3025 = dma.vmem_to_hbm [thread:$0]  %s3023_s21, 32, %s4967_s12, [#allocation4]  }
0x27e7   :  { %3867 = dma.done.wait [#allocation4], 32  }
0x27e8   :  { %3868 = vsyncadd [#allocation4], 4294967264 }
0x27e9   :  { %3029 = vsyncpa [#allocation3], 1 }
0x27ea   :  { %3030 = vsyncpa [#allocation6], 1 }
0x27eb   :  { %3031 = vsyncpa [#allocation4], 1 }

</bundles_post_ra>
